<compile_context>
chip_gen: v6e
topology: v6e:2x2x1
jax: 0.10.0
libtpu: 0.0.40
codegen_flags: <defaults>
</compile_context>

<pallas_src>
import functools

import jax
import jax.numpy as jnp
from jax.experimental import pallas as pl
from jax.experimental.pallas import tpu as pltpu

BN_EPS = 1e-5
# 48 MiB scoped VMEM is safe on every generation (v7x physical VMEM is 64 MiB/core);
# on v5e/v6e (128 MiB) VMEM_LIMIT and TARGET_TILE_ROWS can be raised further.
VMEM_LIMIT = 48 * 1024 * 1024
TARGET_TILE_ROWS = 1024      # max output rows (th*W) per grid step
MIN_TILE_ROWS = 32           # don't shrink tiles below this when adding pipeline steps
MIN_ROW_TILES = 2            # aim for >=2 row-tiles per image (pipeline overlap)

LAYER_CHANNELS = [(3, 32), (32, 64), (64, 128), (128, 256)]


def _pick_th(h, w, pool):
    """Output rows of one image handled per grid step.

    Halve th while the tile is larger than TARGET_TILE_ROWS, then keep halving (down to
    MIN_TILE_ROWS) until each image spans >= MIN_ROW_TILES grid steps so the BlockSpec
    pipeline can overlap DMA with compute at small shapes.  th stays even for pooled
    layers so every tile covers whole 2x2 pool windows.
    """
    def can_halve(t):
        return t % 2 == 0 and ((not pool) or (t // 2) % 2 == 0)

    th = h
    while can_halve(th) and th * w > TARGET_TILE_ROWS:
        th //= 2
    while can_halve(th) and (h // th) < MIN_ROW_TILES and th * w > MIN_TILE_ROWS:
        th //= 2
    return th


# ---------------------------------------------------------------------------
# Pass A kernels: conv (MXU) + per-tile BatchNorm partial statistics
# ---------------------------------------------------------------------------
def _conv3x3_stats_kernel(xpad_ref, w_ref, y_ref, psum_ref, psq_ref, *, th, width):
    """3x3/pad-1 conv of one (th, W) output row-tile as 9 value-accumulated bf16 matmuls.

    xpad_ref: (1, H+2, W+2, Cin) bf16  whole halo-padded image (VMEM-resident across j)
    w_ref:    (3, 3, Cin, Cout)  bf16
    y_ref:    (1, th*W, Cout)    bf16  conv output tile (pre-BN)
    psum_ref: (1, 1, Cout)       f32   per-tile column sum       (for BN mean)
    psq_ref:  (1, 1, Cout)       f32   per-tile column sum-of-sq (for BN var)
    """
    row0 = pl.program_id(1) * th
    cin = xpad_ref.shape[-1]

    acc = None
    for kx in range(3):
        # One kx-shifted operand covering th+2 halo rows, reused by all three ky taps.
        a_kx = xpad_ref[0, pl.ds(row0, th + 2), pl.ds(kx, width), :]
        a_kx = a_kx.reshape((th + 2) * width, cin)
        for ky in range(3):
            a = a_kx[ky * width:(ky + th) * width]
            part = jnp.dot(a, w_ref[ky, kx], preferred_element_type=jnp.float32)
            acc = part if acc is None else acc + part

    y_ref[0] = acc.astype(y_ref.dtype)
    psum_ref[0] = jnp.sum(acc, axis=0, keepdims=True)
    psq_ref[0] = jnp.sum(acc * acc, axis=0, keepdims=True)


def _matmul_stats_kernel(x_ref, w_ref, y_ref, psum_ref, psq_ref):
    """Layer-1 conv as a single (th*W, 27) @ (27, Cout) matmul (input pre-im2col'd)."""
    acc = jnp.dot(x_ref[0], w_ref[...], preferred_element_type=jnp.float32)
    y_ref[0] = acc.astype(y_ref.dtype)
    psum_ref[0] = jnp.sum(acc, axis=0, keepdims=True)
    psq_ref[0] = jnp.sum(acc * acc, axis=0, keepdims=True)


# ---------------------------------------------------------------------------
# Pass B kernels: BatchNorm (train-mode batch stats) + Mish (+ fused 2x2 max-pool)
# ---------------------------------------------------------------------------
def _mish_f32(z):
    """Mish(z) = z * tanh(softplus(z)) with one exp + one approx reciprocal (EUP).

    tanh(softplus(z)) = ((1+e)^2 - 1)/((1+e)^2 + 1) = u/(u+2), u = e*(e+2), e = exp(z).
    Clamp z at 30: beyond that tanh(softplus(z)) == 1 in f32.
    """
    e = jnp.exp(jnp.minimum(z, 30.0))
    u = e * (e + 2.0)
    return z * (u * pl.reciprocal(u + 2.0, approx=True))


def _bn_scale_shift(psum_ref, psq_ref, gamma_ref, beta_ref, inv_count):
    mean = psum_ref[...] * inv_count                                   # (1, C)
    var = jnp.maximum(psq_ref[...] * inv_count - mean * mean, 0.0)     # biased (train)
    scale = gamma_ref[...] * jax.lax.rsqrt(var + BN_EPS)
    shift = beta_ref[...] - mean * scale
    return scale, shift


def _bn_mish_pool_pad_kernel(y_ref, psum_ref, psq_ref, gamma_ref, beta_ref, o_ref,
                             *, th, width, inv_count):
    """BN + Mish + fused 2x2/stride-2 max-pool; writes the NEXT layer's halo-padded
    bf16 input directly (zero border, interior rows filled tile by tile)."""
    j = pl.program_id(1)
    scale, shift = _bn_scale_shift(psum_ref, psq_ref, gamma_ref, beta_ref, inv_count)
    z = y_ref[0].astype(jnp.float32) * scale + shift                   # (th*W, C)
    m = _mish_f32(z)

    c = m.shape[-1]
    w2 = width // 2
    th2 = th // 2
    # pool along W: adjacent flat rows are adjacent x (width is even, so pairs never
    # straddle an image row)
    mw = m.reshape(th * w2, 2, c)
    pw = jnp.maximum(mw[:, 0, :], mw[:, 1, :])
    # pool along H: row pairs are w2 apart
    ph = pw.reshape(th2, 2, w2, c)
    p = jnp.maximum(ph[:, 0, :, :], ph[:, 1, :, :])                    # (th/2, W/2, C)

    # Add the left/right zero halo columns so the store is full-width in the last two
    # dims (lane-dense, no partial-column store).
    zcol = jnp.zeros((th2, 1, c), dtype=p.dtype)
    p_pad = jnp.concatenate([zcol, p, zcol], axis=1).astype(o_ref.dtype)

    @pl.when(j == 0)
    def _():                               # zero border rows/cols once per image
        o_ref[...] = jnp.zeros_like(o_ref)

    o_ref[0, pl.ds(j * th2 + 1, th2), :, :] = p_pad


def _bn_mish_kernel(y_ref, psum_ref, psq_ref, gamma_ref, beta_ref, o_ref, *, inv_count):
    """BN + Mish (no pooling, unpadded f32 output) -- final block."""
    scale, shift = _bn_scale_shift(psum_ref, psq_ref, gamma_ref, beta_ref, inv_count)
    o_ref[0] = _mish_f32(y_ref[0].astype(jnp.float32) * scale + shift)


# ---------------------------------------------------------------------------
# Per-layer wrappers
# ---------------------------------------------------------------------------
def _bn_mish_epilogue(y3d, psum, psq, gamma, beta, *, n, h, w, cout, th, hb, pool):
    # Tiny glue left in XLA: reduce per-tile partial sums to per-channel totals.
    psum_tot = jnp.sum(psum, axis=0)       # (1, Cout)
    psq_tot = jnp.sum(psq, axis=0)         # (1, Cout)
    gamma2 = gamma.astype(jnp.float32).reshape(1, cout)
    beta2 = beta.astype(jnp.float32).reshape(1, cout)
    inv_count = 1.0 / float(n * h * w)

    y_spec = pl.BlockSpec((1, th * w, cout), lambda i, j: (i * hb + j, 0, 0))
    vec_spec = pl.BlockSpec((1, cout), lambda i, j: (0, 0))

    if pool:
        h2, w2 = h // 2, w // 2
        # Output block = one whole padded image, revisited across j -> j is "arbitrary".
        return pl.pallas_call(
            functools.partial(_bn_mish_pool_pad_kernel, th=th, width=w,
                              inv_count=inv_count),
            out_shape=jax.ShapeDtypeStruct((n, h2 + 2, w2 + 2, cout), jnp.bfloat16),
            grid=(n, hb),
            in_specs=[y_spec, vec_spec, vec_spec, vec_spec, vec_spec],
            out_specs=pl.BlockSpec((1, h2 + 2, w2 + 2, cout),
                                   lambda i, j: (i, 0, 0, 0)),
            compiler_params=pltpu.CompilerParams(
                dimension_semantics=("parallel", "arbitrary"),
                vmem_limit_bytes=VMEM_LIMIT),
        )(y3d, psum_tot, psq_tot, gamma2, beta2)

    out = pl.pallas_call(
        functools.partial(_bn_mish_kernel, inv_count=inv_count),
        out_shape=jax.ShapeDtypeStruct((n * hb, th * w, cout), jnp.float32),
        grid=(n, hb),
        in_specs=[y_spec, vec_spec, vec_spec, vec_spec, vec_spec],
        out_specs=pl.BlockSpec((1, th * w, cout), lambda i, j: (i * hb + j, 0, 0)),
        compiler_params=pltpu.CompilerParams(
            dimension_semantics=("parallel", "parallel"),
            vmem_limit_bytes=VMEM_LIMIT),
    )(y3d, psum_tot, psq_tot, gamma2, beta2)
    return out.reshape(n, h, w, cout)


def conv3x3_block(xpad, w_oihw, gamma, beta, *, pool):
    """xpad: (N, H+2, W+2, Cin) bf16, halo-padded (zero border) from the previous block.
    Returns the next layer's halo-padded bf16 input (pool=True) or (N,H,W,Cout) f32."""
    n, hp2, wp2, cin = xpad.shape
    h, w = hp2 - 2, wp2 - 2
    cout = int(w_oihw.shape[0])
    assert int(w_oihw.shape[1]) == cin
    if pool:
        assert h % 2 == 0 and w % 2 == 0

    th = _pick_th(h, w, pool)
    hb = h // th

    wk = jnp.transpose(w_oihw, (2, 3, 1, 0)).astype(jnp.bfloat16)     # (3,3,Cin,Cout)

    y3d, psum, psq = pl.pallas_call(
        functools.partial(_conv3x3_stats_kernel, th=th, width=w),
        out_shape=[
            jax.ShapeDtypeStruct((n * hb, th * w, cout), jnp.bfloat16),
            jax.ShapeDtypeStruct((n * hb, 1, cout), jnp.float32),
            jax.ShapeDtypeStruct((n * hb, 1, cout), jnp.float32),
        ],
        grid=(n, hb),
        in_specs=[
            # TODO(synk): at large resolutions bound this whole-image block's VMEM use
            # on v7x (64 MiB) via a th+2-row halo DMA or pl.Buffered(1).
            pl.BlockSpec((1, hp2, wp2, cin), lambda i, j: (i, 0, 0, 0)),
            pl.BlockSpec((3, 3, cin, cout), lambda i, j: (0, 0, 0, 0)),
        ],
        out_specs=[
            pl.BlockSpec((1, th * w, cout), lambda i, j: (i * hb + j, 0, 0)),
            pl.BlockSpec((1, 1, cout), lambda i, j: (i * hb + j, 0, 0)),
            pl.BlockSpec((1, 1, cout), lambda i, j: (i * hb + j, 0, 0)),
        ],
        compiler_params=pltpu.CompilerParams(
            dimension_semantics=("parallel", "parallel"),
            vmem_limit_bytes=VMEM_LIMIT),
    )(xpad, wk)

    return _bn_mish_epilogue(y3d, psum, psq, gamma, beta,
                             n=n, h=h, w=w, cout=cout, th=th, hb=hb, pool=pool)


def first_conv_block(x_nhwc, w_oihw, gamma, beta, *, pool):
    """Layer 1 (Cin=3): im2col the 3x3x3 patches once (K=27) so pass A is one small
    unpadded matmul per tile instead of 9 taps against a 128-padded contraction dim."""
    n, h, w, cin = x_nhwc.shape
    cout = int(w_oihw.shape[0])
    assert int(w_oihw.shape[1]) == cin
    if pool:
        assert h % 2 == 0 and w % 2 == 0

    th = _pick_th(h, w, pool)
    hb = h // th
    k = 9 * cin

    xpad = jnp.pad(x_nhwc, ((0, 0), (1, 1), (1, 1), (0, 0)))
    patches = jnp.concatenate(
        [xpad[:, ky:ky + h, kx:kx + w, :] for ky in range(3) for kx in range(3)],
        axis=-1)                                                       # (N, H, W, 27)
    patches = patches.astype(jnp.bfloat16).reshape(n, h * w, k)
    wk = jnp.transpose(w_oihw, (2, 3, 1, 0)).reshape(k, cout).astype(jnp.bfloat16)

    y3d, psum, psq = pl.pallas_call(
        _matmul_stats_kernel,
        out_shape=[
            jax.ShapeDtypeStruct((n * hb, th * w, cout), jnp.bfloat16),
            jax.ShapeDtypeStruct((n * hb, 1, cout), jnp.float32),
            jax.ShapeDtypeStruct((n * hb, 1, cout), jnp.float32),
        ],
        grid=(n, hb),
        in_specs=[
            pl.BlockSpec((1, th * w, k), lambda i, j: (i, j, 0)),
            pl.BlockSpec((k, cout), lambda i, j: (0, 0)),
        ],
        out_specs=[
            pl.BlockSpec((1, th * w, cout), lambda i, j: (i * hb + j, 0, 0)),
            pl.BlockSpec((1, 1, cout), lambda i, j: (i * hb + j, 0, 0)),
            pl.BlockSpec((1, 1, cout), lambda i, j: (i * hb + j, 0, 0)),
        ],
        compiler_params=pltpu.CompilerParams(
            dimension_semantics=("parallel", "parallel"),
            vmem_limit_bytes=VMEM_LIMIT),
    )(patches, wk)

    return _bn_mish_epilogue(y3d, psum, psq, gamma, beta,
                             n=n, h=h, w=w, cout=cout, th=th, hb=hb, pool=pool)


# ---------------------------------------------------------------------------
# VGG16 module
# ---------------------------------------------------------------------------
def init_params(key):
    params = []
    for i, (cin, cout) in enumerate(LAYER_CHANNELS):
        kw, kg, kb = jax.random.split(jax.random.fold_in(key, i), 3)
        fan_in = cin * 9
        w = jax.random.normal(kw, (cout, cin, 3, 3), jnp.float32) / jnp.sqrt(fan_in)
        gamma = 1.0 + 0.1 * jax.random.normal(kg, (cout,), jnp.float32)
        beta = 0.1 * jax.random.normal(kb, (cout,), jnp.float32)
        params.append({"w": w, "gamma": gamma, "beta": beta})
    return params


@jax.jit
def vgg16_forward(x_nchw, params):
    # NCHW -> NHWC (channels last = lane dim)
    x = jnp.transpose(x_nchw, (0, 2, 3, 1)).astype(jnp.float32)

    # layer1 + pool: emits layer2's halo-padded bf16 input directly
    x = first_conv_block(x, params[0]["w"], params[0]["gamma"], params[0]["beta"], pool=True)
    # layer2 + pool, layer3 + pool: each emits the next layer's halo-padded bf16 input
    x = conv3x3_block(x, params[1]["w"], params[1]["gamma"], params[1]["beta"], pool=True)
    x = conv3x3_block(x, params[2]["w"], params[2]["gamma"], params[2]["beta"], pool=True)
    # layer4 (no pool): (N, H, W, 256) f32
    x = conv3x3_block(x, params[3]["w"], params[3]["gamma"], params[3]["beta"], pool=False)

    return jnp.transpose(x, (0, 3, 1, 2))    # back to NCHW like PyTorch


if __name__ == "__main__":
    key = jax.random.PRNGKey(0)
    kx, kp = jax.random.split(key)

    x = jax.random.normal(kx, (2, 3, 16, 16), jnp.float32)   # NCHW like PyTorch
    params = init_params(kp)

    out = vgg16_forward(x, params)
    out = jax.block_until_ready(out)

    assert out.shape == (2, 256, 2, 2), out.shape
    assert bool(jnp.all(jnp.isfinite(out)))
    print("KERNEL_OK")
</pallas_src>

<mosaic_0001>
module attributes {stable_mosaic.version = 11 : i64} {
  func.func @_matmul_stats_kernel(%arg0: i32, %arg1: i32, %arg2: memref<1x128x27xbf16, #tpu.memory_space<vmem>>, %arg3: memref<27x32xbf16, #tpu.memory_space<vmem>>, %arg4: memref<1x128x32xbf16, #tpu.memory_space<vmem>>, %arg5: memref<1x1x32xf32, #tpu.memory_space<vmem>>, %arg6: memref<1x1x32xf32, #tpu.memory_space<vmem>>) attributes {dimension_semantics = [#tpu.dimension_semantics<parallel>, #tpu.dimension_semantics<parallel>], iteration_bounds = array<i64: 2, 2>, scalar_prefetch = 0 : i64, scratch_operands = 0 : i64, tpu.core_type = #tpu.core_type<tc>, window_params = [{transform_indices = @transform_0, window_bounds = array<i64: 1, 128, 27>}, {pipeline_mode = #tpu.pipeline_mode<synchronous>, transform_indices = @transform_1, window_bounds = array<i64: 27, 32>}, {transform_indices = @transform_2, window_bounds = array<i64: 1, 128, 32>}, {transform_indices = @transform_3, window_bounds = array<i64: 1, 1, 32>}, {transform_indices = @transform_4, window_bounds = array<i64: 1, 1, 32>}]} {
    %c0 = arith.constant 0 : index
    %c0_0 = arith.constant 0 : index
    %c0_1 = arith.constant 0 : index
    %0 = vector.load %arg2[%c0, %c0_0, %c0_1] : memref<1x128x27xbf16, #tpu.memory_space<vmem>>, vector<1x128x27xbf16>
    %1 = vector.shape_cast %0 : vector<1x128x27xbf16> to vector<128x27xbf16>
    %c0_2 = arith.constant 0 : index
    %c0_3 = arith.constant 0 : index
    %2 = vector.load %arg3[%c0_2, %c0_3] : memref<27x32xbf16, #tpu.memory_space<vmem>>, vector<27x32xbf16>
    %cst = arith.constant dense<0.000000e+00> : vector<128x32xf32>
    %3 = tpu.matmul %1, %2, %cst {dimension_numbers = #tpu.dot_dimension_numbers<[1], [0], [0], [1], [0, 0, 1, 1], [], []>} : vector<128x27xbf16>, vector<27x32xbf16>, vector<128x32xf32> -> vector<128x32xf32>
    %4 = arith.truncf %3 : vector<128x32xf32> to vector<128x32xbf16>
    %c0_4 = arith.constant 0 : index
    %c0_5 = arith.constant 0 : index
    %c0_6 = arith.constant 0 : index
    %5 = vector.load %arg4[%c0_4, %c0_5, %c0_6] : memref<1x128x32xbf16, #tpu.memory_space<vmem>>, vector<1x128x32xbf16>
    %6 = vector.shape_cast %5 : vector<1x128x32xbf16> to vector<128x32xbf16>
    %7 = vector.shape_cast %4 : vector<128x32xbf16> to vector<1x128x32xbf16>
    tpu.vector_store %arg4[%c0_4, %c0_5, %c0_6], %7 {strides = array<i32>} : memref<1x128x32xbf16, #tpu.memory_space<vmem>>, vector<1x128x32xbf16>,
    %cst_7 = arith.constant dense<0.000000e+00> : vector<32xf32>
    %8 = vector.multi_reduction <add>, %3, %cst_7 [0] : vector<128x32xf32> to vector<32xf32>
    %9 = vector.shape_cast %8 : vector<32xf32> to vector<1x32xf32>
    %c0_8 = arith.constant 0 : index
    %c0_9 = arith.constant 0 : index
    %c0_10 = arith.constant 0 : index
    %10 = vector.load %arg5[%c0_8, %c0_9, %c0_10] : memref<1x1x32xf32, #tpu.memory_space<vmem>>, vector<1x1x32xf32>
    %11 = vector.shape_cast %10 : vector<1x1x32xf32> to vector<1x32xf32>
    %12 = vector.shape_cast %9 : vector<1x32xf32> to vector<1x1x32xf32>
    tpu.vector_store %arg5[%c0_8, %c0_9, %c0_10], %12 {strides = array<i32>} : memref<1x1x32xf32, #tpu.memory_space<vmem>>, vector<1x1x32xf32>,
    %13 = arith.mulf %3, %3 : vector<128x32xf32>
    %cst_11 = arith.constant dense<0.000000e+00> : vector<32xf32>
    %14 = vector.multi_reduction <add>, %13, %cst_11 [0] : vector<128x32xf32> to vector<32xf32>
    %15 = vector.shape_cast %14 : vector<32xf32> to vector<1x32xf32>
    %c0_12 = arith.constant 0 : index
    %c0_13 = arith.constant 0 : index
    %c0_14 = arith.constant 0 : index
    %16 = vector.load %arg6[%c0_12, %c0_13, %c0_14] : memref<1x1x32xf32, #tpu.memory_space<vmem>>, vector<1x1x32xf32>
    %17 = vector.shape_cast %16 : vector<1x1x32xf32> to vector<1x32xf32>
    %18 = vector.shape_cast %15 : vector<1x32xf32> to vector<1x1x32xf32>
    tpu.vector_store %arg6[%c0_12, %c0_13, %c0_14], %18 {strides = array<i32>} : memref<1x1x32xf32, #tpu.memory_space<vmem>>, vector<1x1x32xf32>,
    return
  }
  func.func @transform_0(%arg0: i32, %arg1: i32) -> (i32, i32, i32) {
    %c0_i32 = arith.constant 0 : i32
    %c0_i32_0 = arith.constant 0 : i32
    return %arg0, %arg1, %c0_i32 : i32, i32, i32
  }
  func.func @transform_1(%arg0: i32, %arg1: i32) -> (i32, i32) {
    %c0_i32 = arith.constant 0 : i32
    %c0_i32_0 = arith.constant 0 : i32
    %c0_i32_1 = arith.constant 0 : i32
    return %c0_i32, %c0_i32_0 : i32, i32
  }
  func.func @transform_2(%arg0: i32, %arg1: i32) -> (i32, i32, i32) {
    %c2_i32 = arith.constant 2 : i32
    %0 = arith.muli %arg0, %c2_i32 : i32
    %1 = arith.addi %0, %arg1 : i32
    %c0_i32 = arith.constant 0 : i32
    %c0_i32_0 = arith.constant 0 : i32
    %c0_i32_1 = arith.constant 0 : i32
    return %1, %c0_i32, %c0_i32_0 : i32, i32, i32
  }
  func.func @transform_3(%arg0: i32, %arg1: i32) -> (i32, i32, i32) {
    %c2_i32 = arith.constant 2 : i32
    %0 = arith.muli %arg0, %c2_i32 : i32
    %1 = arith.addi %0, %arg1 : i32
    %c0_i32 = arith.constant 0 : i32
    %c0_i32_0 = arith.constant 0 : i32
    %c0_i32_1 = arith.constant 0 : i32
    return %1, %c0_i32, %c0_i32_0 : i32, i32, i32
  }
  func.func @transform_4(%arg0: i32, %arg1: i32) -> (i32, i32, i32) {
    %c2_i32 = arith.constant 2 : i32
    %0 = arith.muli %arg0, %c2_i32 : i32
    %1 = arith.addi %0, %arg1 : i32
    %c0_i32 = arith.constant 0 : i32
    %c0_i32_0 = arith.constant 0 : i32
    %c0_i32_1 = arith.constant 0 : i32
    return %1, %c0_i32, %c0_i32_0 : i32, i32, i32
  }
}

module attributes {stable_mosaic.version = 11 : i64} {
  func.func @_bn_mish_pool_pad_kernel(%arg0: i32, %arg1: i32, %arg2: memref<1x128x32xbf16, #tpu.memory_space<vmem>>, %arg3: memref<1x32xf32, #tpu.memory_space<vmem>>, %arg4: memref<1x32xf32, #tpu.memory_space<vmem>>, %arg5: memref<1x32xf32, #tpu.memory_space<vmem>>, %arg6: memref<1x32xf32, #tpu.memory_space<vmem>>, %arg7: memref<1x10x10x32xbf16, #tpu.memory_space<vmem>>) attributes {dimension_semantics = [#tpu.dimension_semantics<parallel>, #tpu.dimension_semantics<arbitrary>], iteration_bounds = array<i64: 2, 2>, scalar_prefetch = 0 : i64, scratch_operands = 0 : i64, tpu.core_type = #tpu.core_type<tc>, window_params = [{transform_indices = @transform_0, window_bounds = array<i64: 1, 128, 32>}, {pipeline_mode = #tpu.pipeline_mode<synchronous>, transform_indices = @transform_1, window_bounds = array<i64: 1, 32>}, {pipeline_mode = #tpu.pipeline_mode<synchronous>, transform_indices = @transform_2, window_bounds = array<i64: 1, 32>}, {pipeline_mode = #tpu.pipeline_mode<synchronous>, transform_indices = @transform_3, window_bounds = array<i64: 1, 32>}, {pipeline_mode = #tpu.pipeline_mode<synchronous>, transform_indices = @transform_4, window_bounds = array<i64: 1, 32>}, {transform_indices = @transform_5, window_bounds = array<i64: 1, 10, 10, 32>}]} {
    %c0 = arith.constant 0 : index
    %c0_0 = arith.constant 0 : index
    %0 = vector.load %arg3[%c0, %c0_0] : memref<1x32xf32, #tpu.memory_space<vmem>>, vector<1x32xf32>
    %cst = arith.constant 0.001953125 : f32
    %1 = vector.broadcast %cst : f32 to vector<1x32xf32>
    %2 = arith.mulf %0, %1 : vector<1x32xf32>
    %c0_1 = arith.constant 0 : index
    %c0_2 = arith.constant 0 : index
    %3 = vector.load %arg4[%c0_1, %c0_2] : memref<1x32xf32, #tpu.memory_space<vmem>>, vector<1x32xf32>
    %cst_3 = arith.constant 0.001953125 : f32
    %4 = vector.broadcast %cst_3 : f32 to vector<1x32xf32>
    %5 = arith.mulf %3, %4 : vector<1x32xf32>
    %6 = arith.mulf %2, %2 : vector<1x32xf32>
    %7 = arith.subf %5, %6 : vector<1x32xf32>
    %cst_4 = arith.constant 0.000000e+00 : f32
    %8 = vector.broadcast %cst_4 : f32 to vector<1x32xf32>
    %9 = arith.maximumf %7, %8 : vector<1x32xf32>
    %c0_5 = arith.constant 0 : index
    %c0_6 = arith.constant 0 : index
    %10 = vector.load %arg5[%c0_5, %c0_6] : memref<1x32xf32, #tpu.memory_space<vmem>>, vector<1x32xf32>
    %cst_7 = arith.constant 9.99999974E-6 : f32
    %11 = vector.broadcast %cst_7 : f32 to vector<1x32xf32>
    %12 = arith.addf %9, %11 : vector<1x32xf32>
    %13 = math.rsqrt %12 : vector<1x32xf32>
    %14 = arith.mulf %10, %13 : vector<1x32xf32>
    %c0_8 = arith.constant 0 : index
    %c0_9 = arith.constant 0 : index
    %15 = vector.load %arg6[%c0_8, %c0_9] : memref<1x32xf32, #tpu.memory_space<vmem>>, vector<1x32xf32>
    %16 = arith.mulf %2, %14 : vector<1x32xf32>
    %17 = arith.subf %15, %16 : vector<1x32xf32>
    %c0_10 = arith.constant 0 : index
    %c0_11 = arith.constant 0 : index
    %c0_12 = arith.constant 0 : index
    %18 = vector.load %arg2[%c0_10, %c0_11, %c0_12] : memref<1x128x32xbf16, #tpu.memory_space<vmem>>, vector<1x128x32xbf16>
    %19 = vector.shape_cast %18 : vector<1x128x32xbf16> to vector<128x32xbf16>
    %20 = arith.extf %19 : vector<128x32xbf16> to vector<128x32xf32>
    %21 = vector.broadcast %14 : vector<1x32xf32> to vector<128x32xf32>
    %22 = arith.mulf %20, %21 : vector<128x32xf32>
    %23 = vector.broadcast %17 : vector<1x32xf32> to vector<128x32xf32>
    %24 = arith.addf %22, %23 : vector<128x32xf32>
    %cst_13 = arith.constant 3.000000e+01 : f32
    %25 = vector.broadcast %cst_13 : f32 to vector<128x32xf32>
    %26 = arith.minimumf %24, %25 : vector<128x32xf32>
    %27 = math.exp %26 : vector<128x32xf32>
    %cst_14 = arith.constant 2.000000e+00 : f32
    %28 = vector.broadcast %cst_14 : f32 to vector<128x32xf32>
    %29 = arith.addf %27, %28 : vector<128x32xf32>
    %30 = arith.mulf %27, %29 : vector<128x32xf32>
    %cst_15 = arith.constant 2.000000e+00 : f32
    %31 = vector.broadcast %cst_15 : f32 to vector<128x32xf32>
    %32 = arith.addf %30, %31 : vector<128x32xf32>
    %33 = tpu.reciprocal %32 {approx = true} : vector<128x32xf32> -> vector<128x32xf32>
    %34 = arith.mulf %30, %33 : vector<128x32xf32>
    %35 = arith.mulf %24, %34 : vector<128x32xf32>
    %36 = vector.shape_cast %35 : vector<128x32xf32> to vector<64x2x32xf32>
    %37 = vector.extract_strided_slice %36 {offsets = [0, 0, 0], sizes = [64, 1, 32], strides = [1, 1, 1]} : vector<64x2x32xf32> to vector<64x1x32xf32>
    %38 = vector.shape_cast %37 : vector<64x1x32xf32> to vector<64x32xf32>
    %39 = vector.extract_strided_slice %36 {offsets = [0, 1, 0], sizes = [64, 1, 32], strides = [1, 1, 1]} : vector<64x2x32xf32> to vector<64x1x32xf32>
    %40 = vector.shape_cast %39 : vector<64x1x32xf32> to vector<64x32xf32>
    %41 = arith.maximumf %38, %40 : vector<64x32xf32>
    %42 = vector.shape_cast %41 : vector<64x32xf32> to vector<4x2x8x32xf32>
    %43 = vector.extract_strided_slice %42 {offsets = [0, 0, 0, 0], sizes = [4, 1, 8, 32], strides = [1, 1, 1, 1]} : vector<4x2x8x32xf32> to vector<4x1x8x32xf32>
    %44 = vector.shape_cast %43 : vector<4x1x8x32xf32> to vector<4x8x32xf32>
    %45 = vector.extract_strided_slice %42 {offsets = [0, 1, 0, 0], sizes = [4, 1, 8, 32], strides = [1, 1, 1, 1]} : vector<4x2x8x32xf32> to vector<4x1x8x32xf32>
    %46 = vector.shape_cast %45 : vector<4x1x8x32xf32> to vector<4x8x32xf32>
    %47 = arith.maximumf %44, %46 : vector<4x8x32xf32>
    %cst_16 = arith.constant 0.000000e+00 : f32
    %48 = vector.broadcast %cst_16 : f32 to vector<4x1x32xf32>
    %49 = tpu.concatenate %48, %47, %48 in 1 : vector<4x1x32xf32>, vector<4x8x32xf32>, vector<4x1x32xf32> -> vector<4x10x32xf32>
    %50 = arith.truncf %49 : vector<4x10x32xf32> to vector<4x10x32xbf16>
    %c0_i32 = arith.constant 0 : i32
    %51 = arith.cmpi eq, %arg1, %c0_i32 : i32
    %52 = arith.extui %51 : i1 to i32
    %c0_i32_17 = arith.constant 0 : i32
    %53 = arith.cmpi ne, %52, %c0_i32_17 : i32
    scf.if %53 {
      %cst_21 = arith.constant 0.000000e+00 : bf16
      %60 = vector.broadcast %cst_21 : bf16 to vector<1x10x10x32xbf16>
      %c0_22 = arith.constant 0 : index
      %c0_23 = arith.constant 0 : index
      %c0_24 = arith.constant 0 : index
      %c0_25 = arith.constant 0 : index
      %61 = vector.load %arg7[%c0_22, %c0_23, %c0_24, %c0_25] : memref<1x10x10x32xbf16, #tpu.memory_space<vmem>>, vector<1x10x10x32xbf16>
      tpu.vector_store %arg7[%c0_22, %c0_23, %c0_24, %c0_25], %60 {strides = array<i32>} : memref<1x10x10x32xbf16, #tpu.memory_space<vmem>>, vector<1x10x10x32xbf16>,
    } else {
    }
    %c4_i32 = arith.constant 4 : i32
    %54 = arith.muli %arg1, %c4_i32 : i32
    %c1_i32 = arith.constant 1 : i32
    %55 = arith.addi %54, %c1_i32 : i32
    %c0_18 = arith.constant 0 : index
    %56 = arith.index_cast %55 : i32 to index
    %c0_19 = arith.constant 0 : index
    %c0_20 = arith.constant 0 : index
    %57 = vector.load %arg7[%c0_18, %56, %c0_19, %c0_20] : memref<1x10x10x32xbf16, #tpu.memory_space<vmem>>, vector<1x4x10x32xbf16>
    %58 = vector.shape_cast %57 : vector<1x4x10x32xbf16> to vector<4x10x32xbf16>
    %59 = vector.shape_cast %50 : vector<4x10x32xbf16> to vector<1x4x10x32xbf16>
    tpu.vector_store %arg7[%c0_18, %56, %c0_19, %c0_20], %59 {strides = array<i32>} : memref<1x10x10x32xbf16, #tpu.memory_space<vmem>>, vector<1x4x10x32xbf16>,
    return
  }
  func.func @transform_0(%arg0: i32, %arg1: i32) -> (i32, i32, i32) {
    %c2_i32 = arith.constant 2 : i32
    %0 = arith.muli %arg0, %c2_i32 : i32
    %1 = arith.addi %0, %arg1 : i32
    %c0_i32 = arith.constant 0 : i32
    %c0_i32_0 = arith.constant 0 : i32
    %c0_i32_1 = arith.constant 0 : i32
    return %1, %c0_i32, %c0_i32_0 : i32, i32, i32
  }
  func.func @transform_1(%arg0: i32, %arg1: i32) -> (i32, i32) {
    %c0_i32 = arith.constant 0 : i32
    %c0_i32_0 = arith.constant 0 : i32
    %c0_i32_1 = arith.constant 0 : i32
    return %c0_i32, %c0_i32_0 : i32, i32
  }
  func.func @transform_2(%arg0: i32, %arg1: i32) -> (i32, i32) {
    %c0_i32 = arith.constant 0 : i32
    %c0_i32_0 = arith.constant 0 : i32
    %c0_i32_1 = arith.constant 0 : i32
    return %c0_i32, %c0_i32_0 : i32, i32
  }
  func.func @transform_3(%arg0: i32, %arg1: i32) -> (i32, i32) {
    %c0_i32 = arith.constant 0 : i32
    %c0_i32_0 = arith.constant 0 : i32
    %c0_i32_1 = arith.constant 0 : i32
    return %c0_i32, %c0_i32_0 : i32, i32
  }
  func.func @transform_4(%arg0: i32, %arg1: i32) -> (i32, i32) {
    %c0_i32 = arith.constant 0 : i32
    %c0_i32_0 = arith.constant 0 : i32
    %c0_i32_1 = arith.constant 0 : i32
    return %c0_i32, %c0_i32_0 : i32, i32
  }
  func.func @transform_5(%arg0: i32, %arg1: i32) -> (i32, i32, i32, i32) {
    %c0_i32 = arith.constant 0 : i32
    %c0_i32_0 = arith.constant 0 : i32
    %c0_i32_1 = arith.constant 0 : i32
    %c0_i32_2 = arith.constant 0 : i32
    return %arg0, %c0_i32, %c0_i32_0, %c0_i32_1 : i32, i32, i32, i32
  }
}

module attributes {stable_mosaic.version = 11 : i64} {
  func.func @_conv3x3_stats_kernel(%arg0: i32, %arg1: i32, %arg2: memref<1x10x10x32xbf16, #tpu.memory_space<vmem>>, %arg3: memref<3x3x32x64xbf16, #tpu.memory_space<vmem>>, %arg4: memref<1x32x64xbf16, #tpu.memory_space<vmem>>, %arg5: memref<1x1x64xf32, #tpu.memory_space<vmem>>, %arg6: memref<1x1x64xf32, #tpu.memory_space<vmem>>) attributes {dimension_semantics = [#tpu.dimension_semantics<parallel>, #tpu.dimension_semantics<parallel>], iteration_bounds = array<i64: 2, 2>, scalar_prefetch = 0 : i64, scratch_operands = 0 : i64, tpu.core_type = #tpu.core_type<tc>, window_params = [{transform_indices = @transform_0, window_bounds = array<i64: 1, 10, 10, 32>}, {pipeline_mode = #tpu.pipeline_mode<synchronous>, transform_indices = @transform_1, window_bounds = array<i64: 3, 3, 32, 64>}, {transform_indices = @transform_2, window_bounds = array<i64: 1, 32, 64>}, {transform_indices = @transform_3, window_bounds = array<i64: 1, 1, 64>}, {transform_indices = @transform_4, window_bounds = array<i64: 1, 1, 64>}]} {
    %c4_i32 = arith.constant 4 : i32
    %0 = arith.muli %arg1, %c4_i32 : i32
    %c0 = arith.constant 0 : index
    %1 = arith.index_cast %0 : i32 to index
    %c0_0 = arith.constant 0 : index
    %c0_1 = arith.constant 0 : index
    %2 = vector.load %arg2[%c0, %1, %c0_0, %c0_1] : memref<1x10x10x32xbf16, #tpu.memory_space<vmem>>, vector<1x6x8x32xbf16>
    %3 = vector.shape_cast %2 : vector<1x6x8x32xbf16> to vector<6x8x32xbf16>
    %4 = vector.shape_cast %3 : vector<6x8x32xbf16> to vector<48x32xbf16>
    %5 = vector.extract_strided_slice %4 {offsets = [0, 0], sizes = [32, 32], strides = [1, 1]} : vector<48x32xbf16> to vector<32x32xbf16>
    %c0_2 = arith.constant 0 : index
    %c0_3 = arith.constant 0 : index
    %c0_4 = arith.constant 0 : index
    %c0_5 = arith.constant 0 : index
    %6 = vector.load %arg3[%c0_2, %c0_3, %c0_4, %c0_5] : memref<3x3x32x64xbf16, #tpu.memory_space<vmem>>, vector<1x1x32x64xbf16>
    %7 = vector.shape_cast %6 : vector<1x1x32x64xbf16> to vector<32x64xbf16>
    %cst = arith.constant dense<0.000000e+00> : vector<32x64xf32>
    %8 = tpu.matmul %5, %7, %cst {dimension_numbers = #tpu.dot_dimension_numbers<[1], [0], [0], [1], [0, 0, 1, 1], [], []>} : vector<32x32xbf16>, vector<32x64xbf16>, vector<32x64xf32> -> vector<32x64xf32>
    %9 = vector.extract_strided_slice %4 {offsets = [8, 0], sizes = [32, 32], strides = [1, 1]} : vector<48x32xbf16> to vector<32x32xbf16>
    %c1 = arith.constant 1 : index
    %c0_6 = arith.constant 0 : index
    %c0_7 = arith.constant 0 : index
    %c0_8 = arith.constant 0 : index
    %10 = vector.load %arg3[%c1, %c0_6, %c0_7, %c0_8] : memref<3x3x32x64xbf16, #tpu.memory_space<vmem>>, vector<1x1x32x64xbf16>
    %11 = vector.shape_cast %10 : vector<1x1x32x64xbf16> to vector<32x64xbf16>
    %cst_9 = arith.constant dense<0.000000e+00> : vector<32x64xf32>
    %12 = tpu.matmul %9, %11, %cst_9 {dimension_numbers = #tpu.dot_dimension_numbers<[1], [0], [0], [1], [0, 0, 1, 1], [], []>} : vector<32x32xbf16>, vector<32x64xbf16>, vector<32x64xf32> -> vector<32x64xf32>
    %13 = arith.addf %8, %12 : vector<32x64xf32>
    %14 = vector.extract_strided_slice %4 {offsets = [16, 0], sizes = [32, 32], strides = [1, 1]} : vector<48x32xbf16> to vector<32x32xbf16>
    %c2 = arith.constant 2 : index
    %c0_10 = arith.constant 0 : index
    %c0_11 = arith.constant 0 : index
    %c0_12 = arith.constant 0 : index
    %15 = vector.load %arg3[%c2, %c0_10, %c0_11, %c0_12] : memref<3x3x32x64xbf16, #tpu.memory_space<vmem>>, vector<1x1x32x64xbf16>
    %16 = vector.shape_cast %15 : vector<1x1x32x64xbf16> to vector<32x64xbf16>
    %cst_13 = arith.constant dense<0.000000e+00> : vector<32x64xf32>
    %17 = tpu.matmul %14, %16, %cst_13 {dimension_numbers = #tpu.dot_dimension_numbers<[1], [0], [0], [1], [0, 0, 1, 1], [], []>} : vector<32x32xbf16>, vector<32x64xbf16>, vector<32x64xf32> -> vector<32x64xf32>
    %18 = arith.addf %13, %17 : vector<32x64xf32>
    %c0_14 = arith.constant 0 : index
    %19 = arith.index_cast %0 : i32 to index
    %c1_15 = arith.constant 1 : index
    %c0_16 = arith.constant 0 : index
    %20 = vector.load %arg2[%c0_14, %19, %c1_15, %c0_16] : memref<1x10x10x32xbf16, #tpu.memory_space<vmem>>, vector<1x6x8x32xbf16>
    %21 = vector.shape_cast %20 : vector<1x6x8x32xbf16> to vector<6x8x32xbf16>
    %22 = vector.shape_cast %21 : vector<6x8x32xbf16> to vector<48x32xbf16>
    %23 = vector.extract_strided_slice %22 {offsets = [0, 0], sizes = [32, 32], strides = [1, 1]} : vector<48x32xbf16> to vector<32x32xbf16>
    %c0_17 = arith.constant 0 : index
    %c1_18 = arith.constant 1 : index
    %c0_19 = arith.constant 0 : index
    %c0_20 = arith.constant 0 : index
    %24 = vector.load %arg3[%c0_17, %c1_18, %c0_19, %c0_20] : memref<3x3x32x64xbf16, #tpu.memory_space<vmem>>, vector<1x1x32x64xbf16>
    %25 = vector.shape_cast %24 : vector<1x1x32x64xbf16> to vector<32x64xbf16>
    %cst_21 = arith.constant dense<0.000000e+00> : vector<32x64xf32>
    %26 = tpu.matmul %23, %25, %cst_21 {dimension_numbers = #tpu.dot_dimension_numbers<[1], [0], [0], [1], [0, 0, 1, 1], [], []>} : vector<32x32xbf16>, vector<32x64xbf16>, vector<32x64xf32> -> vector<32x64xf32>
    %27 = arith.addf %18, %26 : vector<32x64xf32>
    %28 = vector.extract_strided_slice %22 {offsets = [8, 0], sizes = [32, 32], strides = [1, 1]} : vector<48x32xbf16> to vector<32x32xbf16>
    %c1_22 = arith.constant 1 : index
    %c1_23 = arith.constant 1 : index
    %c0_24 = arith.constant 0 : index
    %c0_25 = arith.constant 0 : index
    %29 = vector.load %arg3[%c1_22, %c1_23, %c0_24, %c0_25] : memref<3x3x32x64xbf16, #tpu.memory_space<vmem>>, vector<1x1x32x64xbf16>
    %30 = vector.shape_cast %29 : vector<1x1x32x64xbf16> to vector<32x64xbf16>
    %cst_26 = arith.constant dense<0.000000e+00> : vector<32x64xf32>
    %31 = tpu.matmul %28, %30, %cst_26 {dimension_numbers = #tpu.dot_dimension_numbers<[1], [0], [0], [1], [0, 0, 1, 1], [], []>} : vector<32x32xbf16>, vector<32x64xbf16>, vector<32x64xf32> -> vector<32x64xf32>
    %32 = arith.addf %27, %31 : vector<32x64xf32>
    %33 = vector.extract_strided_slice %22 {offsets = [16, 0], sizes = [32, 32], strides = [1, 1]} : vector<48x32xbf16> to vector<32x32xbf16>
    %c2_27 = arith.constant 2 : index
    %c1_28 = arith.constant 1 : index
    %c0_29 = arith.constant 0 : index
    %c0_30 = arith.constant 0 : index
    %34 = vector.load %arg3[%c2_27, %c1_28, %c0_29, %c0_30] : memref<3x3x32x64xbf16, #tpu.memory_space<vmem>>, vector<1x1x32x64xbf16>
    %35 = vector.shape_cast %34 : vector<1x1x32x64xbf16> to vector<32x64xbf16>
    %cst_31 = arith.constant dense<0.000000e+00> : vector<32x64xf32>
    %36 = tpu.matmul %33, %35, %cst_31 {dimension_numbers = #tpu.dot_dimension_numbers<[1], [0], [0], [1], [0, 0, 1, 1], [], []>} : vector<32x32xbf16>, vector<32x64xbf16>, vector<32x64xf32> -> vector<32x64xf32>
    %37 = arith.addf %32, %36 : vector<32x64xf32>
    %c0_32 = arith.constant 0 : index
    %38 = arith.index_cast %0 : i32 to index
    %c2_33 = arith.constant 2 : index
    %c0_34 = arith.constant 0 : index
    %39 = vector.load %arg2[%c0_32, %38, %c2_33, %c0_34] : memref<1x10x10x32xbf16, #tpu.memory_space<vmem>>, vector<1x6x8x32xbf16>
    %40 = vector.shape_cast %39 : vector<1x6x8x32xbf16> to vector<6x8x32xbf16>
    %41 = vector.shape_cast %40 : vector<6x8x32xbf16> to vector<48x32xbf16>
    %42 = vector.extract_strided_slice %41 {offsets = [0, 0], sizes = [32, 32], strides = [1, 1]} : vector<48x32xbf16> to vector<32x32xbf16>
    %c0_35 = arith.constant 0 : index
    %c2_36 = arith.constant 2 : index
    %c0_37 = arith.constant 0 : index
    %c0_38 = arith.constant 0 : index
    %43 = vector.load %arg3[%c0_35, %c2_36, %c0_37, %c0_38] : memref<3x3x32x64xbf16, #tpu.memory_space<vmem>>, vector<1x1x32x64xbf16>
    %44 = vector.shape_cast %43 : vector<1x1x32x64xbf16> to vector<32x64xbf16>
    %cst_39 = arith.constant dense<0.000000e+00> : vector<32x64xf32>
    %45 = tpu.matmul %42, %44, %cst_39 {dimension_numbers = #tpu.dot_dimension_numbers<[1], [0], [0], [1], [0, 0, 1, 1], [], []>} : vector<32x32xbf16>, vector<32x64xbf16>, vector<32x64xf32> -> vector<32x64xf32>
    %46 = arith.addf %37, %45 : vector<32x64xf32>
    %47 = vector.extract_strided_slice %41 {offsets = [8, 0], sizes = [32, 32], strides = [1, 1]} : vector<48x32xbf16> to vector<32x32xbf16>
    %c1_40 = arith.constant 1 : index
    %c2_41 = arith.constant 2 : index
    %c0_42 = arith.constant 0 : index
    %c0_43 = arith.constant 0 : index
    %48 = vector.load %arg3[%c1_40, %c2_41, %c0_42, %c0_43] : memref<3x3x32x64xbf16, #tpu.memory_space<vmem>>, vector<1x1x32x64xbf16>
    %49 = vector.shape_cast %48 : vector<1x1x32x64xbf16> to vector<32x64xbf16>
    %cst_44 = arith.constant dense<0.000000e+00> : vector<32x64xf32>
    %50 = tpu.matmul %47, %49, %cst_44 {dimension_numbers = #tpu.dot_dimension_numbers<[1], [0], [0], [1], [0, 0, 1, 1], [], []>} : vector<32x32xbf16>, vector<32x64xbf16>, vector<32x64xf32> -> vector<32x64xf32>
    %51 = arith.addf %46, %50 : vector<32x64xf32>
    %52 = vector.extract_strided_slice %41 {offsets = [16, 0], sizes = [32, 32], strides = [1, 1]} : vector<48x32xbf16> to vector<32x32xbf16>
    %c2_45 = arith.constant 2 : index
    %c2_46 = arith.constant 2 : index
    %c0_47 = arith.constant 0 : index
    %c0_48 = arith.constant 0 : index
    %53 = vector.load %arg3[%c2_45, %c2_46, %c0_47, %c0_48] : memref<3x3x32x64xbf16, #tpu.memory_space<vmem>>, vector<1x1x32x64xbf16>
    %54 = vector.shape_cast %53 : vector<1x1x32x64xbf16> to vector<32x64xbf16>
    %cst_49 = arith.constant dense<0.000000e+00> : vector<32x64xf32>
    %55 = tpu.matmul %52, %54, %cst_49 {dimension_numbers = #tpu.dot_dimension_numbers<[1], [0], [0], [1], [0, 0, 1, 1], [], []>} : vector<32x32xbf16>, vector<32x64xbf16>, vector<32x64xf32> -> vector<32x64xf32>
    %56 = arith.addf %51, %55 : vector<32x64xf32>
    %57 = arith.truncf %56 : vector<32x64xf32> to vector<32x64xbf16>
    %c0_50 = arith.constant 0 : index
    %c0_51 = arith.constant 0 : index
    %c0_52 = arith.constant 0 : index
    %58 = vector.load %arg4[%c0_50, %c0_51, %c0_52] : memref<1x32x64xbf16, #tpu.memory_space<vmem>>, vector<1x32x64xbf16>
    %59 = vector.shape_cast %58 : vector<1x32x64xbf16> to vector<32x64xbf16>
    %60 = vector.shape_cast %57 : vector<32x64xbf16> to vector<1x32x64xbf16>
    tpu.vector_store %arg4[%c0_50, %c0_51, %c0_52], %60 {strides = array<i32>} : memref<1x32x64xbf16, #tpu.memory_space<vmem>>, vector<1x32x64xbf16>,
    %cst_53 = arith.constant dense<0.000000e+00> : vector<64xf32>
    %61 = vector.multi_reduction <add>, %56, %cst_53 [0] : vector<32x64xf32> to vector<64xf32>
    %62 = vector.shape_cast %61 : vector<64xf32> to vector<1x64xf32>
    %c0_54 = arith.constant 0 : index
    %c0_55 = arith.constant 0 : index
    %c0_56 = arith.constant 0 : index
    %63 = vector.load %arg5[%c0_54, %c0_55, %c0_56] : memref<1x1x64xf32, #tpu.memory_space<vmem>>, vector<1x1x64xf32>
    %64 = vector.shape_cast %63 : vector<1x1x64xf32> to vector<1x64xf32>
    %65 = vector.shape_cast %62 : vector<1x64xf32> to vector<1x1x64xf32>
    tpu.vector_store %arg5[%c0_54, %c0_55, %c0_56], %65 {strides = array<i32>} : memref<1x1x64xf32, #tpu.memory_space<vmem>>, vector<1x1x64xf32>,
    %66 = arith.mulf %56, %56 : vector<32x64xf32>
    %cst_57 = arith.constant dense<0.000000e+00> : vector<64xf32>
    %67 = vector.multi_reduction <add>, %66, %cst_57 [0] : vector<32x64xf32> to vector<64xf32>
    %68 = vector.shape_cast %67 : vector<64xf32> to vector<1x64xf32>
    %c0_58 = arith.constant 0 : index
    %c0_59 = arith.constant 0 : index
    %c0_60 = arith.constant 0 : index
    %69 = vector.load %arg6[%c0_58, %c0_59, %c0_60] : memref<1x1x64xf32, #tpu.memory_space<vmem>>, vector<1x1x64xf32>
    %70 = vector.shape_cast %69 : vector<1x1x64xf32> to vector<1x64xf32>
    %71 = vector.shape_cast %68 : vector<1x64xf32> to vector<1x1x64xf32>
    tpu.vector_store %arg6[%c0_58, %c0_59, %c0_60], %71 {strides = array<i32>} : memref<1x1x64xf32, #tpu.memory_space<vmem>>, vector<1x1x64xf32>,
    return
  }
  func.func @transform_0(%arg0: i32, %arg1: i32) -> (i32, i32, i32, i32) {
    %c0_i32 = arith.constant 0 : i32
    %c0_i32_0 = arith.constant 0 : i32
    %c0_i32_1 = arith.constant 0 : i32
    %c0_i32_2 = arith.constant 0 : i32
    return %arg0, %c0_i32, %c0_i32_0, %c0_i32_1 : i32, i32, i32, i32
  }
  func.func @transform_1(%arg0: i32, %arg1: i32) -> (i32, i32, i32, i32) {
    %c0_i32 = arith.constant 0 : i32
    %c0_i32_0 = arith.constant 0 : i32
    %c0_i32_1 = arith.constant 0 : i32
    %c0_i32_2 = arith.constant 0 : i32
    %c0_i32_3 = arith.constant 0 : i32
    return %c0_i32, %c0_i32_0, %c0_i32_1, %c0_i32_2 : i32, i32, i32, i32
  }
  func.func @transform_2(%arg0: i32, %arg1: i32) -> (i32, i32, i32) {
    %c2_i32 = arith.constant 2 : i32
    %0 = arith.muli %arg0, %c2_i32 : i32
    %1 = arith.addi %0, %arg1 : i32
    %c0_i32 = arith.constant 0 : i32
    %c0_i32_0 = arith.constant 0 : i32
    %c0_i32_1 = arith.constant 0 : i32
    return %1, %c0_i32, %c0_i32_0 : i32, i32, i32
  }
  func.func @transform_3(%arg0: i32, %arg1: i32) -> (i32, i32, i32) {
    %c2_i32 = arith.constant 2 : i32
    %0 = arith.muli %arg0, %c2_i32 : i32
    %1 = arith.addi %0, %arg1 : i32
    %c0_i32 = arith.constant 0 : i32
    %c0_i32_0 = arith.constant 0 : i32
    %c0_i32_1 = arith.constant 0 : i32
    return %1, %c0_i32, %c0_i32_0 : i32, i32, i32
  }
  func.func @transform_4(%arg0: i32, %arg1: i32) -> (i32, i32, i32) {
    %c2_i32 = arith.constant 2 : i32
    %0 = arith.muli %arg0, %c2_i32 : i32
    %1 = arith.addi %0, %arg1 : i32
    %c0_i32 = arith.constant 0 : i32
    %c0_i32_0 = arith.constant 0 : i32
    %c0_i32_1 = arith.constant 0 : i32
    return %1, %c0_i32, %c0_i32_0 : i32, i32, i32
  }
}

module attributes {stable_mosaic.version = 11 : i64} {
  func.func @_bn_mish_pool_pad_kernel(%arg0: i32, %arg1: i32, %arg2: memref<1x32x64xbf16, #tpu.memory_space<vmem>>, %arg3: memref<1x64xf32, #tpu.memory_space<vmem>>, %arg4: memref<1x64xf32, #tpu.memory_space<vmem>>, %arg5: memref<1x64xf32, #tpu.memory_space<vmem>>, %arg6: memref<1x64xf32, #tpu.memory_space<vmem>>, %arg7: memref<1x6x6x64xbf16, #tpu.memory_space<vmem>>) attributes {dimension_semantics = [#tpu.dimension_semantics<parallel>, #tpu.dimension_semantics<arbitrary>], iteration_bounds = array<i64: 2, 2>, scalar_prefetch = 0 : i64, scratch_operands = 0 : i64, tpu.core_type = #tpu.core_type<tc>, window_params = [{transform_indices = @transform_0, window_bounds = array<i64: 1, 32, 64>}, {pipeline_mode = #tpu.pipeline_mode<synchronous>, transform_indices = @transform_1, window_bounds = array<i64: 1, 64>}, {pipeline_mode = #tpu.pipeline_mode<synchronous>, transform_indices = @transform_2, window_bounds = array<i64: 1, 64>}, {pipeline_mode = #tpu.pipeline_mode<synchronous>, transform_indices = @transform_3, window_bounds = array<i64: 1, 64>}, {pipeline_mode = #tpu.pipeline_mode<synchronous>, transform_indices = @transform_4, window_bounds = array<i64: 1, 64>}, {transform_indices = @transform_5, window_bounds = array<i64: 1, 6, 6, 64>}]} {
    %c0 = arith.constant 0 : index
    %c0_0 = arith.constant 0 : index
    %0 = vector.load %arg3[%c0, %c0_0] : memref<1x64xf32, #tpu.memory_space<vmem>>, vector<1x64xf32>
    %cst = arith.constant 7.812500e-03 : f32
    %1 = vector.broadcast %cst : f32 to vector<1x64xf32>
    %2 = arith.mulf %0, %1 : vector<1x64xf32>
    %c0_1 = arith.constant 0 : index
    %c0_2 = arith.constant 0 : index
    %3 = vector.load %arg4[%c0_1, %c0_2] : memref<1x64xf32, #tpu.memory_space<vmem>>, vector<1x64xf32>
    %cst_3 = arith.constant 7.812500e-03 : f32
    %4 = vector.broadcast %cst_3 : f32 to vector<1x64xf32>
    %5 = arith.mulf %3, %4 : vector<1x64xf32>
    %6 = arith.mulf %2, %2 : vector<1x64xf32>
    %7 = arith.subf %5, %6 : vector<1x64xf32>
    %cst_4 = arith.constant 0.000000e+00 : f32
    %8 = vector.broadcast %cst_4 : f32 to vector<1x64xf32>
    %9 = arith.maximumf %7, %8 : vector<1x64xf32>
    %c0_5 = arith.constant 0 : index
    %c0_6 = arith.constant 0 : index
    %10 = vector.load %arg5[%c0_5, %c0_6] : memref<1x64xf32, #tpu.memory_space<vmem>>, vector<1x64xf32>
    %cst_7 = arith.constant 9.99999974E-6 : f32
    %11 = vector.broadcast %cst_7 : f32 to vector<1x64xf32>
    %12 = arith.addf %9, %11 : vector<1x64xf32>
    %13 = math.rsqrt %12 : vector<1x64xf32>
    %14 = arith.mulf %10, %13 : vector<1x64xf32>
    %c0_8 = arith.constant 0 : index
    %c0_9 = arith.constant 0 : index
    %15 = vector.load %arg6[%c0_8, %c0_9] : memref<1x64xf32, #tpu.memory_space<vmem>>, vector<1x64xf32>
    %16 = arith.mulf %2, %14 : vector<1x64xf32>
    %17 = arith.subf %15, %16 : vector<1x64xf32>
    %c0_10 = arith.constant 0 : index
    %c0_11 = arith.constant 0 : index
    %c0_12 = arith.constant 0 : index
    %18 = vector.load %arg2[%c0_10, %c0_11, %c0_12] : memref<1x32x64xbf16, #tpu.memory_space<vmem>>, vector<1x32x64xbf16>
    %19 = vector.shape_cast %18 : vector<1x32x64xbf16> to vector<32x64xbf16>
    %20 = arith.extf %19 : vector<32x64xbf16> to vector<32x64xf32>
    %21 = vector.broadcast %14 : vector<1x64xf32> to vector<32x64xf32>
    %22 = arith.mulf %20, %21 : vector<32x64xf32>
    %23 = vector.broadcast %17 : vector<1x64xf32> to vector<32x64xf32>
    %24 = arith.addf %22, %23 : vector<32x64xf32>
    %cst_13 = arith.constant 3.000000e+01 : f32
    %25 = vector.broadcast %cst_13 : f32 to vector<32x64xf32>
    %26 = arith.minimumf %24, %25 : vector<32x64xf32>
    %27 = math.exp %26 : vector<32x64xf32>
    %cst_14 = arith.constant 2.000000e+00 : f32
    %28 = vector.broadcast %cst_14 : f32 to vector<32x64xf32>
    %29 = arith.addf %27, %28 : vector<32x64xf32>
    %30 = arith.mulf %27, %29 : vector<32x64xf32>
    %cst_15 = arith.constant 2.000000e+00 : f32
    %31 = vector.broadcast %cst_15 : f32 to vector<32x64xf32>
    %32 = arith.addf %30, %31 : vector<32x64xf32>
    %33 = tpu.reciprocal %32 {approx = true} : vector<32x64xf32> -> vector<32x64xf32>
    %34 = arith.mulf %30, %33 : vector<32x64xf32>
    %35 = arith.mulf %24, %34 : vector<32x64xf32>
    %36 = vector.shape_cast %35 : vector<32x64xf32> to vector<16x2x64xf32>
    %37 = vector.extract_strided_slice %36 {offsets = [0, 0, 0], sizes = [16, 1, 64], strides = [1, 1, 1]} : vector<16x2x64xf32> to vector<16x1x64xf32>
    %38 = vector.shape_cast %37 : vector<16x1x64xf32> to vector<16x64xf32>
    %39 = vector.extract_strided_slice %36 {offsets = [0, 1, 0], sizes = [16, 1, 64], strides = [1, 1, 1]} : vector<16x2x64xf32> to vector<16x1x64xf32>
    %40 = vector.shape_cast %39 : vector<16x1x64xf32> to vector<16x64xf32>
    %41 = arith.maximumf %38, %40 : vector<16x64xf32>
    %42 = vector.shape_cast %41 : vector<16x64xf32> to vector<2x2x4x64xf32>
    %43 = vector.extract_strided_slice %42 {offsets = [0, 0, 0, 0], sizes = [2, 1, 4, 64], strides = [1, 1, 1, 1]} : vector<2x2x4x64xf32> to vector<2x1x4x64xf32>
    %44 = vector.shape_cast %43 : vector<2x1x4x64xf32> to vector<2x4x64xf32>
    %45 = vector.extract_strided_slice %42 {offsets = [0, 1, 0, 0], sizes = [2, 1, 4, 64], strides = [1, 1, 1, 1]} : vector<2x2x4x64xf32> to vector<2x1x4x64xf32>
    %46 = vector.shape_cast %45 : vector<2x1x4x64xf32> to vector<2x4x64xf32>
    %47 = arith.maximumf %44, %46 : vector<2x4x64xf32>
    %cst_16 = arith.constant 0.000000e+00 : f32
    %48 = vector.broadcast %cst_16 : f32 to vector<2x1x64xf32>
    %49 = tpu.concatenate %48, %47, %48 in 1 : vector<2x1x64xf32>, vector<2x4x64xf32>, vector<2x1x64xf32> -> vector<2x6x64xf32>
    %50 = arith.truncf %49 : vector<2x6x64xf32> to vector<2x6x64xbf16>
    %c0_i32 = arith.constant 0 : i32
    %51 = arith.cmpi eq, %arg1, %c0_i32 : i32
    %52 = arith.extui %51 : i1 to i32
    %c0_i32_17 = arith.constant 0 : i32
    %53 = arith.cmpi ne, %52, %c0_i32_17 : i32
    scf.if %53 {
      %cst_21 = arith.constant 0.000000e+00 : bf16
      %60 = vector.broadcast %cst_21 : bf16 to vector<1x6x6x64xbf16>
      %c0_22 = arith.constant 0 : index
      %c0_23 = arith.constant 0 : index
      %c0_24 = arith.constant 0 : index
      %c0_25 = arith.constant 0 : index
      %61 = vector.load %arg7[%c0_22, %c0_23, %c0_24, %c0_25] : memref<1x6x6x64xbf16, #tpu.memory_space<vmem>>, vector<1x6x6x64xbf16>
      tpu.vector_store %arg7[%c0_22, %c0_23, %c0_24, %c0_25], %60 {strides = array<i32>} : memref<1x6x6x64xbf16, #tpu.memory_space<vmem>>, vector<1x6x6x64xbf16>,
    } else {
    }
    %c2_i32 = arith.constant 2 : i32
    %54 = arith.muli %arg1, %c2_i32 : i32
    %c1_i32 = arith.constant 1 : i32
    %55 = arith.addi %54, %c1_i32 : i32
    %c0_18 = arith.constant 0 : index
    %56 = arith.index_cast %55 : i32 to index
    %c0_19 = arith.constant 0 : index
    %c0_20 = arith.constant 0 : index
    %57 = vector.load %arg7[%c0_18, %56, %c0_19, %c0_20] : memref<1x6x6x64xbf16, #tpu.memory_space<vmem>>, vector<1x2x6x64xbf16>
    %58 = vector.shape_cast %57 : vector<1x2x6x64xbf16> to vector<2x6x64xbf16>
    %59 = vector.shape_cast %50 : vector<2x6x64xbf16> to vector<1x2x6x64xbf16>
    tpu.vector_store %arg7[%c0_18, %56, %c0_19, %c0_20], %59 {strides = array<i32>} : memref<1x6x6x64xbf16, #tpu.memory_space<vmem>>, vector<1x2x6x64xbf16>,
    return
  }
  func.func @transform_0(%arg0: i32, %arg1: i32) -> (i32, i32, i32) {
    %c2_i32 = arith.constant 2 : i32
    %0 = arith.muli %arg0, %c2_i32 : i32
    %1 = arith.addi %0, %arg1 : i32
    %c0_i32 = arith.constant 0 : i32
    %c0_i32_0 = arith.constant 0 : i32
    %c0_i32_1 = arith.constant 0 : i32
    return %1, %c0_i32, %c0_i32_0 : i32, i32, i32
  }
  func.func @transform_1(%arg0: i32, %arg1: i32) -> (i32, i32) {
    %c0_i32 = arith.constant 0 : i32
    %c0_i32_0 = arith.constant 0 : i32
    %c0_i32_1 = arith.constant 0 : i32
    return %c0_i32, %c0_i32_0 : i32, i32
  }
  func.func @transform_2(%arg0: i32, %arg1: i32) -> (i32, i32) {
    %c0_i32 = arith.constant 0 : i32
    %c0_i32_0 = arith.constant 0 : i32
    %c0_i32_1 = arith.constant 0 : i32
    return %c0_i32, %c0_i32_0 : i32, i32
  }
  func.func @transform_3(%arg0: i32, %arg1: i32) -> (i32, i32) {
    %c0_i32 = arith.constant 0 : i32
    %c0_i32_0 = arith.constant 0 : i32
    %c0_i32_1 = arith.constant 0 : i32
    return %c0_i32, %c0_i32_0 : i32, i32
  }
  func.func @transform_4(%arg0: i32, %arg1: i32) -> (i32, i32) {
    %c0_i32 = arith.constant 0 : i32
    %c0_i32_0 = arith.constant 0 : i32
    %c0_i32_1 = arith.constant 0 : i32
    return %c0_i32, %c0_i32_0 : i32, i32
  }
  func.func @transform_5(%arg0: i32, %arg1: i32) -> (i32, i32, i32, i32) {
    %c0_i32 = arith.constant 0 : i32
    %c0_i32_0 = arith.constant 0 : i32
    %c0_i32_1 = arith.constant 0 : i32
    %c0_i32_2 = arith.constant 0 : i32
    return %arg0, %c0_i32, %c0_i32_0, %c0_i32_1 : i32, i32, i32, i32
  }
}

module attributes {stable_mosaic.version = 11 : i64} {
  func.func @_conv3x3_stats_kernel(%arg0: i32, %arg1: i32, %arg2: memref<1x6x6x64xbf16, #tpu.memory_space<vmem>>, %arg3: memref<3x3x64x128xbf16, #tpu.memory_space<vmem>>, %arg4: memref<1x16x128xbf16, #tpu.memory_space<vmem>>, %arg5: memref<1x1x128xf32, #tpu.memory_space<vmem>>, %arg6: memref<1x1x128xf32, #tpu.memory_space<vmem>>) attributes {dimension_semantics = [#tpu.dimension_semantics<parallel>, #tpu.dimension_semantics<parallel>], iteration_bounds = array<i64: 2, 1>, scalar_prefetch = 0 : i64, scratch_operands = 0 : i64, tpu.core_type = #tpu.core_type<tc>, window_params = [{transform_indices = @transform_0, window_bounds = array<i64: 1, 6, 6, 64>}, {pipeline_mode = #tpu.pipeline_mode<synchronous>, transform_indices = @transform_1, window_bounds = array<i64: 3, 3, 64, 128>}, {transform_indices = @transform_2, window_bounds = array<i64: 1, 16, 128>}, {transform_indices = @transform_3, window_bounds = array<i64: 1, 1, 128>}, {transform_indices = @transform_4, window_bounds = array<i64: 1, 1, 128>}]} {
    %c4_i32 = arith.constant 4 : i32
    %0 = arith.muli %arg1, %c4_i32 : i32
    %c0 = arith.constant 0 : index
    %1 = arith.index_cast %0 : i32 to index
    %c0_0 = arith.constant 0 : index
    %c0_1 = arith.constant 0 : index
    %2 = vector.load %arg2[%c0, %1, %c0_0, %c0_1] : memref<1x6x6x64xbf16, #tpu.memory_space<vmem>>, vector<1x6x4x64xbf16>
    %3 = vector.shape_cast %2 : vector<1x6x4x64xbf16> to vector<6x4x64xbf16>
    %4 = vector.shape_cast %3 : vector<6x4x64xbf16> to vector<24x64xbf16>
    %5 = vector.extract_strided_slice %4 {offsets = [0, 0], sizes = [16, 64], strides = [1, 1]} : vector<24x64xbf16> to vector<16x64xbf16>
    %c0_2 = arith.constant 0 : index
    %c0_3 = arith.constant 0 : index
    %c0_4 = arith.constant 0 : index
    %c0_5 = arith.constant 0 : index
    %6 = vector.load %arg3[%c0_2, %c0_3, %c0_4, %c0_5] : memref<3x3x64x128xbf16, #tpu.memory_space<vmem>>, vector<1x1x64x128xbf16>
    %7 = vector.shape_cast %6 : vector<1x1x64x128xbf16> to vector<64x128xbf16>
    %cst = arith.constant dense<0.000000e+00> : vector<16x128xf32>
    %8 = tpu.matmul %5, %7, %cst {dimension_numbers = #tpu.dot_dimension_numbers<[1], [0], [0], [1], [0, 0, 1, 1], [], []>} : vector<16x64xbf16>, vector<64x128xbf16>, vector<16x128xf32> -> vector<16x128xf32>
    %9 = vector.extract_strided_slice %4 {offsets = [4, 0], sizes = [16, 64], strides = [1, 1]} : vector<24x64xbf16> to vector<16x64xbf16>
    %c1 = arith.constant 1 : index
    %c0_6 = arith.constant 0 : index
    %c0_7 = arith.constant 0 : index
    %c0_8 = arith.constant 0 : index
    %10 = vector.load %arg3[%c1, %c0_6, %c0_7, %c0_8] : memref<3x3x64x128xbf16, #tpu.memory_space<vmem>>, vector<1x1x64x128xbf16>
    %11 = vector.shape_cast %10 : vector<1x1x64x128xbf16> to vector<64x128xbf16>
    %cst_9 = arith.constant dense<0.000000e+00> : vector<16x128xf32>
    %12 = tpu.matmul %9, %11, %cst_9 {dimension_numbers = #tpu.dot_dimension_numbers<[1], [0], [0], [1], [0, 0, 1, 1], [], []>} : vector<16x64xbf16>, vector<64x128xbf16>, vector<16x128xf32> -> vector<16x128xf32>
    %13 = arith.addf %8, %12 : vector<16x128xf32>
    %14 = vector.extract_strided_slice %4 {offsets = [8, 0], sizes = [16, 64], strides = [1, 1]} : vector<24x64xbf16> to vector<16x64xbf16>
    %c2 = arith.constant 2 : index
    %c0_10 = arith.constant 0 : index
    %c0_11 = arith.constant 0 : index
    %c0_12 = arith.constant 0 : index
    %15 = vector.load %arg3[%c2, %c0_10, %c0_11, %c0_12] : memref<3x3x64x128xbf16, #tpu.memory_space<vmem>>, vector<1x1x64x128xbf16>
    %16 = vector.shape_cast %15 : vector<1x1x64x128xbf16> to vector<64x128xbf16>
    %cst_13 = arith.constant dense<0.000000e+00> : vector<16x128xf32>
    %17 = tpu.matmul %14, %16, %cst_13 {dimension_numbers = #tpu.dot_dimension_numbers<[1], [0], [0], [1], [0, 0, 1, 1], [], []>} : vector<16x64xbf16>, vector<64x128xbf16>, vector<16x128xf32> -> vector<16x128xf32>
    %18 = arith.addf %13, %17 : vector<16x128xf32>
    %c0_14 = arith.constant 0 : index
    %19 = arith.index_cast %0 : i32 to index
    %c1_15 = arith.constant 1 : index
    %c0_16 = arith.constant 0 : index
    %20 = vector.load %arg2[%c0_14, %19, %c1_15, %c0_16] : memref<1x6x6x64xbf16, #tpu.memory_space<vmem>>, vector<1x6x4x64xbf16>
    %21 = vector.shape_cast %20 : vector<1x6x4x64xbf16> to vector<6x4x64xbf16>
    %22 = vector.shape_cast %21 : vector<6x4x64xbf16> to vector<24x64xbf16>
    %23 = vector.extract_strided_slice %22 {offsets = [0, 0], sizes = [16, 64], strides = [1, 1]} : vector<24x64xbf16> to vector<16x64xbf16>
    %c0_17 = arith.constant 0 : index
    %c1_18 = arith.constant 1 : index
    %c0_19 = arith.constant 0 : index
    %c0_20 = arith.constant 0 : index
    %24 = vector.load %arg3[%c0_17, %c1_18, %c0_19, %c0_20] : memref<3x3x64x128xbf16, #tpu.memory_space<vmem>>, vector<1x1x64x128xbf16>
    %25 = vector.shape_cast %24 : vector<1x1x64x128xbf16> to vector<64x128xbf16>
    %cst_21 = arith.constant dense<0.000000e+00> : vector<16x128xf32>
    %26 = tpu.matmul %23, %25, %cst_21 {dimension_numbers = #tpu.dot_dimension_numbers<[1], [0], [0], [1], [0, 0, 1, 1], [], []>} : vector<16x64xbf16>, vector<64x128xbf16>, vector<16x128xf32> -> vector<16x128xf32>
    %27 = arith.addf %18, %26 : vector<16x128xf32>
    %28 = vector.extract_strided_slice %22 {offsets = [4, 0], sizes = [16, 64], strides = [1, 1]} : vector<24x64xbf16> to vector<16x64xbf16>
    %c1_22 = arith.constant 1 : index
    %c1_23 = arith.constant 1 : index
    %c0_24 = arith.constant 0 : index
    %c0_25 = arith.constant 0 : index
    %29 = vector.load %arg3[%c1_22, %c1_23, %c0_24, %c0_25] : memref<3x3x64x128xbf16, #tpu.memory_space<vmem>>, vector<1x1x64x128xbf16>
    %30 = vector.shape_cast %29 : vector<1x1x64x128xbf16> to vector<64x128xbf16>
    %cst_26 = arith.constant dense<0.000000e+00> : vector<16x128xf32>
    %31 = tpu.matmul %28, %30, %cst_26 {dimension_numbers = #tpu.dot_dimension_numbers<[1], [0], [0], [1], [0, 0, 1, 1], [], []>} : vector<16x64xbf16>, vector<64x128xbf16>, vector<16x128xf32> -> vector<16x128xf32>
    %32 = arith.addf %27, %31 : vector<16x128xf32>
    %33 = vector.extract_strided_slice %22 {offsets = [8, 0], sizes = [16, 64], strides = [1, 1]} : vector<24x64xbf16> to vector<16x64xbf16>
    %c2_27 = arith.constant 2 : index
    %c1_28 = arith.constant 1 : index
    %c0_29 = arith.constant 0 : index
    %c0_30 = arith.constant 0 : index
    %34 = vector.load %arg3[%c2_27, %c1_28, %c0_29, %c0_30] : memref<3x3x64x128xbf16, #tpu.memory_space<vmem>>, vector<1x1x64x128xbf16>
    %35 = vector.shape_cast %34 : vector<1x1x64x128xbf16> to vector<64x128xbf16>
    %cst_31 = arith.constant dense<0.000000e+00> : vector<16x128xf32>
    %36 = tpu.matmul %33, %35, %cst_31 {dimension_numbers = #tpu.dot_dimension_numbers<[1], [0], [0], [1], [0, 0, 1, 1], [], []>} : vector<16x64xbf16>, vector<64x128xbf16>, vector<16x128xf32> -> vector<16x128xf32>
    %37 = arith.addf %32, %36 : vector<16x128xf32>
    %c0_32 = arith.constant 0 : index
    %38 = arith.index_cast %0 : i32 to index
    %c2_33 = arith.constant 2 : index
    %c0_34 = arith.constant 0 : index
    %39 = vector.load %arg2[%c0_32, %38, %c2_33, %c0_34] : memref<1x6x6x64xbf16, #tpu.memory_space<vmem>>, vector<1x6x4x64xbf16>
    %40 = vector.shape_cast %39 : vector<1x6x4x64xbf16> to vector<6x4x64xbf16>
    %41 = vector.shape_cast %40 : vector<6x4x64xbf16> to vector<24x64xbf16>
    %42 = vector.extract_strided_slice %41 {offsets = [0, 0], sizes = [16, 64], strides = [1, 1]} : vector<24x64xbf16> to vector<16x64xbf16>
    %c0_35 = arith.constant 0 : index
    %c2_36 = arith.constant 2 : index
    %c0_37 = arith.constant 0 : index
    %c0_38 = arith.constant 0 : index
    %43 = vector.load %arg3[%c0_35, %c2_36, %c0_37, %c0_38] : memref<3x3x64x128xbf16, #tpu.memory_space<vmem>>, vector<1x1x64x128xbf16>
    %44 = vector.shape_cast %43 : vector<1x1x64x128xbf16> to vector<64x128xbf16>
    %cst_39 = arith.constant dense<0.000000e+00> : vector<16x128xf32>
    %45 = tpu.matmul %42, %44, %cst_39 {dimension_numbers = #tpu.dot_dimension_numbers<[1], [0], [0], [1], [0, 0, 1, 1], [], []>} : vector<16x64xbf16>, vector<64x128xbf16>, vector<16x128xf32> -> vector<16x128xf32>
    %46 = arith.addf %37, %45 : vector<16x128xf32>
    %47 = vector.extract_strided_slice %41 {offsets = [4, 0], sizes = [16, 64], strides = [1, 1]} : vector<24x64xbf16> to vector<16x64xbf16>
    %c1_40 = arith.constant 1 : index
    %c2_41 = arith.constant 2 : index
    %c0_42 = arith.constant 0 : index
    %c0_43 = arith.constant 0 : index
    %48 = vector.load %arg3[%c1_40, %c2_41, %c0_42, %c0_43] : memref<3x3x64x128xbf16, #tpu.memory_space<vmem>>, vector<1x1x64x128xbf16>
    %49 = vector.shape_cast %48 : vector<1x1x64x128xbf16> to vector<64x128xbf16>
    %cst_44 = arith.constant dense<0.000000e+00> : vector<16x128xf32>
    %50 = tpu.matmul %47, %49, %cst_44 {dimension_numbers = #tpu.dot_dimension_numbers<[1], [0], [0], [1], [0, 0, 1, 1], [], []>} : vector<16x64xbf16>, vector<64x128xbf16>, vector<16x128xf32> -> vector<16x128xf32>
    %51 = arith.addf %46, %50 : vector<16x128xf32>
    %52 = vector.extract_strided_slice %41 {offsets = [8, 0], sizes = [16, 64], strides = [1, 1]} : vector<24x64xbf16> to vector<16x64xbf16>
    %c2_45 = arith.constant 2 : index
    %c2_46 = arith.constant 2 : index
    %c0_47 = arith.constant 0 : index
    %c0_48 = arith.constant 0 : index
    %53 = vector.load %arg3[%c2_45, %c2_46, %c0_47, %c0_48] : memref<3x3x64x128xbf16, #tpu.memory_space<vmem>>, vector<1x1x64x128xbf16>
    %54 = vector.shape_cast %53 : vector<1x1x64x128xbf16> to vector<64x128xbf16>
    %cst_49 = arith.constant dense<0.000000e+00> : vector<16x128xf32>
    %55 = tpu.matmul %52, %54, %cst_49 {dimension_numbers = #tpu.dot_dimension_numbers<[1], [0], [0], [1], [0, 0, 1, 1], [], []>} : vector<16x64xbf16>, vector<64x128xbf16>, vector<16x128xf32> -> vector<16x128xf32>
    %56 = arith.addf %51, %55 : vector<16x128xf32>
    %57 = arith.truncf %56 : vector<16x128xf32> to vector<16x128xbf16>
    %c0_50 = arith.constant 0 : index
    %c0_51 = arith.constant 0 : index
    %c0_52 = arith.constant 0 : index
    %58 = vector.load %arg4[%c0_50, %c0_51, %c0_52] : memref<1x16x128xbf16, #tpu.memory_space<vmem>>, vector<1x16x128xbf16>
    %59 = vector.shape_cast %58 : vector<1x16x128xbf16> to vector<16x128xbf16>
    %60 = vector.shape_cast %57 : vector<16x128xbf16> to vector<1x16x128xbf16>
    tpu.vector_store %arg4[%c0_50, %c0_51, %c0_52], %60 {strides = array<i32>} : memref<1x16x128xbf16, #tpu.memory_space<vmem>>, vector<1x16x128xbf16>,
    %cst_53 = arith.constant dense<0.000000e+00> : vector<128xf32>
    %61 = vector.multi_reduction <add>, %56, %cst_53 [0] : vector<16x128xf32> to vector<128xf32>
    %62 = vector.shape_cast %61 : vector<128xf32> to vector<1x128xf32>
    %c0_54 = arith.constant 0 : index
    %c0_55 = arith.constant 0 : index
    %c0_56 = arith.constant 0 : index
    %63 = vector.load %arg5[%c0_54, %c0_55, %c0_56] : memref<1x1x128xf32, #tpu.memory_space<vmem>>, vector<1x1x128xf32>
    %64 = vector.shape_cast %63 : vector<1x1x128xf32> to vector<1x128xf32>
    %65 = vector.shape_cast %62 : vector<1x128xf32> to vector<1x1x128xf32>
    tpu.vector_store %arg5[%c0_54, %c0_55, %c0_56], %65 {strides = array<i32>} : memref<1x1x128xf32, #tpu.memory_space<vmem>>, vector<1x1x128xf32>,
    %66 = arith.mulf %56, %56 : vector<16x128xf32>
    %cst_57 = arith.constant dense<0.000000e+00> : vector<128xf32>
    %67 = vector.multi_reduction <add>, %66, %cst_57 [0] : vector<16x128xf32> to vector<128xf32>
    %68 = vector.shape_cast %67 : vector<128xf32> to vector<1x128xf32>
    %c0_58 = arith.constant 0 : index
    %c0_59 = arith.constant 0 : index
    %c0_60 = arith.constant 0 : index
    %69 = vector.load %arg6[%c0_58, %c0_59, %c0_60] : memref<1x1x128xf32, #tpu.memory_space<vmem>>, vector<1x1x128xf32>
    %70 = vector.shape_cast %69 : vector<1x1x128xf32> to vector<1x128xf32>
    %71 = vector.shape_cast %68 : vector<1x128xf32> to vector<1x1x128xf32>
    tpu.vector_store %arg6[%c0_58, %c0_59, %c0_60], %71 {strides = array<i32>} : memref<1x1x128xf32, #tpu.memory_space<vmem>>, vector<1x1x128xf32>,
    return
  }
  func.func @transform_0(%arg0: i32, %arg1: i32) -> (i32, i32, i32, i32) {
    %c0_i32 = arith.constant 0 : i32
    %c0_i32_0 = arith.constant 0 : i32
    %c0_i32_1 = arith.constant 0 : i32
    %c0_i32_2 = arith.constant 0 : i32
    return %arg0, %c0_i32, %c0_i32_0, %c0_i32_1 : i32, i32, i32, i32
  }
  func.func @transform_1(%arg0: i32, %arg1: i32) -> (i32, i32, i32, i32) {
    %c0_i32 = arith.constant 0 : i32
    %c0_i32_0 = arith.constant 0 : i32
    %c0_i32_1 = arith.constant 0 : i32
    %c0_i32_2 = arith.constant 0 : i32
    %c0_i32_3 = arith.constant 0 : i32
    return %c0_i32, %c0_i32_0, %c0_i32_1, %c0_i32_2 : i32, i32, i32, i32
  }
  func.func @transform_2(%arg0: i32, %arg1: i32) -> (i32, i32, i32) {
    %c1_i32 = arith.constant 1 : i32
    %0 = arith.muli %arg0, %c1_i32 : i32
    %1 = arith.addi %0, %arg1 : i32
    %c0_i32 = arith.constant 0 : i32
    %c0_i32_0 = arith.constant 0 : i32
    %c0_i32_1 = arith.constant 0 : i32
    return %1, %c0_i32, %c0_i32_0 : i32, i32, i32
  }
  func.func @transform_3(%arg0: i32, %arg1: i32) -> (i32, i32, i32) {
    %c1_i32 = arith.constant 1 : i32
    %0 = arith.muli %arg0, %c1_i32 : i32
    %1 = arith.addi %0, %arg1 : i32
    %c0_i32 = arith.constant 0 : i32
    %c0_i32_0 = arith.constant 0 : i32
    %c0_i32_1 = arith.constant 0 : i32
    return %1, %c0_i32, %c0_i32_0 : i32, i32, i32
  }
  func.func @transform_4(%arg0: i32, %arg1: i32) -> (i32, i32, i32) {
    %c1_i32 = arith.constant 1 : i32
    %0 = arith.muli %arg0, %c1_i32 : i32
    %1 = arith.addi %0, %arg1 : i32
    %c0_i32 = arith.constant 0 : i32
    %c0_i32_0 = arith.constant 0 : i32
    %c0_i32_1 = arith.constant 0 : i32
    return %1, %c0_i32, %c0_i32_0 : i32, i32, i32
  }
}

module attributes {stable_mosaic.version = 11 : i64} {
  func.func @_bn_mish_pool_pad_kernel(%arg0: i32, %arg1: i32, %arg2: memref<1x16x128xbf16, #tpu.memory_space<vmem>>, %arg3: memref<1x128xf32, #tpu.memory_space<vmem>>, %arg4: memref<1x128xf32, #tpu.memory_space<vmem>>, %arg5: memref<1x128xf32, #tpu.memory_space<vmem>>, %arg6: memref<1x128xf32, #tpu.memory_space<vmem>>, %arg7: memref<1x4x4x128xbf16, #tpu.memory_space<vmem>>) attributes {dimension_semantics = [#tpu.dimension_semantics<parallel>, #tpu.dimension_semantics<arbitrary>], iteration_bounds = array<i64: 2, 1>, scalar_prefetch = 0 : i64, scratch_operands = 0 : i64, tpu.core_type = #tpu.core_type<tc>, window_params = [{transform_indices = @transform_0, window_bounds = array<i64: 1, 16, 128>}, {pipeline_mode = #tpu.pipeline_mode<synchronous>, transform_indices = @transform_1, window_bounds = array<i64: 1, 128>}, {pipeline_mode = #tpu.pipeline_mode<synchronous>, transform_indices = @transform_2, window_bounds = array<i64: 1, 128>}, {pipeline_mode = #tpu.pipeline_mode<synchronous>, transform_indices = @transform_3, window_bounds = array<i64: 1, 128>}, {pipeline_mode = #tpu.pipeline_mode<synchronous>, transform_indices = @transform_4, window_bounds = array<i64: 1, 128>}, {transform_indices = @transform_5, window_bounds = array<i64: 1, 4, 4, 128>}]} {
    %c0 = arith.constant 0 : index
    %c0_0 = arith.constant 0 : index
    %0 = vector.load %arg3[%c0, %c0_0] : memref<1x128xf32, #tpu.memory_space<vmem>>, vector<1x128xf32>
    %cst = arith.constant 3.125000e-02 : f32
    %1 = vector.broadcast %cst : f32 to vector<1x128xf32>
    %2 = arith.mulf %0, %1 : vector<1x128xf32>
    %c0_1 = arith.constant 0 : index
    %c0_2 = arith.constant 0 : index
    %3 = vector.load %arg4[%c0_1, %c0_2] : memref<1x128xf32, #tpu.memory_space<vmem>>, vector<1x128xf32>
    %cst_3 = arith.constant 3.125000e-02 : f32
    %4 = vector.broadcast %cst_3 : f32 to vector<1x128xf32>
    %5 = arith.mulf %3, %4 : vector<1x128xf32>
    %6 = arith.mulf %2, %2 : vector<1x128xf32>
    %7 = arith.subf %5, %6 : vector<1x128xf32>
    %cst_4 = arith.constant 0.000000e+00 : f32
    %8 = vector.broadcast %cst_4 : f32 to vector<1x128xf32>
    %9 = arith.maximumf %7, %8 : vector<1x128xf32>
    %c0_5 = arith.constant 0 : index
    %c0_6 = arith.constant 0 : index
    %10 = vector.load %arg5[%c0_5, %c0_6] : memref<1x128xf32, #tpu.memory_space<vmem>>, vector<1x128xf32>
    %cst_7 = arith.constant 9.99999974E-6 : f32
    %11 = vector.broadcast %cst_7 : f32 to vector<1x128xf32>
    %12 = arith.addf %9, %11 : vector<1x128xf32>
    %13 = math.rsqrt %12 : vector<1x128xf32>
    %14 = arith.mulf %10, %13 : vector<1x128xf32>
    %c0_8 = arith.constant 0 : index
    %c0_9 = arith.constant 0 : index
    %15 = vector.load %arg6[%c0_8, %c0_9] : memref<1x128xf32, #tpu.memory_space<vmem>>, vector<1x128xf32>
    %16 = arith.mulf %2, %14 : vector<1x128xf32>
    %17 = arith.subf %15, %16 : vector<1x128xf32>
    %c0_10 = arith.constant 0 : index
    %c0_11 = arith.constant 0 : index
    %c0_12 = arith.constant 0 : index
    %18 = vector.load %arg2[%c0_10, %c0_11, %c0_12] : memref<1x16x128xbf16, #tpu.memory_space<vmem>>, vector<1x16x128xbf16>
    %19 = vector.shape_cast %18 : vector<1x16x128xbf16> to vector<16x128xbf16>
    %20 = arith.extf %19 : vector<16x128xbf16> to vector<16x128xf32>
    %21 = vector.broadcast %14 : vector<1x128xf32> to vector<16x128xf32>
    %22 = arith.mulf %20, %21 : vector<16x128xf32>
    %23 = vector.broadcast %17 : vector<1x128xf32> to vector<16x128xf32>
    %24 = arith.addf %22, %23 : vector<16x128xf32>
    %cst_13 = arith.constant 3.000000e+01 : f32
    %25 = vector.broadcast %cst_13 : f32 to vector<16x128xf32>
    %26 = arith.minimumf %24, %25 : vector<16x128xf32>
    %27 = math.exp %26 : vector<16x128xf32>
    %cst_14 = arith.constant 2.000000e+00 : f32
    %28 = vector.broadcast %cst_14 : f32 to vector<16x128xf32>
    %29 = arith.addf %27, %28 : vector<16x128xf32>
    %30 = arith.mulf %27, %29 : vector<16x128xf32>
    %cst_15 = arith.constant 2.000000e+00 : f32
    %31 = vector.broadcast %cst_15 : f32 to vector<16x128xf32>
    %32 = arith.addf %30, %31 : vector<16x128xf32>
    %33 = tpu.reciprocal %32 {approx = true} : vector<16x128xf32> -> vector<16x128xf32>
    %34 = arith.mulf %30, %33 : vector<16x128xf32>
    %35 = arith.mulf %24, %34 : vector<16x128xf32>
    %36 = vector.shape_cast %35 : vector<16x128xf32> to vector<8x2x128xf32>
    %37 = vector.extract_strided_slice %36 {offsets = [0, 0, 0], sizes = [8, 1, 128], strides = [1, 1, 1]} : vector<8x2x128xf32> to vector<8x1x128xf32>
    %38 = vector.shape_cast %37 : vector<8x1x128xf32> to vector<8x128xf32>
    %39 = vector.extract_strided_slice %36 {offsets = [0, 1, 0], sizes = [8, 1, 128], strides = [1, 1, 1]} : vector<8x2x128xf32> to vector<8x1x128xf32>
    %40 = vector.shape_cast %39 : vector<8x1x128xf32> to vector<8x128xf32>
    %41 = arith.maximumf %38, %40 : vector<8x128xf32>
    %42 = vector.shape_cast %41 : vector<8x128xf32> to vector<2x2x2x128xf32>
    %43 = vector.extract_strided_slice %42 {offsets = [0, 0, 0, 0], sizes = [2, 1, 2, 128], strides = [1, 1, 1, 1]} : vector<2x2x2x128xf32> to vector<2x1x2x128xf32>
    %44 = vector.shape_cast %43 : vector<2x1x2x128xf32> to vector<2x2x128xf32>
    %45 = vector.extract_strided_slice %42 {offsets = [0, 1, 0, 0], sizes = [2, 1, 2, 128], strides = [1, 1, 1, 1]} : vector<2x2x2x128xf32> to vector<2x1x2x128xf32>
    %46 = vector.shape_cast %45 : vector<2x1x2x128xf32> to vector<2x2x128xf32>
    %47 = arith.maximumf %44, %46 : vector<2x2x128xf32>
    %cst_16 = arith.constant 0.000000e+00 : f32
    %48 = vector.broadcast %cst_16 : f32 to vector<2x1x128xf32>
    %49 = tpu.concatenate %48, %47, %48 in 1 : vector<2x1x128xf32>, vector<2x2x128xf32>, vector<2x1x128xf32> -> vector<2x4x128xf32>
    %50 = arith.truncf %49 : vector<2x4x128xf32> to vector<2x4x128xbf16>
    %c0_i32 = arith.constant 0 : i32
    %51 = arith.cmpi eq, %arg1, %c0_i32 : i32
    %52 = arith.extui %51 : i1 to i32
    %c0_i32_17 = arith.constant 0 : i32
    %53 = arith.cmpi ne, %52, %c0_i32_17 : i32
    scf.if %53 {
      %cst_21 = arith.constant 0.000000e+00 : bf16
      %60 = vector.broadcast %cst_21 : bf16 to vector<1x4x4x128xbf16>
      %c0_22 = arith.constant 0 : index
      %c0_23 = arith.constant 0 : index
      %c0_24 = arith.constant 0 : index
      %c0_25 = arith.constant 0 : index
      %61 = vector.load %arg7[%c0_22, %c0_23, %c0_24, %c0_25] : memref<1x4x4x128xbf16, #tpu.memory_space<vmem>>, vector<1x4x4x128xbf16>
      tpu.vector_store %arg7[%c0_22, %c0_23, %c0_24, %c0_25], %60 {strides = array<i32>} : memref<1x4x4x128xbf16, #tpu.memory_space<vmem>>, vector<1x4x4x128xbf16>,
    } else {
    }
    %c2_i32 = arith.constant 2 : i32
    %54 = arith.muli %arg1, %c2_i32 : i32
    %c1_i32 = arith.constant 1 : i32
    %55 = arith.addi %54, %c1_i32 : i32
    %c0_18 = arith.constant 0 : index
    %56 = arith.index_cast %55 : i32 to index
    %c0_19 = arith.constant 0 : index
    %c0_20 = arith.constant 0 : index
    %57 = vector.load %arg7[%c0_18, %56, %c0_19, %c0_20] : memref<1x4x4x128xbf16, #tpu.memory_space<vmem>>, vector<1x2x4x128xbf16>
    %58 = vector.shape_cast %57 : vector<1x2x4x128xbf16> to vector<2x4x128xbf16>
    %59 = vector.shape_cast %50 : vector<2x4x128xbf16> to vector<1x2x4x128xbf16>
    tpu.vector_store %arg7[%c0_18, %56, %c0_19, %c0_20], %59 {strides = array<i32>} : memref<1x4x4x128xbf16, #tpu.memory_space<vmem>>, vector<1x2x4x128xbf16>,
    return
  }
  func.func @transform_0(%arg0: i32, %arg1: i32) -> (i32, i32, i32) {
    %c1_i32 = arith.constant 1 : i32
    %0 = arith.muli %arg0, %c1_i32 : i32
    %1 = arith.addi %0, %arg1 : i32
    %c0_i32 = arith.constant 0 : i32
    %c0_i32_0 = arith.constant 0 : i32
    %c0_i32_1 = arith.constant 0 : i32
    return %1, %c0_i32, %c0_i32_0 : i32, i32, i32
  }
  func.func @transform_1(%arg0: i32, %arg1: i32) -> (i32, i32) {
    %c0_i32 = arith.constant 0 : i32
    %c0_i32_0 = arith.constant 0 : i32
    %c0_i32_1 = arith.constant 0 : i32
    return %c0_i32, %c0_i32_0 : i32, i32
  }
  func.func @transform_2(%arg0: i32, %arg1: i32) -> (i32, i32) {
    %c0_i32 = arith.constant 0 : i32
    %c0_i32_0 = arith.constant 0 : i32
    %c0_i32_1 = arith.constant 0 : i32
    return %c0_i32, %c0_i32_0 : i32, i32
  }
  func.func @transform_3(%arg0: i32, %arg1: i32) -> (i32, i32) {
    %c0_i32 = arith.constant 0 : i32
    %c0_i32_0 = arith.constant 0 : i32
    %c0_i32_1 = arith.constant 0 : i32
    return %c0_i32, %c0_i32_0 : i32, i32
  }
  func.func @transform_4(%arg0: i32, %arg1: i32) -> (i32, i32) {
    %c0_i32 = arith.constant 0 : i32
    %c0_i32_0 = arith.constant 0 : i32
    %c0_i32_1 = arith.constant 0 : i32
    return %c0_i32, %c0_i32_0 : i32, i32
  }
  func.func @transform_5(%arg0: i32, %arg1: i32) -> (i32, i32, i32, i32) {
    %c0_i32 = arith.constant 0 : i32
    %c0_i32_0 = arith.constant 0 : i32
    %c0_i32_1 = arith.constant 0 : i32
    %c0_i32_2 = arith.constant 0 : i32
    return %arg0, %c0_i32, %c0_i32_0, %c0_i32_1 : i32, i32, i32, i32
  }
}

module attributes {stable_mosaic.version = 11 : i64} {
  func.func @_conv3x3_stats_kernel(%arg0: i32, %arg1: i32, %arg2: memref<1x4x4x128xbf16, #tpu.memory_space<vmem>>, %arg3: memref<3x3x128x256xbf16, #tpu.memory_space<vmem>>, %arg4: memref<1x4x256xbf16, #tpu.memory_space<vmem>>, %arg5: memref<1x1x256xf32, #tpu.memory_space<vmem>>, %arg6: memref<1x1x256xf32, #tpu.memory_space<vmem>>) attributes {dimension_semantics = [#tpu.dimension_semantics<parallel>, #tpu.dimension_semantics<parallel>], iteration_bounds = array<i64: 2, 1>, scalar_prefetch = 0 : i64, scratch_operands = 0 : i64, tpu.core_type = #tpu.core_type<tc>, window_params = [{transform_indices = @transform_0, window_bounds = array<i64: 1, 4, 4, 128>}, {pipeline_mode = #tpu.pipeline_mode<synchronous>, transform_indices = @transform_1, window_bounds = array<i64: 3, 3, 128, 256>}, {transform_indices = @transform_2, window_bounds = array<i64: 1, 4, 256>}, {transform_indices = @transform_3, window_bounds = array<i64: 1, 1, 256>}, {transform_indices = @transform_4, window_bounds = array<i64: 1, 1, 256>}]} {
    %c2_i32 = arith.constant 2 : i32
    %0 = arith.muli %arg1, %c2_i32 : i32
    %c0 = arith.constant 0 : index
    %1 = arith.index_cast %0 : i32 to index
    %c0_0 = arith.constant 0 : index
    %c0_1 = arith.constant 0 : index
    %2 = vector.load %arg2[%c0, %1, %c0_0, %c0_1] : memref<1x4x4x128xbf16, #tpu.memory_space<vmem>>, vector<1x4x2x128xbf16>
    %3 = vector.shape_cast %2 : vector<1x4x2x128xbf16> to vector<4x2x128xbf16>
    %4 = vector.shape_cast %3 : vector<4x2x128xbf16> to vector<8x128xbf16>
    %5 = vector.extract_strided_slice %4 {offsets = [0, 0], sizes = [4, 128], strides = [1, 1]} : vector<8x128xbf16> to vector<4x128xbf16>
    %c0_2 = arith.constant 0 : index
    %c0_3 = arith.constant 0 : index
    %c0_4 = arith.constant 0 : index
    %c0_5 = arith.constant 0 : index
    %6 = vector.load %arg3[%c0_2, %c0_3, %c0_4, %c0_5] : memref<3x3x128x256xbf16, #tpu.memory_space<vmem>>, vector<1x1x128x256xbf16>
    %7 = vector.shape_cast %6 : vector<1x1x128x256xbf16> to vector<128x256xbf16>
    %cst = arith.constant dense<0.000000e+00> : vector<4x256xf32>
    %8 = tpu.matmul %5, %7, %cst {dimension_numbers = #tpu.dot_dimension_numbers<[1], [0], [0], [1], [0, 0, 1, 1], [], []>} : vector<4x128xbf16>, vector<128x256xbf16>, vector<4x256xf32> -> vector<4x256xf32>
    %9 = vector.extract_strided_slice %4 {offsets = [2, 0], sizes = [4, 128], strides = [1, 1]} : vector<8x128xbf16> to vector<4x128xbf16>
    %c1 = arith.constant 1 : index
    %c0_6 = arith.constant 0 : index
    %c0_7 = arith.constant 0 : index
    %c0_8 = arith.constant 0 : index
    %10 = vector.load %arg3[%c1, %c0_6, %c0_7, %c0_8] : memref<3x3x128x256xbf16, #tpu.memory_space<vmem>>, vector<1x1x128x256xbf16>
    %11 = vector.shape_cast %10 : vector<1x1x128x256xbf16> to vector<128x256xbf16>
    %cst_9 = arith.constant dense<0.000000e+00> : vector<4x256xf32>
    %12 = tpu.matmul %9, %11, %cst_9 {dimension_numbers = #tpu.dot_dimension_numbers<[1], [0], [0], [1], [0, 0, 1, 1], [], []>} : vector<4x128xbf16>, vector<128x256xbf16>, vector<4x256xf32> -> vector<4x256xf32>
    %13 = arith.addf %8, %12 : vector<4x256xf32>
    %14 = vector.extract_strided_slice %4 {offsets = [4, 0], sizes = [4, 128], strides = [1, 1]} : vector<8x128xbf16> to vector<4x128xbf16>
    %c2 = arith.constant 2 : index
    %c0_10 = arith.constant 0 : index
    %c0_11 = arith.constant 0 : index
    %c0_12 = arith.constant 0 : index
    %15 = vector.load %arg3[%c2, %c0_10, %c0_11, %c0_12] : memref<3x3x128x256xbf16, #tpu.memory_space<vmem>>, vector<1x1x128x256xbf16>
    %16 = vector.shape_cast %15 : vector<1x1x128x256xbf16> to vector<128x256xbf16>
    %cst_13 = arith.constant dense<0.000000e+00> : vector<4x256xf32>
    %17 = tpu.matmul %14, %16, %cst_13 {dimension_numbers = #tpu.dot_dimension_numbers<[1], [0], [0], [1], [0, 0, 1, 1], [], []>} : vector<4x128xbf16>, vector<128x256xbf16>, vector<4x256xf32> -> vector<4x256xf32>
    %18 = arith.addf %13, %17 : vector<4x256xf32>
    %c0_14 = arith.constant 0 : index
    %19 = arith.index_cast %0 : i32 to index
    %c1_15 = arith.constant 1 : index
    %c0_16 = arith.constant 0 : index
    %20 = vector.load %arg2[%c0_14, %19, %c1_15, %c0_16] : memref<1x4x4x128xbf16, #tpu.memory_space<vmem>>, vector<1x4x2x128xbf16>
    %21 = vector.shape_cast %20 : vector<1x4x2x128xbf16> to vector<4x2x128xbf16>
    %22 = vector.shape_cast %21 : vector<4x2x128xbf16> to vector<8x128xbf16>
    %23 = vector.extract_strided_slice %22 {offsets = [0, 0], sizes = [4, 128], strides = [1, 1]} : vector<8x128xbf16> to vector<4x128xbf16>
    %c0_17 = arith.constant 0 : index
    %c1_18 = arith.constant 1 : index
    %c0_19 = arith.constant 0 : index
    %c0_20 = arith.constant 0 : index
    %24 = vector.load %arg3[%c0_17, %c1_18, %c0_19, %c0_20] : memref<3x3x128x256xbf16, #tpu.memory_space<vmem>>, vector<1x1x128x256xbf16>
    %25 = vector.shape_cast %24 : vector<1x1x128x256xbf16> to vector<128x256xbf16>
    %cst_21 = arith.constant dense<0.000000e+00> : vector<4x256xf32>
    %26 = tpu.matmul %23, %25, %cst_21 {dimension_numbers = #tpu.dot_dimension_numbers<[1], [0], [0], [1], [0, 0, 1, 1], [], []>} : vector<4x128xbf16>, vector<128x256xbf16>, vector<4x256xf32> -> vector<4x256xf32>
    %27 = arith.addf %18, %26 : vector<4x256xf32>
    %28 = vector.extract_strided_slice %22 {offsets = [2, 0], sizes = [4, 128], strides = [1, 1]} : vector<8x128xbf16> to vector<4x128xbf16>
    %c1_22 = arith.constant 1 : index
    %c1_23 = arith.constant 1 : index
    %c0_24 = arith.constant 0 : index
    %c0_25 = arith.constant 0 : index
    %29 = vector.load %arg3[%c1_22, %c1_23, %c0_24, %c0_25] : memref<3x3x128x256xbf16, #tpu.memory_space<vmem>>, vector<1x1x128x256xbf16>
    %30 = vector.shape_cast %29 : vector<1x1x128x256xbf16> to vector<128x256xbf16>
    %cst_26 = arith.constant dense<0.000000e+00> : vector<4x256xf32>
    %31 = tpu.matmul %28, %30, %cst_26 {dimension_numbers = #tpu.dot_dimension_numbers<[1], [0], [0], [1], [0, 0, 1, 1], [], []>} : vector<4x128xbf16>, vector<128x256xbf16>, vector<4x256xf32> -> vector<4x256xf32>
    %32 = arith.addf %27, %31 : vector<4x256xf32>
    %33 = vector.extract_strided_slice %22 {offsets = [4, 0], sizes = [4, 128], strides = [1, 1]} : vector<8x128xbf16> to vector<4x128xbf16>
    %c2_27 = arith.constant 2 : index
    %c1_28 = arith.constant 1 : index
    %c0_29 = arith.constant 0 : index
    %c0_30 = arith.constant 0 : index
    %34 = vector.load %arg3[%c2_27, %c1_28, %c0_29, %c0_30] : memref<3x3x128x256xbf16, #tpu.memory_space<vmem>>, vector<1x1x128x256xbf16>
    %35 = vector.shape_cast %34 : vector<1x1x128x256xbf16> to vector<128x256xbf16>
    %cst_31 = arith.constant dense<0.000000e+00> : vector<4x256xf32>
    %36 = tpu.matmul %33, %35, %cst_31 {dimension_numbers = #tpu.dot_dimension_numbers<[1], [0], [0], [1], [0, 0, 1, 1], [], []>} : vector<4x128xbf16>, vector<128x256xbf16>, vector<4x256xf32> -> vector<4x256xf32>
    %37 = arith.addf %32, %36 : vector<4x256xf32>
    %c0_32 = arith.constant 0 : index
    %38 = arith.index_cast %0 : i32 to index
    %c2_33 = arith.constant 2 : index
    %c0_34 = arith.constant 0 : index
    %39 = vector.load %arg2[%c0_32, %38, %c2_33, %c0_34] : memref<1x4x4x128xbf16, #tpu.memory_space<vmem>>, vector<1x4x2x128xbf16>
    %40 = vector.shape_cast %39 : vector<1x4x2x128xbf16> to vector<4x2x128xbf16>
    %41 = vector.shape_cast %40 : vector<4x2x128xbf16> to vector<8x128xbf16>
    %42 = vector.extract_strided_slice %41 {offsets = [0, 0], sizes = [4, 128], strides = [1, 1]} : vector<8x128xbf16> to vector<4x128xbf16>
    %c0_35 = arith.constant 0 : index
    %c2_36 = arith.constant 2 : index
    %c0_37 = arith.constant 0 : index
    %c0_38 = arith.constant 0 : index
    %43 = vector.load %arg3[%c0_35, %c2_36, %c0_37, %c0_38] : memref<3x3x128x256xbf16, #tpu.memory_space<vmem>>, vector<1x1x128x256xbf16>
    %44 = vector.shape_cast %43 : vector<1x1x128x256xbf16> to vector<128x256xbf16>
    %cst_39 = arith.constant dense<0.000000e+00> : vector<4x256xf32>
    %45 = tpu.matmul %42, %44, %cst_39 {dimension_numbers = #tpu.dot_dimension_numbers<[1], [0], [0], [1], [0, 0, 1, 1], [], []>} : vector<4x128xbf16>, vector<128x256xbf16>, vector<4x256xf32> -> vector<4x256xf32>
    %46 = arith.addf %37, %45 : vector<4x256xf32>
    %47 = vector.extract_strided_slice %41 {offsets = [2, 0], sizes = [4, 128], strides = [1, 1]} : vector<8x128xbf16> to vector<4x128xbf16>
    %c1_40 = arith.constant 1 : index
    %c2_41 = arith.constant 2 : index
    %c0_42 = arith.constant 0 : index
    %c0_43 = arith.constant 0 : index
    %48 = vector.load %arg3[%c1_40, %c2_41, %c0_42, %c0_43] : memref<3x3x128x256xbf16, #tpu.memory_space<vmem>>, vector<1x1x128x256xbf16>
    %49 = vector.shape_cast %48 : vector<1x1x128x256xbf16> to vector<128x256xbf16>
    %cst_44 = arith.constant dense<0.000000e+00> : vector<4x256xf32>
    %50 = tpu.matmul %47, %49, %cst_44 {dimension_numbers = #tpu.dot_dimension_numbers<[1], [0], [0], [1], [0, 0, 1, 1], [], []>} : vector<4x128xbf16>, vector<128x256xbf16>, vector<4x256xf32> -> vector<4x256xf32>
    %51 = arith.addf %46, %50 : vector<4x256xf32>
    %52 = vector.extract_strided_slice %41 {offsets = [4, 0], sizes = [4, 128], strides = [1, 1]} : vector<8x128xbf16> to vector<4x128xbf16>
    %c2_45 = arith.constant 2 : index
    %c2_46 = arith.constant 2 : index
    %c0_47 = arith.constant 0 : index
    %c0_48 = arith.constant 0 : index
    %53 = vector.load %arg3[%c2_45, %c2_46, %c0_47, %c0_48] : memref<3x3x128x256xbf16, #tpu.memory_space<vmem>>, vector<1x1x128x256xbf16>
    %54 = vector.shape_cast %53 : vector<1x1x128x256xbf16> to vector<128x256xbf16>
    %cst_49 = arith.constant dense<0.000000e+00> : vector<4x256xf32>
    %55 = tpu.matmul %52, %54, %cst_49 {dimension_numbers = #tpu.dot_dimension_numbers<[1], [0], [0], [1], [0, 0, 1, 1], [], []>} : vector<4x128xbf16>, vector<128x256xbf16>, vector<4x256xf32> -> vector<4x256xf32>
    %56 = arith.addf %51, %55 : vector<4x256xf32>
    %57 = arith.truncf %56 : vector<4x256xf32> to vector<4x256xbf16>
    %c0_50 = arith.constant 0 : index
    %c0_51 = arith.constant 0 : index
    %c0_52 = arith.constant 0 : index
    %58 = vector.load %arg4[%c0_50, %c0_51, %c0_52] : memref<1x4x256xbf16, #tpu.memory_space<vmem>>, vector<1x4x256xbf16>
    %59 = vector.shape_cast %58 : vector<1x4x256xbf16> to vector<4x256xbf16>
    %60 = vector.shape_cast %57 : vector<4x256xbf16> to vector<1x4x256xbf16>
    tpu.vector_store %arg4[%c0_50, %c0_51, %c0_52], %60 {strides = array<i32>} : memref<1x4x256xbf16, #tpu.memory_space<vmem>>, vector<1x4x256xbf16>,
    %cst_53 = arith.constant dense<0.000000e+00> : vector<256xf32>
    %61 = vector.multi_reduction <add>, %56, %cst_53 [0] : vector<4x256xf32> to vector<256xf32>
    %62 = vector.shape_cast %61 : vector<256xf32> to vector<1x256xf32>
    %c0_54 = arith.constant 0 : index
    %c0_55 = arith.constant 0 : index
    %c0_56 = arith.constant 0 : index
    %63 = vector.load %arg5[%c0_54, %c0_55, %c0_56] : memref<1x1x256xf32, #tpu.memory_space<vmem>>, vector<1x1x256xf32>
    %64 = vector.shape_cast %63 : vector<1x1x256xf32> to vector<1x256xf32>
    %65 = vector.shape_cast %62 : vector<1x256xf32> to vector<1x1x256xf32>
    tpu.vector_store %arg5[%c0_54, %c0_55, %c0_56], %65 {strides = array<i32>} : memref<1x1x256xf32, #tpu.memory_space<vmem>>, vector<1x1x256xf32>,
    %66 = arith.mulf %56, %56 : vector<4x256xf32>
    %cst_57 = arith.constant dense<0.000000e+00> : vector<256xf32>
    %67 = vector.multi_reduction <add>, %66, %cst_57 [0] : vector<4x256xf32> to vector<256xf32>
    %68 = vector.shape_cast %67 : vector<256xf32> to vector<1x256xf32>
    %c0_58 = arith.constant 0 : index
    %c0_59 = arith.constant 0 : index
    %c0_60 = arith.constant 0 : index
    %69 = vector.load %arg6[%c0_58, %c0_59, %c0_60] : memref<1x1x256xf32, #tpu.memory_space<vmem>>, vector<1x1x256xf32>
    %70 = vector.shape_cast %69 : vector<1x1x256xf32> to vector<1x256xf32>
    %71 = vector.shape_cast %68 : vector<1x256xf32> to vector<1x1x256xf32>
    tpu.vector_store %arg6[%c0_58, %c0_59, %c0_60], %71 {strides = array<i32>} : memref<1x1x256xf32, #tpu.memory_space<vmem>>, vector<1x1x256xf32>,
    return
  }
  func.func @transform_0(%arg0: i32, %arg1: i32) -> (i32, i32, i32, i32) {
    %c0_i32 = arith.constant 0 : i32
    %c0_i32_0 = arith.constant 0 : i32
    %c0_i32_1 = arith.constant 0 : i32
    %c0_i32_2 = arith.constant 0 : i32
    return %arg0, %c0_i32, %c0_i32_0, %c0_i32_1 : i32, i32, i32, i32
  }
  func.func @transform_1(%arg0: i32, %arg1: i32) -> (i32, i32, i32, i32) {
    %c0_i32 = arith.constant 0 : i32
    %c0_i32_0 = arith.constant 0 : i32
    %c0_i32_1 = arith.constant 0 : i32
    %c0_i32_2 = arith.constant 0 : i32
    %c0_i32_3 = arith.constant 0 : i32
    return %c0_i32, %c0_i32_0, %c0_i32_1, %c0_i32_2 : i32, i32, i32, i32
  }
  func.func @transform_2(%arg0: i32, %arg1: i32) -> (i32, i32, i32) {
    %c1_i32 = arith.constant 1 : i32
    %0 = arith.muli %arg0, %c1_i32 : i32
    %1 = arith.addi %0, %arg1 : i32
    %c0_i32 = arith.constant 0 : i32
    %c0_i32_0 = arith.constant 0 : i32
    %c0_i32_1 = arith.constant 0 : i32
    return %1, %c0_i32, %c0_i32_0 : i32, i32, i32
  }
  func.func @transform_3(%arg0: i32, %arg1: i32) -> (i32, i32, i32) {
    %c1_i32 = arith.constant 1 : i32
    %0 = arith.muli %arg0, %c1_i32 : i32
    %1 = arith.addi %0, %arg1 : i32
    %c0_i32 = arith.constant 0 : i32
    %c0_i32_0 = arith.constant 0 : i32
    %c0_i32_1 = arith.constant 0 : i32
    return %1, %c0_i32, %c0_i32_0 : i32, i32, i32
  }
  func.func @transform_4(%arg0: i32, %arg1: i32) -> (i32, i32, i32) {
    %c1_i32 = arith.constant 1 : i32
    %0 = arith.muli %arg0, %c1_i32 : i32
    %1 = arith.addi %0, %arg1 : i32
    %c0_i32 = arith.constant 0 : i32
    %c0_i32_0 = arith.constant 0 : i32
    %c0_i32_1 = arith.constant 0 : i32
    return %1, %c0_i32, %c0_i32_0 : i32, i32, i32
  }
}

module attributes {stable_mosaic.version = 11 : i64} {
  func.func @_bn_mish_kernel(%arg0: i32, %arg1: i32, %arg2: memref<1x4x256xbf16, #tpu.memory_space<vmem>>, %arg3: memref<1x256xf32, #tpu.memory_space<vmem>>, %arg4: memref<1x256xf32, #tpu.memory_space<vmem>>, %arg5: memref<1x256xf32, #tpu.memory_space<vmem>>, %arg6: memref<1x256xf32, #tpu.memory_space<vmem>>, %arg7: memref<1x4x256xf32, #tpu.memory_space<vmem>>) attributes {dimension_semantics = [#tpu.dimension_semantics<parallel>, #tpu.dimension_semantics<parallel>], iteration_bounds = array<i64: 2, 1>, scalar_prefetch = 0 : i64, scratch_operands = 0 : i64, tpu.core_type = #tpu.core_type<tc>, window_params = [{transform_indices = @transform_0, window_bounds = array<i64: 1, 4, 256>}, {pipeline_mode = #tpu.pipeline_mode<synchronous>, transform_indices = @transform_1, window_bounds = array<i64: 1, 256>}, {pipeline_mode = #tpu.pipeline_mode<synchronous>, transform_indices = @transform_2, window_bounds = array<i64: 1, 256>}, {pipeline_mode = #tpu.pipeline_mode<synchronous>, transform_indices = @transform_3, window_bounds = array<i64: 1, 256>}, {pipeline_mode = #tpu.pipeline_mode<synchronous>, transform_indices = @transform_4, window_bounds = array<i64: 1, 256>}, {transform_indices = @transform_5, window_bounds = array<i64: 1, 4, 256>}]} {
    %c0 = arith.constant 0 : index
    %c0_0 = arith.constant 0 : index
    %0 = vector.load %arg3[%c0, %c0_0] : memref<1x256xf32, #tpu.memory_space<vmem>>, vector<1x256xf32>
    %cst = arith.constant 1.250000e-01 : f32
    %1 = vector.broadcast %cst : f32 to vector<1x256xf32>
    %2 = arith.mulf %0, %1 : vector<1x256xf32>
    %c0_1 = arith.constant 0 : index
    %c0_2 = arith.constant 0 : index
    %3 = vector.load %arg4[%c0_1, %c0_2] : memref<1x256xf32, #tpu.memory_space<vmem>>, vector<1x256xf32>
    %cst_3 = arith.constant 1.250000e-01 : f32
    %4 = vector.broadcast %cst_3 : f32 to vector<1x256xf32>
    %5 = arith.mulf %3, %4 : vector<1x256xf32>
    %6 = arith.mulf %2, %2 : vector<1x256xf32>
    %7 = arith.subf %5, %6 : vector<1x256xf32>
    %cst_4 = arith.constant 0.000000e+00 : f32
    %8 = vector.broadcast %cst_4 : f32 to vector<1x256xf32>
    %9 = arith.maximumf %7, %8 : vector<1x256xf32>
    %c0_5 = arith.constant 0 : index
    %c0_6 = arith.constant 0 : index
    %10 = vector.load %arg5[%c0_5, %c0_6] : memref<1x256xf32, #tpu.memory_space<vmem>>, vector<1x256xf32>
    %cst_7 = arith.constant 9.99999974E-6 : f32
    %11 = vector.broadcast %cst_7 : f32 to vector<1x256xf32>
    %12 = arith.addf %9, %11 : vector<1x256xf32>
    %13 = math.rsqrt %12 : vector<1x256xf32>
    %14 = arith.mulf %10, %13 : vector<1x256xf32>
    %c0_8 = arith.constant 0 : index
    %c0_9 = arith.constant 0 : index
    %15 = vector.load %arg6[%c0_8, %c0_9] : memref<1x256xf32, #tpu.memory_space<vmem>>, vector<1x256xf32>
    %16 = arith.mulf %2, %14 : vector<1x256xf32>
    %17 = arith.subf %15, %16 : vector<1x256xf32>
    %c0_10 = arith.constant 0 : index
    %c0_11 = arith.constant 0 : index
    %c0_12 = arith.constant 0 : index
    %18 = vector.load %arg2[%c0_10, %c0_11, %c0_12] : memref<1x4x256xbf16, #tpu.memory_space<vmem>>, vector<1x4x256xbf16>
    %19 = vector.shape_cast %18 : vector<1x4x256xbf16> to vector<4x256xbf16>
    %20 = arith.extf %19 : vector<4x256xbf16> to vector<4x256xf32>
    %21 = vector.broadcast %14 : vector<1x256xf32> to vector<4x256xf32>
    %22 = arith.mulf %20, %21 : vector<4x256xf32>
    %23 = vector.broadcast %17 : vector<1x256xf32> to vector<4x256xf32>
    %24 = arith.addf %22, %23 : vector<4x256xf32>
    %cst_13 = arith.constant 3.000000e+01 : f32
    %25 = vector.broadcast %cst_13 : f32 to vector<4x256xf32>
    %26 = arith.minimumf %24, %25 : vector<4x256xf32>
    %27 = math.exp %26 : vector<4x256xf32>
    %cst_14 = arith.constant 2.000000e+00 : f32
    %28 = vector.broadcast %cst_14 : f32 to vector<4x256xf32>
    %29 = arith.addf %27, %28 : vector<4x256xf32>
    %30 = arith.mulf %27, %29 : vector<4x256xf32>
    %cst_15 = arith.constant 2.000000e+00 : f32
    %31 = vector.broadcast %cst_15 : f32 to vector<4x256xf32>
    %32 = arith.addf %30, %31 : vector<4x256xf32>
    %33 = tpu.reciprocal %32 {approx = true} : vector<4x256xf32> -> vector<4x256xf32>
    %34 = arith.mulf %30, %33 : vector<4x256xf32>
    %35 = arith.mulf %24, %34 : vector<4x256xf32>
    %c0_16 = arith.constant 0 : index
    %c0_17 = arith.constant 0 : index
    %c0_18 = arith.constant 0 : index
    %36 = vector.load %arg7[%c0_16, %c0_17, %c0_18] : memref<1x4x256xf32, #tpu.memory_space<vmem>>, vector<1x4x256xf32>
    %37 = vector.shape_cast %36 : vector<1x4x256xf32> to vector<4x256xf32>
    %38 = vector.shape_cast %35 : vector<4x256xf32> to vector<1x4x256xf32>
    tpu.vector_store %arg7[%c0_16, %c0_17, %c0_18], %38 {strides = array<i32>} : memref<1x4x256xf32, #tpu.memory_space<vmem>>, vector<1x4x256xf32>,
    return
  }
  func.func @transform_0(%arg0: i32, %arg1: i32) -> (i32, i32, i32) {
    %c1_i32 = arith.constant 1 : i32
    %0 = arith.muli %arg0, %c1_i32 : i32
    %1 = arith.addi %0, %arg1 : i32
    %c0_i32 = arith.constant 0 : i32
    %c0_i32_0 = arith.constant 0 : i32
    %c0_i32_1 = arith.constant 0 : i32
    return %1, %c0_i32, %c0_i32_0 : i32, i32, i32
  }
  func.func @transform_1(%arg0: i32, %arg1: i32) -> (i32, i32) {
    %c0_i32 = arith.constant 0 : i32
    %c0_i32_0 = arith.constant 0 : i32
    %c0_i32_1 = arith.constant 0 : i32
    return %c0_i32, %c0_i32_0 : i32, i32
  }
  func.func @transform_2(%arg0: i32, %arg1: i32) -> (i32, i32) {
    %c0_i32 = arith.constant 0 : i32
    %c0_i32_0 = arith.constant 0 : i32
    %c0_i32_1 = arith.constant 0 : i32
    return %c0_i32, %c0_i32_0 : i32, i32
  }
  func.func @transform_3(%arg0: i32, %arg1: i32) -> (i32, i32) {
    %c0_i32 = arith.constant 0 : i32
    %c0_i32_0 = arith.constant 0 : i32
    %c0_i32_1 = arith.constant 0 : i32
    return %c0_i32, %c0_i32_0 : i32, i32
  }
  func.func @transform_4(%arg0: i32, %arg1: i32) -> (i32, i32) {
    %c0_i32 = arith.constant 0 : i32
    %c0_i32_0 = arith.constant 0 : i32
    %c0_i32_1 = arith.constant 0 : i32
    return %c0_i32, %c0_i32_0 : i32, i32
  }
  func.func @transform_5(%arg0: i32, %arg1: i32) -> (i32, i32, i32) {
    %c1_i32 = arith.constant 1 : i32
    %0 = arith.muli %arg0, %c1_i32 : i32
    %1 = arith.addi %0, %arg1 : i32
    %c0_i32 = arith.constant 0 : i32
    %c0_i32_0 = arith.constant 0 : i32
    %c0_i32_1 = arith.constant 0 : i32
    return %1, %c0_i32, %c0_i32_0 : i32, i32, i32
  }
}

</mosaic_0001>

<bundles_post_ra>
// kernel: vgg16_forward.8
= control target key start
LH: loop header
LB: loop body
LE: loop exit
PB: predicated region body
PF: predicated region fallthrough
CT: control target
= control target key end

     0   :  { %s1013_s15 = smov 0   ;;  %s1015_s16 = smov 0   ;;  %s1192_s0 = inlined_call_operand.vmem [shape: bf16[2,256,27], index: 0, kind: input, shape index: {}]   ;;  %s1193_s1 = inlined_call_operand.vmem [shape: bf16[27,32], index: 1, kind: input, shape index: {}]   ;;  %s1194_s2 = inlined_call_operand.vmem [shape: bf16[4,128,32], index: 2, kind: output, shape index: {0}]   ;;  %s1195_s3 = inlined_call_operand.vmem [shape: f32[4,1,32], index: 3, kind: output, shape index: {1}]   ;;  %s1196_s4 = inlined_call_operand.vmem [shape: f32[4,1,32], index: 4, kind: output, shape index: {2}]  }
   0x1   :  { %s1017_s17 = smov 0   ;;  %s1019_s18 = smov 0  }
   0x2   :  { %s1021_s19 = smov 0  }
   0x3 LB: > { %s24_s20 = sadd.s32 1, %s977_s17  ;;  %s27_s21 = sadd.s32 1, %s981_s18  ;;  %s985_s19 = sphi %s1021_s19, %s15_s19   ;;  %s981_s18 = sphi %s1019_s18, %s1200_s18   ;;  %s977_s17 = sphi %s1017_s17, %s1199_s17   ;;  %s973_s16 = sphi %s1015_s16, %s1198_s16   ;;  %s969_s15 = sphi %s1013_s15, %s1197_s15  }
   0x4   : > { %p25_p0 = scmp.ge.s32.totalorder %s24_s20, 2  ;;  %p800_p1 = scmp.ge.s32.totalorder %s985_s19, 1 }
   0x5   : > { %p198_p2 = scmp.lt.s32.totalorder %s985_s19, 5 }
   0x6   : > { %s1202_s20 = smov (%p25_p0, %s24_s20), 0  ;;  %s1204_s21 = smov (!%p25_p0, %s27_s21), %s981_s18 }
   0x7   : > { %p199_p3 = pnand %p800_p1, %p198_p2  ;;  %p29_p4 = scmp.ge.s32.totalorder %s1204_s21, 2 }
   0x8   : > { %s801_s24 = sshll.u32 (!%p199_p3), %s969_s15, 4  ;;  %p241_p5 = scmp.lt.s32.totalorder (!%p199_p3), %s973_s16, 1 }
   0x9   : > { %s1206_s21 = smov (%p29_p4, %s1204_s21), 0  ;;  %202 = sbr.rel (%p199_p3) target bundleno = 272 (0x110), region = 28 }
   0xa   : > { %p243_p6 = scmp.lt.s32.totalorder (!%p199_p3), %s801_s24, 31  ;;  %s804_s8 = sshll.u32 (!%p199_p3), %s973_s16, 1 }
   0xb   : > { %s251_s9 = sadd.s32 (!%p199_p3), %s969_s15, %s804_s8 }
   0xc   : > { %p252_p7 = scmp.lt.s32.totalorder (!%p199_p3), %s251_s9, 3 }
   0xe   : > { %v937_v0 = vld [vmem:[%s1193_s1 + $0x8] sm:$0x3f]   ;;  %vm370_vm0 = vcmask 1044480   ;;  %vm371_vm1 = vcmask 1045504   ;;  %v987_v1 = vmov 65535   ;;  %v938_v5 = vld [vmem:[%s1193_s1] sm:$0xff]  }
   0xf   : > { %v372_v2 = vsel %vm370_vm0, 4294967295, %v987_v1  ;;  %s242_s27 = scalar_select %p241_p5, %s973_s16, 1  ;;  %vm345_vm2 = vcmask 220160   ;;  %vm538_vm3 = vcmask 257024   ;;  %vm555_vm4 = vcmask 261120  }
  0x10   : > { %v373_v3 = vsel %vm371_vm1, %v372_v2, 0  ;;  %s1208_s24 = smov (!%p243_p6, %s801_s24), 31  ;;  %s1210_s9 = smov (!%p252_p7, %s251_s9), 3  ;;  %vm593_vm5 = vcmask 253952  }
  0x11   : > { %v375_v4 = vand.u32 %v937_v0, %v373_v3  ;;  %s802_s28 = sshll.u32 %s242_s27, 5  ;;  %s845_s10 = sshll.u32 %s1210_s9, 6 }
  0x12   : > { %s246_s29 = sadd.s32 %s802_s28, %s1208_s24  ;;  %s1075_s13 = scalar_lea.vmem %s1194_s2, %s845_s10 }
  0x13   : > { %872 = vmatprep.subr.bf16.mxu0 %v375_v4  ;;  %892 = vmatprep.subr.bf16.mxu1 %v375_v4  ;;  %s803_s30 = sshll.u32 %s246_s29, 2  ;;  %s263_s16 = scalar_lea.vmem %s1195_s3, %s1210_s9 }
  0x14   : > { %873 = vmatpush3.bf16.msra.mxu0 %v375_v4  ;;  %894 = vmatpush3.bf16.msra.mxu1 %v375_v4  ;;  %s248_s7 = scalar_lea.vmem %s1192_s0, %s803_s30  ;;  %s270_s24 = scalar_lea.vmem %s1196_s4, %s1210_s9 }
  0x15   : > { %874 = vmatprep.subr.bf16.mxu0 %v938_v5  ;;  %893 = vmatprep.subr.bf16.mxu1 %v938_v5  ;;  %v939_v6 = vld [vmem:[%s248_s7] sm:$0xff]   ;;  %v940_v7 = vld [vmem:[%s248_s7 + $0x8] sm:$0xff]   ;;  %v941_v8 = vld [vmem:[%s248_s7 + $0x10] sm:$0xff]  }
  0x16   : > { %876 = vmatprep.mubr.msk.bf16.mxu0 %vm345_vm2, %v939_v6  ;;  %v943_v9 = vld [vmem:[%s248_s7 + $0x20] sm:$0xff]   ;;  %v944_v10 = vld [vmem:[%s248_s7 + $0x28] sm:$0xff]   ;;  %v945_v11 = vld [vmem:[%s248_s7 + $0x30] sm:$0xff]  }
  0x17   : > { %884 = vmatprep.mubr.msk.bf16.mxu1 %vm345_vm2, %v943_v9  ;;  %v942_v12 = vld [vmem:[%s248_s7 + $0x18] sm:$0xff]  }
  0x18   : > { %875 = vmatpush3.bf16.msra.mxu0 %v938_v5  ;;  %895 = vmatpush3.bf16.msra.mxu1 %v938_v5  ;;  %v946_v13 = vld [vmem:[%s248_s7 + $0x38] sm:$0xff]  }
  0x1b   : > { %877 = vmatmul.mubr.msk.bf16.vlgmr.msra.gmra.mxu0 %vm345_vm2, %v940_v7  ;;  %885 = vmatmul.mubr.msk.bf16.vlgmr.msra.gmra.mxu1 %vm345_vm2, %v944_v10 }
  0x1c   : > { %880 = vmatprep.mubr.msk.bf16.mxu0 %vm345_vm2, %v941_v8  ;;  %888 = vmatprep.mubr.msk.bf16.mxu1 %vm345_vm2, %v945_v11 }
  0x23   : > { %881 = vmatmul.mubr.msk.bf16.gmra.mxu0 %vm345_vm2, %v942_v12  ;;  %889 = vmatmul.mubr.msk.bf16.gmra.mxu1 %vm345_vm2, %v946_v13 }
  0xdb   : > { %v878_v14 = vpop.f32.mrf.mxu0  ;;  %v1079_v18 = vpop.f32.mrf.mxu1 }
  0xdc   : > { %v848_v15 = vpack.c.bf16 %v878_v14, %v878_v14  ;;  %v856_v20 = vpack.c.bf16 %v1079_v18, %v1079_v18  ;;  %v597_v24 = vmul.f32 %v878_v14, %v878_v14  ;;  %v559_v32 = vsel %vm555_vm4, %v878_v14, 0.0 }
  0xdd   : > { %v411_v16 = vpop.f32.mrf.mxu0  ;;  %v1085_v23 = vpop.f32.mrf.mxu1 }
  0xde   : > { %541 = vst.msk [vmem:[%s1075_s13 + $0x8] sm:$0xf] %vm538_vm3, %v848_v15  ;;  %v846_v17 = vpack.c.bf16 %v411_v16, %v411_v16  ;;  %v595_v21 = vmul.f32 %v411_v16, %v411_v16  ;;  %549 = vst.msk [vmem:[%s1075_s13 + $0x28] sm:$0xf] %vm538_vm3, %v856_v20  ;;  %v854_v26 = vpack.c.bf16 %v1085_v23, %v1085_v23  ;;  %v556_v27 = vsel %vm555_vm4, %v411_v16, 0.0 }
  0xdf   : > { %v879_v19 = vpop.f32.mrf.mxu0  ;;  %v1095_v31 = vpop.f32.mrf.mxu1  ;;  %v614_v45 = vsel %vm555_vm4, %v597_v24, 0.0  ;;  %v603_v15 = vmul.f32 %v1085_v23, %v1085_v23 }
  0xe0   : > { %539 = vst.msk [vmem:[%s1075_s13] sm:$0xf] %vm538_vm3, %v846_v17  ;;  %v849_v22 = vpack.c.bf16 %v879_v19, %v879_v19  ;;  %547 = vst.msk [vmem:[%s1075_s13 + $0x20] sm:$0xf] %vm538_vm3, %v854_v26  ;;  %v857_v35 = vpack.c.bf16 %v1095_v31, %v1095_v31  ;;  %v611_v36 = vsel %vm555_vm4, %v595_v21, 0.0  ;;  %v598_v37 = vmul.f32 %v879_v19, %v879_v19 }
  0xe1   : > { %v414_v25 = vpop.f32.mrf.mxu0  ;;  %v446_v40 = vpop.f32.mrf.mxu1  ;;  %v561_v46 = vsel %vm555_vm4, %v879_v19, 0.0  ;;  %v571_v21 = vsel %vm555_vm4, %v1085_v23, 0.0  ;;  %v605_v26 = vmul.f32 %v1079_v18, %v1079_v18  ;;  %v606_v23 = vmul.f32 %v1095_v31, %v1095_v31 }
  0xe2   : > { %542 = vst.msk [vmem:[%s1075_s13 + $0xc] sm:$0xf] %vm538_vm3, %v849_v22  ;;  %v847_v28 = vpack.c.bf16 %v414_v25, %v414_v25  ;;  %v557_v29 = vsel %vm555_vm4, %v414_v25, 0.0  ;;  %v596_v30 = vmul.f32 %v414_v25, %v414_v25  ;;  %550 = vst.msk [vmem:[%s1075_s13 + $0x2c] sm:$0xf] %vm538_vm3, %v857_v35  ;;  %v855_v44 = vpack.c.bf16 %v446_v40, %v446_v40 }
  0xe3   : > { %v558_v33 = vadd.f32 %v557_v29, %v556_v27  ;;  %v882_v34 = vpop.f32.mrf.mxu0  ;;  %v1112_v49 = vpop.f32.mrf.mxu1  ;;  %v616_v53 = vsel %vm555_vm4, %v598_v37, 0.0  ;;  %v604_v22 = vmul.f32 %v446_v40, %v446_v40  ;;  %v626_v27 = vsel %vm555_vm4, %v603_v15, 0.0 }
  0xe4   : > { %540 = vst.msk [vmem:[%s1075_s13 + $0x4] sm:$0xf] %vm538_vm3, %v847_v28  ;;  %v612_v38 = vsel %vm555_vm4, %v596_v30, 0.0  ;;  %v852_v39 = vpack.c.bf16 %v882_v34, %v882_v34  ;;  %548 = vst.msk [vmem:[%s1075_s13 + $0x24] sm:$0xf] %vm538_vm3, %v855_v44  ;;  %v601_v57 = vmul.f32 %v882_v34, %v882_v34  ;;  %v860_v61 = vpack.c.bf16 %v1112_v49, %v1112_v49 }
  0xe5   : > { %v560_v41 = vadd.f32 %v559_v32, %v558_v33  ;;  %v613_v42 = vadd.f32 %v612_v38, %v611_v36  ;;  %v427_v43 = vpop.f32.mrf.mxu0  ;;  %v459_v56 = vpop.f32.mrf.mxu1  ;;  %v567_v5 = vsel %vm555_vm4, %v882_v34, 0.0  ;;  %v573_v28 = vsel %vm555_vm4, %v446_v40, 0.0 }
  0xe6   : > { %545 = vst.msk [vmem:[%s1075_s13 + $0x18] sm:$0xf] %vm538_vm3, %v852_v39  ;;  %v850_v47 = vpack.c.bf16 %v427_v43, %v427_v43  ;;  %v599_v48 = vmul.f32 %v427_v43, %v427_v43  ;;  %v563_v54 = vsel %vm555_vm4, %v427_v43, 0.0  ;;  %553 = vst.msk [vmem:[%s1075_s13 + $0x38] sm:$0xf] %vm538_vm3, %v860_v61  ;;  %v858_v8 = vpack.c.bf16 %v459_v56, %v459_v56 }
  0xe7   : > { %v615_v50 = vadd.f32 %v614_v45, %v613_v42  ;;  %v562_v51 = vadd.f32 %v561_v46, %v560_v41  ;;  %v883_v52 = vpop.f32.mrf.mxu0  ;;  %v891_v2 = vpop.f32.mrf.mxu1  ;;  %v622_v13 = vsel %vm555_vm4, %v601_v57, 0.0  ;;  %v575_v32 = vsel %vm555_vm4, %v1079_v18, 0.0 }
  0xe8   : > { %543 = vst.msk [vmem:[%s1075_s13 + $0x10] sm:$0xf] %vm538_vm3, %v850_v47  ;;  %v853_v55 = vpack.c.bf16 %v883_v52, %v883_v52  ;;  %v618_v62 = vsel %vm555_vm4, %v599_v48, 0.0  ;;  %v602_v6 = vmul.f32 %v883_v52, %v883_v52  ;;  %v861_v12 = vpack.c.bf16 %v891_v2, %v891_v2  ;;  %551 = vst.msk [vmem:[%s1075_s13 + $0x30] sm:$0xf] %vm538_vm3, %v858_v8 }
  0xe9   : > { %v564_v58 = vadd.f32 %v563_v54, %v562_v51  ;;  %v617_v59 = vadd.f32 %v616_v53, %v615_v50  ;;  %v430_v60 = vpop.f32.mrf.mxu0  ;;  %v462_v9 = vpop.f32.mrf.mxu1  ;;  %v569_v14 = vsel %vm555_vm4, %v883_v52, 0.0  ;;  %v628_v33 = vsel %vm555_vm4, %v604_v22, 0.0 }
  0xea   : > { %546 = vst.msk [vmem:[%s1075_s13 + $0x1c] sm:$0xf] %vm538_vm3, %v853_v55  ;;  %v851_v63 = vpack.c.bf16 %v430_v60, %v430_v60  ;;  %v565_v0 = vsel %vm555_vm4, %v430_v60, 0.0  ;;  %v600_v1 = vmul.f32 %v430_v60, %v430_v60  ;;  %v859_v16 = vpack.c.bf16 %v462_v9, %v462_v9  ;;  %554 = vst.msk [vmem:[%s1075_s13 + $0x3c] sm:$0xf] %vm538_vm3, %v861_v12 }
  0xeb   : > { %v619_v3 = vadd.f32 %v618_v62, %v617_v59  ;;  %v566_v4 = vadd.f32 %v565_v0, %v564_v58  ;;  %v624_v20 = vsel %vm555_vm4, %v602_v6, 0.0  ;;  %v630_v36 = vsel %vm555_vm4, %v605_v26, 0.0 }
  0xec   : > { %544 = vst.msk [vmem:[%s1075_s13 + $0x14] sm:$0xf] %vm538_vm3, %v851_v63  ;;  %v620_v7 = vsel %vm555_vm4, %v600_v1, 0.0  ;;  %552 = vst.msk [vmem:[%s1075_s13 + $0x34] sm:$0xf] %vm538_vm3, %v859_v16  ;;  %v577_v37 = vsel %vm555_vm4, %v1095_v31, 0.0  ;;  %v607_v38 = vmul.f32 %v459_v56, %v459_v56  ;;  %v608_v18 = vmul.f32 %v462_v9, %v462_v9 }
  0xed   : > { %v568_v10 = vadd.f32 %v567_v5, %v566_v4  ;;  %v621_v11 = vadd.f32 %v620_v7, %v619_v3  ;;  %v632_v41 = vsel %vm555_vm4, %v606_v23, 0.0  ;;  %v579_v42 = vsel %vm555_vm4, %v459_v56, 0.0 }
  0xee   : > { %v609_v45 = vmul.f32 %v1112_v49, %v1112_v49  ;;  %v634_v46 = vsel %vm555_vm4, %v607_v38, 0.0  ;;  %v581_v47 = vsel %vm555_vm4, %v462_v9, 0.0  ;;  %v583_v31 = vsel %vm555_vm4, %v1112_v49, 0.0 }
  0xef   : > { %v570_v17 = vadd.f32 %v569_v14, %v568_v10  ;;  %v623_v19 = vadd.f32 %v622_v13, %v621_v11  ;;  %v610_v51 = vmul.f32 %v891_v2, %v891_v2  ;;  %v636_v52 = vsel %vm555_vm4, %v608_v18, 0.0 }
  0xf0   : > { %v638_v55 = vsel %vm555_vm4, %v609_v45, 0.0  ;;  %v585_v56 = vsel %vm555_vm4, %v891_v2, 0.0 }
  0xf1   : > { %v625_v24 = vadd.f32 %v624_v20, %v623_v19  ;;  %v572_v25 = vadd.f32 %v571_v21, %v570_v17  ;;  %v640_v59 = vsel %vm555_vm4, %v610_v51, 0.0 }
  0xf3   : > { %v574_v29 = vadd.f32 %v573_v28, %v572_v25  ;;  %v627_v30 = vadd.f32 %v626_v27, %v625_v24 }
  0xf5   : > { %v576_v34 = vadd.f32 %v575_v32, %v574_v29  ;;  %v629_v35 = vadd.f32 %v628_v33, %v627_v30 }
  0xf7   : > { %v631_v39 = vadd.f32 %v630_v36, %v629_v35  ;;  %v578_v40 = vadd.f32 %v577_v37, %v576_v34 }
  0xf9   : > { %v580_v43 = vadd.f32 %v579_v42, %v578_v40  ;;  %v633_v44 = vadd.f32 %v632_v41, %v631_v39 }
  0xfb   : > { %v635_v48 = vadd.f32 %v634_v46, %v633_v44  ;;  %v582_v50 = vadd.f32 %v581_v47, %v580_v43 }
  0xfd   : > { %v584_v53 = vadd.f32 %v583_v31, %v582_v50  ;;  %v637_v54 = vadd.f32 %v636_v52, %v635_v48 }
  0xff   : > { %v586_v57 = vadd.f32 %v585_v56, %v584_v53  ;;  %v639_v58 = vadd.f32 %v638_v55, %v637_v54 }
 0x101   : > { %v587_v60 = vrot.slane %v586_v57, 4  ;;  %v641_v61 = vadd.f32 %v640_v59, %v639_v58 }
 0x103   : > { %v588_v62 = vadd.f32 %v587_v60, %v586_v57  ;;  %v642_v63 = vrot.slane %v641_v61, 4 }
 0x105   : > { %v589_v49 = vrot.slane %v588_v62, 2  ;;  %v643_v0 = vadd.f32 %v642_v63, %v641_v61 }
 0x107   : > { %v590_v1 = vadd.f32 %v589_v49, %v588_v62  ;;  %v644_v3 = vrot.slane %v643_v0, 2 }
 0x109   : > { %v591_v4 = vrot.slane %v590_v1, 1  ;;  %v645_v5 = vadd.f32 %v644_v3, %v643_v0 }
 0x10b   : > { %v592_v2 = vadd.f32 %v591_v4, %v590_v1  ;;  %v646_v6 = vrot.slane %v645_v5, 1 }
 0x10d   : > { %594 = vst.msk [vmem:[%s263_s16] sm:$0x1] %vm593_vm5, %v592_v2  ;;  %v647_v7 = vadd.f32 %v646_v6, %v645_v5 }
 0x10f   : > { %648 = vst.msk [vmem:[%s270_s24] sm:$0x1] %vm593_vm5, %v647_v7 }
 0x110 PF: > { %s15_s19 = sadd.s32 1, %s985_s19   ;;  %s1197_s15 = smov %s977_s17 }
 0x111   : > { %p12_p8 = scmp.ge.s32.totalorder %s15_s19, 6   ;;  %s1198_s16 = smov %s981_s18 }
 0x112   : > { %s1199_s17 = smov %s1202_s20  ;;  %s1200_s18 = smov %s1206_s21 }
 0x113   :  { %14 = sbr.rel (!%p12_p8) target bundleno = 3 (0x3), region = 82 }

// kernel: vgg16_forward.9
= control target key start
LH: loop header
LB: loop body
LE: loop exit
PB: predicated region body
PF: predicated region fallthrough
CT: control target
= control target key end

     0   :  { %s1802_s18 = smov 0   ;;  %s1804_s19 = smov 0   ;;  %s2794_s0 = inlined_call_operand.vmem [shape: bf16[4,128,32], index: 0, kind: input, shape index: {}]   ;;  %s2795_s1 = inlined_call_operand.vmem [shape: f32[1,32], index: 1, kind: input, shape index: {}]   ;;  %s2796_s2 = inlined_call_operand.vmem [shape: f32[1,32], index: 2, kind: input, shape index: {}]   ;;  %s2797_s3 = inlined_call_operand.vmem [shape: f32[1,32], index: 3, kind: input, shape index: {}]   ;;  %s2798_s4 = inlined_call_operand.vmem [shape: f32[1,32], index: 4, kind: input, shape index: {}]   ;;  %s2799_s5 = inlined_call_operand.vmem [shape: bf16[2,10,10,32], index: 5, kind: output, shape index: {}]  }
   0x1   :  { %s1806_s20 = smov 0   ;;  %s1808_s21 = smov 0  }
   0x2   :  { %s1810_s22 = smov 0  }
   0x3 LB: > { %s24_s23 = sadd.s32 1, %s1760_s20  ;;  %s27_s24 = sadd.s32 1, %s1764_s21  ;;  %s1768_s22 = sphi %s1810_s22, %s15_s22   ;;  %s1764_s21 = sphi %s1808_s21, %s2960_s21   ;;  %s1760_s20 = sphi %s1806_s20, %s2959_s20   ;;  %s1756_s19 = sphi %s1804_s19, %s2958_s19   ;;  %s1752_s18 = sphi %s1802_s18, %s2957_s18  }
   0x4   : > { %p25_p0 = scmp.ge.s32.totalorder %s24_s23, 2  ;;  %p1482_p1 = scmp.ge.s32.totalorder %s1768_s22, 1 }
   0x5   : > { %p207_p2 = scmp.lt.s32.totalorder %s1768_s22, 5 }
   0x6   : > { %s2962_s23 = smov (%p25_p0, %s24_s23), 0  ;;  %s2964_s24 = smov (!%p25_p0, %s27_s24), %s1764_s21 }
   0x7   : > { %p208_p3 = pnand %p1482_p1, %p207_p2  ;;  %p29_p4 = scmp.ge.s32.totalorder %s2964_s24, 2 }
   0x9   : > { %s2966_s24 = smov (%p29_p4, %s2964_s24), 0  ;;  %211 = sbr.rel (%p208_p3) target bundleno = 199 (0xc7), region = 40 }
   0xe   : > { %p246_p5 = scmp.lt.s32.totalorder %s1756_s19, 1  ;;  %v252_v0 = vld [vmem:[%s2795_s1] sm:$0x1]  ;;  %s1483_s29 = sshll.u32 %s1756_s19, 1  ;;  %v299_v8 = vlaneseq  ;;  %vm1286_vm0 = vcmask 1042434   ;;  %vm1288_vm1 = vcmask 1043459  }
   0xf   : > { %v254_v1 = vld [vmem:[%s2796_s2] sm:$0x1]  ;;  %v253_v2 = vmul.f32 0.001953125, %v252_v0  ;;  %s238_s6 = sadd.s32 %s1752_s18, %s1483_s29  ;;  %vm1290_vm2 = vcmask 1044484   ;;  %vm1292_vm3 = vcmask 1045509   ;;  %vm1294_vm4 = vcmask 1046534  }
  0x10   : > { %v255_v3 = vmul.f32 0.001953125, %v254_v1  ;;  %s2968_s19 = smov (!%p246_p5, %s1756_s19), 1  ;;  %p239_p6 = scmp.lt.s32.totalorder %s238_s6, 3  ;;  %v1846_v9 = vshrl.u32 %v299_v8, 7  ;;  %v259_v10 = vld [vmem:[%s2797_s3] sm:$0x1] }
  0x11   : > { %v256_v4 = vmul.f32 %v253_v2, %v253_v2  ;;  %s1621_s30 = smul.u32 80, %s2968_s19  ;;  %v263_v16 = vld [vmem:[%s2798_s4] sm:$0x1]  ;;  %vm1296_vm5 = vcmask 1047559   ;;  %vm1324_vm6 = vcmask 1040384   ;;  %p1551_p7 = scmp.ne.s32.totalorder %s1752_s18, 0 }
  0x12   : > { %s2970_s6 = smov (!%p239_p6, %s238_s6), 3  ;;  %v1858_v12 = vsub.s32 0, %v1846_v9 }
  0x13   : > { %v257_v5 = vsub.f32 %v255_v3, %v256_v4  ;;  %s1844_s9 = scalar_lea.vmem %s2799_s5, %s1621_s30  ;;  %s1572_s10 = sshll.u32 %s2970_s6, 6 }
  0x14   : > { %s1851_s13 = scalar_lea.vmem %s2794_s0, %s1572_s10  ;;  %2835 = vst [vmem:[#allocation2_spill] sm:$0xff] %v1858_v12 }
  0x15   : > { %v258_v6 = vmax.f32 %v257_v5, 0.0  ;;  %v1583_v11 = vld [vmem:[%s1851_s13] sm:$0xff]   ;;  %v1614_v14 = vld [vmem:[%s1851_s13 + $0x8] sm:$0xff]   ;;  %v1615_v18 = vld [vmem:[%s1851_s13 + $0x10] sm:$0xff]  }
  0x16   : > { %v1584_v17 = vunpack.c.l.bf16 %v1583_v11  ;;  %v1585_v20 = vunpack.c.h.bf16 %v1583_v11  ;;  %v1588_v21 = vunpack.c.l.bf16 %v1614_v14  ;;  %v1616_v22 = vld [vmem:[%s1851_s13 + $0x18] sm:$0xff]   ;;  %v1589_v24 = vunpack.c.h.bf16 %v1614_v14  ;;  %v1617_v29 = vld [vmem:[%s1851_s13 + $0x20] sm:$0xff]   ;;  %v1618_v34 = vld [vmem:[%s1851_s13 + $0x28] sm:$0xff]  }
  0x17   : > { %v260_v7 = vadd.f32 1e-05, %v258_v6  ;;  %v1592_v26 = vunpack.c.l.bf16 %v1615_v18  ;;  %v1593_v27 = vunpack.c.h.bf16 %v1615_v18  ;;  %v1596_v28 = vunpack.c.l.bf16 %v1616_v22  ;;  %v1619_v40 = vld [vmem:[%s1851_s13 + $0x30] sm:$0xff]   ;;  %v1620_v44 = vld [vmem:[%s1851_s13 + $0x38] sm:$0xff]  }
  0x18   : > { %v1597_v33 = vunpack.c.h.bf16 %v1616_v22  ;;  %v1600_v36 = vunpack.c.l.bf16 %v1617_v29  ;;  %v1601_v39 = vunpack.c.h.bf16 %v1617_v29  ;;  %v1604_v43 = vunpack.c.l.bf16 %v1618_v34 }
  0x19   : > { %1664 = vrsqrt.f32 %v260_v7  ;;  %v1605_v48 = vunpack.c.h.bf16 %v1618_v34  ;;  %v1608_v51 = vunpack.c.l.bf16 %v1619_v40  ;;  %v1609_v52 = vunpack.c.h.bf16 %v1619_v40 }
  0x1a   : > { %v1612_v55 = vunpack.c.l.bf16 %v1620_v44  ;;  %v1613_v63 = vunpack.c.h.bf16 %v1620_v44 }
  0x26   : > { %v1665_v13 = vpop.eup %1664 }
  0x27   : > { %v262_v15 = vmul.f32 %v1665_v13, %v259_v10 }
  0x29   : > { %v264_v19 = vmul.f32 %v262_v15, %v253_v2  ;;  %v302_v23 = vrot.slane %v262_v15, %v1858_v12 }
  0x2b   : > { %v265_v25 = vsub.f32 %v263_v16, %v264_v19  ;;  %v304_v30 = vmul.f32 %v1584_v17, %v302_v23  ;;  %v305_v31 = vmul.f32 %v1585_v20, %v302_v23  ;;  %v306_v32 = vmul.f32 %v1588_v21, %v302_v23 }
  0x2c   : > { %v307_v35 = vmul.f32 %v1589_v24, %v302_v23  ;;  %v308_v37 = vmul.f32 %v1592_v26, %v302_v23  ;;  %v309_v41 = vmul.f32 %v1593_v27, %v302_v23  ;;  %v310_v42 = vmul.f32 %v1596_v28, %v302_v23 }
  0x2d   : > { %v324_v38 = vrot.slane %v265_v25, %v1858_v12  ;;  %v311_v49 = vmul.f32 %v1597_v33, %v302_v23  ;;  %v312_v53 = vmul.f32 %v1600_v36, %v302_v23  ;;  %v313_v56 = vmul.f32 %v1601_v39, %v302_v23 }
  0x2e   : > { %v314_v59 = vmul.f32 %v1604_v43, %v302_v23  ;;  %v315_v0 = vmul.f32 %v1605_v48, %v302_v23  ;;  %v316_v3 = vmul.f32 %v1608_v51, %v302_v23  ;;  %v317_v4 = vmul.f32 %v1609_v52, %v302_v23 }
  0x2f   : > { %v1872_v45 = vadd.f32 %v324_v38, %v304_v30  ;;  %v1874_v46 = vadd.f32 %v324_v38, %v305_v31  ;;  %v1876_v47 = vadd.f32 %v324_v38, %v306_v32  ;;  %v1878_v50 = vadd.f32 %v324_v38, %v307_v35 }
  0x30   : > { %v1880_v54 = vadd.f32 %v324_v38, %v308_v37  ;;  %v1882_v57 = vadd.f32 %v324_v38, %v309_v41  ;;  %v1884_v58 = vadd.f32 %v324_v38, %v310_v42  ;;  %v1889_v1 = vadd.f32 %v324_v38, %v311_v49 }
  0x31   : > { %v342_v60 = vmin.f32 %v1872_v45, 30.0  ;;  %v343_v61 = vmin.f32 %v1874_v46, 30.0  ;;  %v344_v62 = vmin.f32 %v1876_v47, 30.0  ;;  %v345_v2 = vmin.f32 %v1878_v50, 30.0 }
  0x32   : > { %v1892_v5 = vadd.f32 %v324_v38, %v312_v53  ;;  %v346_v6 = vmin.f32 %v1880_v54, 30.0  ;;  %v318_v7 = vmul.f32 %v1612_v55, %v302_v23  ;;  %v1895_v8 = vadd.f32 %v324_v38, %v313_v56 }
  0x33   : > { %v347_v10 = vmin.f32 %v1882_v57, 30.0  ;;  %v348_v11 = vmin.f32 %v1884_v58, 30.0  ;;  %v1899_v13 = vadd.f32 %v324_v38, %v314_v59  ;;  %v358_v14 = vmul.f32 1.442695, %v342_v60 }
  0x34   : > { %v360_v15 = vmul.f32 1.442695, %v343_v61  ;;  %v362_v16 = vmul.f32 1.442695, %v344_v62  ;;  %v319_v17 = vmul.f32 %v1613_v63, %v302_v23  ;;  %v1901_v18 = vadd.f32 %v324_v38, %v315_v0 }
  0x35   : > { %v349_v19 = vmin.f32 %v1889_v1, 30.0  ;;  %v364_v20 = vmul.f32 1.442695, %v345_v2  ;;  %v1904_v21 = vadd.f32 %v324_v38, %v316_v3  ;;  %v350_v22 = vmin.f32 %v1892_v5, 30.0 }
  0x36   : > { %1666 = vpow2.f32 %v358_v14  ;;  %v366_v24 = vmul.f32 1.442695, %v346_v6  ;;  %v1907_v25 = vadd.f32 %v324_v38, %v317_v4  ;;  %v351_v26 = vmin.f32 %v1895_v8, 30.0 }
  0x37   : > { %1668 = vpow2.f32 %v360_v15  ;;  %v368_v27 = vmul.f32 1.442695, %v347_v10  ;;  %v1910_v28 = vadd.f32 %v324_v38, %v318_v7  ;;  %v352_v23 = vmin.f32 %v1899_v13, 30.0 }
  0x38   : > { %1670 = vpow2.f32 %v362_v16  ;;  %v370_v29 = vmul.f32 1.442695, %v348_v11  ;;  %v1913_v30 = vadd.f32 %v324_v38, %v319_v17  ;;  %v353_v31 = vmin.f32 %v1901_v18, 30.0 }
  0x39   : > { %1672 = vpow2.f32 %v364_v20  ;;  %v372_v32 = vmul.f32 1.442695, %v349_v19  ;;  %v354_v33 = vmin.f32 %v1904_v21, 30.0  ;;  %v374_v34 = vmul.f32 1.442695, %v350_v22 }
  0x3a   : > { %1674 = vpow2.f32 %v366_v24  ;;  %v355_v35 = vmin.f32 %v1907_v25, 30.0  ;;  %v376_v36 = vmul.f32 1.442695, %v351_v26  ;;  %v356_v37 = vmin.f32 %v1910_v28, 30.0 }
  0x3b   : > { %1676 = vpow2.f32 %v368_v27  ;;  %v378_v39 = vmul.f32 1.442695, %v352_v23  ;;  %v357_v40 = vmin.f32 %v1913_v30, 30.0  ;;  %v380_v38 = vmul.f32 1.442695, %v353_v31 }
  0x3c   : > { %1678 = vpow2.f32 %v370_v29  ;;  %v382_v41 = vmul.f32 1.442695, %v354_v33  ;;  %v384_v42 = vmul.f32 1.442695, %v355_v35  ;;  %v386_v43 = vmul.f32 1.442695, %v356_v37 }
  0x3d   : > { %1680 = vpow2.f32 %v372_v32  ;;  %v388_v44 = vmul.f32 1.442695, %v357_v40  ;;  %v1770_v11 = vmov 1983009808  }
  0x3e   : > { %1682 = vpow2.f32 %v374_v34  ;;  %v1930_v14 = vunpack.c.l.s4 %v1770_v11 }
  0x3f   : > { %1684 = vpow2.f32 %v376_v36 }
  0x40   : > { %1686 = vpow2.f32 %v378_v39 }
  0x41   : > { %1688 = vpow2.f32 %v380_v38 }
  0x42   : > { %1690 = vpow2.f32 %v382_v41 }
  0x43   : > { %v1667_v48 = vpop.eup %1666  ;;  %1692 = vpow2.f32 %v384_v42 }
  0x44   : > { %v1669_v49 = vpop.eup %1668  ;;  %1694 = vpow2.f32 %v386_v43  ;;  %v390_v51 = vadd.f32 2.0, %v1667_v48 }
  0x45   : > { %v1671_v52 = vpop.eup %1670  ;;  %1696 = vpow2.f32 %v388_v44  ;;  %v391_v53 = vadd.f32 2.0, %v1669_v49 }
  0x46   : > { %v1673_v55 = vpop.eup %1672  ;;  %v392_v56 = vadd.f32 2.0, %v1671_v52  ;;  %v1920_v59 = vmul.f32 %v1667_v48, %v390_v51 }
  0x47   : > { %v1675_v60 = vpop.eup %1674  ;;  %v393_v61 = vadd.f32 2.0, %v1673_v55  ;;  %v1922_v62 = vmul.f32 %v1669_v49, %v391_v53 }
  0x48   : > { %v1677_v63 = vpop.eup %1676  ;;  %v394_v0 = vadd.f32 2.0, %v1675_v60  ;;  %v1924_v2 = vmul.f32 %v1671_v52, %v392_v56  ;;  %v422_v3 = vadd.f32 2.0, %v1920_v59 }
  0x49   : > { %v1679_v4 = vpop.eup %1678  ;;  %v395_v6 = vadd.f32 2.0, %v1677_v63  ;;  %v1927_v7 = vmul.f32 %v1673_v55, %v393_v61  ;;  %v423_v10 = vadd.f32 2.0, %v1922_v62 }
  0x4a   : > { %v1681_v15 = vpop.eup %1680  ;;  %v396_v16 = vadd.f32 2.0, %v1679_v4  ;;  %v1932_v17 = vmul.f32 %v1675_v60, %v394_v0  ;;  %v424_v19 = vadd.f32 2.0, %v1924_v2  ;;  %1698 = vrcp.f32 %v422_v3 }
  0x4b   : > { %v1683_v20 = vpop.eup %1682  ;;  %v397_v22 = vadd.f32 2.0, %v1681_v15  ;;  %v1935_v24 = vmul.f32 %v1677_v63, %v395_v6  ;;  %v425_v26 = vadd.f32 2.0, %v1927_v7  ;;  %1700 = vrcp.f32 %v423_v10 }
  0x4c   : > { %v1685_v27 = vpop.eup %1684  ;;  %v398_v23 = vadd.f32 2.0, %v1683_v20  ;;  %v1938_v29 = vmul.f32 %v1679_v4, %v396_v16  ;;  %v426_v31 = vadd.f32 2.0, %v1932_v17  ;;  %1702 = vrcp.f32 %v424_v19 }
  0x4d   : > { %v1687_v32 = vpop.eup %1686  ;;  %v399_v33 = vadd.f32 2.0, %v1685_v27  ;;  %v1941_v34 = vmul.f32 %v1681_v15, %v397_v22  ;;  %v427_v35 = vadd.f32 2.0, %v1935_v24  ;;  %1704 = vrcp.f32 %v425_v26 }
  0x4e   : > { %v1689_v36 = vpop.eup %1688  ;;  %v400_v37 = vadd.f32 2.0, %v1687_v32  ;;  %v1944_v39 = vmul.f32 %v1683_v20, %v398_v23  ;;  %v428_v40 = vadd.f32 2.0, %v1938_v29  ;;  %1706 = vrcp.f32 %v426_v31 }
  0x4f   : > { %v1691_v38 = vpop.eup %1690  ;;  %v401_v41 = vadd.f32 2.0, %v1689_v36  ;;  %v1947_v42 = vmul.f32 %v1685_v27, %v399_v33  ;;  %v429_v43 = vadd.f32 2.0, %v1941_v34  ;;  %1708 = vrcp.f32 %v427_v35 }
  0x50   : > { %v1693_v44 = vpop.eup %1692  ;;  %v402_v48 = vadd.f32 2.0, %v1691_v38  ;;  %v1950_v49 = vmul.f32 %v1687_v32, %v400_v37  ;;  %v430_v51 = vadd.f32 2.0, %v1944_v39  ;;  %1710 = vrcp.f32 %v428_v40 }
  0x51   : > { %v1695_v52 = vpop.eup %1694  ;;  %v403_v53 = vadd.f32 2.0, %v1693_v44  ;;  %v1953_v55 = vmul.f32 %v1689_v36, %v401_v41  ;;  %v431_v56 = vadd.f32 2.0, %v1947_v42  ;;  %1712 = vrcp.f32 %v429_v43 }
  0x52   : > { %v1697_v60 = vpop.eup %1696  ;;  %v404_v61 = vadd.f32 2.0, %v1695_v52  ;;  %v1956_v63 = vmul.f32 %v1691_v38, %v402_v48  ;;  %v432_v0 = vadd.f32 2.0, %v1950_v49  ;;  %1714 = vrcp.f32 %v430_v51 }
  0x53   : > { %v405_v3 = vadd.f32 2.0, %v1697_v60  ;;  %v1959_v4 = vmul.f32 %v1693_v44, %v403_v53  ;;  %v433_v6 = vadd.f32 2.0, %v1953_v55  ;;  %1716 = vrcp.f32 %v431_v56 }
  0x54   : > { %v1962_v10 = vmul.f32 %v1695_v52, %v404_v61  ;;  %v434_v11 = vadd.f32 2.0, %v1956_v63  ;;  %1718 = vrcp.f32 %v432_v0  ;;  %v505_v15 = vunpack.c.0.s8 %v1930_v14 }
  0x55   : > { %v1966_v16 = vmul.f32 %v1697_v60, %v405_v3  ;;  %v435_v19 = vadd.f32 2.0, %v1959_v4  ;;  %1720 = vrcp.f32 %v433_v6 }
  0x56   : > { %v436_v20 = vadd.f32 2.0, %v1962_v10  ;;  %1722 = vrcp.f32 %v434_v11  ;;  %v1973_v31 = vsub.s32 %v505_v15, %v1846_v9 }
  0x57   : > { %v1699_v22 = vpop.eup %1698  ;;  %v437_v26 = vadd.f32 2.0, %v1966_v16  ;;  %1724 = vrcp.f32 %v435_v19 }
  0x58   : > { %v1701_v27 = vpop.eup %1700  ;;  %1726 = vrcp.f32 %v436_v20  ;;  %v454_v23 = vmul.f32 %v1699_v22, %v1920_v59 }
  0x59   : > { %v1703_v14 = vpop.eup %1702  ;;  %1728 = vrcp.f32 %v437_v26  ;;  %v455_v32 = vmul.f32 %v1701_v27, %v1922_v62 }
  0x5a   : > { %v1705_v33 = vpop.eup %1704  ;;  %v456_v35 = vmul.f32 %v1703_v14, %v1924_v2  ;;  %v470_v36 = vmul.f32 %v454_v23, %v1872_v45 }
  0x5b   : > { %v1707_v37 = vpop.eup %1706  ;;  %v457_v40 = vmul.f32 %v1705_v33, %v1927_v7  ;;  %v471_v38 = vmul.f32 %v455_v32, %v1874_v46 }
  0x5c   : > { %v1709_v41 = vpop.eup %1708  ;;  %v458_v59 = vmul.f32 %v1707_v37, %v1932_v17  ;;  %v472_v9 = vmul.f32 %v456_v35, %v1876_v47  ;;  %v502_v43 = vcombine.high %v470_v36, %v470_v36  ;;  %v1983_v44 = vrot.slane %v470_v36, %v1973_v31 }
  0x5d   : > { %v1711_v62 = vpop.eup %1710  ;;  %v459_v48 = vmul.f32 %v1709_v41, %v1935_v24  ;;  %v473_v2 = vmul.f32 %v457_v40, %v1878_v50  ;;  %v519_v45 = vcombine.high %v471_v38, %v471_v38  ;;  %v1988_v51 = vrot.slane %v471_v38, %v1973_v31 }
  0x5e   : > { %2836 = vst [vmem:[#allocation3_spill] sm:$0xff] %v1983_v44  ;;  %v1713_v7 = vpop.eup %1712  ;;  %v460_v46 = vmul.f32 %v1711_v62, %v1938_v29  ;;  %v474_v17 = vmul.f32 %v458_v59, %v1880_v54  ;;  %v1993_v47 = vrot.slane %v502_v43, %v1973_v31  ;;  %v1997_v52 = vcombine.high %v1983_v44, %v1983_v44 }
  0x5f   : > { %v1715_v53 = vpop.eup %1714  ;;  %v461_v24 = vmul.f32 %v1713_v7, %v1941_v34  ;;  %v475_v50 = vmul.f32 %v459_v48, %v1882_v57  ;;  %v2002_v56 = vrot.slane %v519_v45, %v1973_v31  ;;  %v2006_v29 = vcombine.high %v1988_v51, %v1988_v51 }
  0x60   : > { %2837 = vst [vmem:[#allocation4_spill] sm:$0xff] %v1993_v47  ;;  %2838 = vst [vmem:[#allocation5_spill] sm:$0xff] %v1997_v52  ;;  %v1717_v54 = vpop.eup %1716  ;;  %v462_v60 = vmul.f32 %v1715_v53, %v1944_v39  ;;  %v476_v61 = vmul.f32 %v460_v46, %v1884_v58  ;;  %v2012_v0 = vcombine.high %v1993_v47, %v1993_v47 }
  0x61   : > { %v536_v3 = vcombine.high %v472_v9, %v472_v9  ;;  %v1719_v34 = vpop.eup %1718  ;;  %v463_v57 = vmul.f32 %v1717_v54, %v1947_v42  ;;  %v477_v6 = vmul.f32 %v461_v24, %v1889_v1  ;;  %v2018_v11 = vcombine.high %v2002_v56, %v2002_v56 }
  0x62   : > { %v2021_v15 = vrot.slane %v472_v9, %v1973_v31  ;;  %v1721_v39 = vpop.eup %1720  ;;  %v464_v58 = vmul.f32 %v1719_v34, %v1950_v49  ;;  %v478_v19 = vmul.f32 %v462_v60, %v1892_v5  ;;  %v553_v22 = vcombine.high %v473_v2, %v473_v2 }
  0x63   : > { %v2026_v20 = vrot.slane %v536_v3, %v1973_v31  ;;  %v1723_v26 = vpop.eup %1722  ;;  %v465_v42 = vmul.f32 %v1721_v39, %v1953_v55  ;;  %v479_v1 = vmul.f32 %v463_v57, %v1895_v8  ;;  %v2035_v23 = vrot.slane %v473_v2, %v1973_v31 }
  0x64   : > { %v2032_v27 = vcombine.high %v2021_v15, %v2021_v15  ;;  %v1725_v14 = vpop.eup %1724  ;;  %v466_v49 = vmul.f32 %v1723_v26, %v1956_v63  ;;  %v480_v5 = vmul.f32 %v464_v58, %v1899_v13  ;;  %v2044_v55 = vrot.slane %v553_v22, %v1973_v31 }
  0x65   : > { %v2041_v32 = vcombine.high %v2026_v20, %v2026_v20  ;;  %v1727_v8 = vpop.eup %1726  ;;  %v467_v33 = vmul.f32 %v1725_v14, %v1959_v4  ;;  %v481_v35 = vmul.f32 %v465_v42, %v1901_v18  ;;  %v2050_v36 = vcombine.high %v2035_v23, %v2035_v23 }
  0x66   : > { %v570_v37 = vcombine.high %v474_v17, %v474_v17  ;;  %v1729_v63 = vpop.eup %1728  ;;  %v468_v13 = vmul.f32 %v1727_v8, %v1962_v10  ;;  %v482_v40 = vmul.f32 %v466_v49, %v1904_v21  ;;  %v2056_v38 = vcombine.high %v2044_v55, %v2044_v55 }
  0x67   : > { %v2059_v41 = vrot.slane %v474_v17, %v1973_v31  ;;  %v469_v4 = vmul.f32 %v1729_v63, %v1966_v16  ;;  %v483_v18 = vmul.f32 %v467_v33, %v1907_v25  ;;  %v587_v9 = vcombine.high %v475_v50, %v475_v50 }
  0x68   : > { %v2064_v59 = vrot.slane %v570_v37, %v1973_v31  ;;  %v484_v43 = vmul.f32 %v468_v13, %v1910_v28  ;;  %v2072_v10 = vrot.slane %v475_v50, %v1973_v31  ;;  %v604_v62 = vcombine.high %v476_v61, %v476_v61 }
  0x69   : > { %v2069_v21 = vcombine.high %v2059_v41, %v2059_v41  ;;  %v485_v48 = vmul.f32 %v469_v4, %v1913_v30  ;;  %v2080_v25 = vrot.slane %v587_v9, %v1973_v31  ;;  %v2083_v2 = vrot.slane %v476_v61, %v1973_v31 }
  0x6a   : > { %v2077_v16 = vcombine.high %v2064_v59, %v2064_v59  ;;  %v2087_v28 = vcombine.high %v2072_v10, %v2072_v10  ;;  %v2090_v45 = vrot.slane %v604_v62, %v1973_v31  ;;  %v621_v7 = vcombine.high %v477_v6, %v477_v6 }
  0x6b   : > { %v2093_v30 = vrot.slane %v477_v6, %v1973_v31  ;;  %v2097_v46 = vcombine.high %v2080_v25, %v2080_v25  ;;  %v2101_v17 = vcombine.high %v2083_v2, %v2083_v2  ;;  %v638_v53 = vcombine.high %v478_v19, %v478_v19 }
  0x6c   : > { %v2104_v24 = vrot.slane %v478_v19, %v1973_v31  ;;  %v2108_v50 = vcombine.high %v2090_v45, %v2090_v45  ;;  %v2111_v54 = vrot.slane %v621_v7, %v1973_v31  ;;  %v655_v61 = vcombine.high %v479_v1, %v479_v1 }
  0x6d   : > { %v2115_v60 = vcombine.high %v2093_v30, %v2093_v30  ;;  %v2118_v3 = vrot.slane %v638_v53, %v1973_v31  ;;  %v2125_v57 = vrot.slane %v479_v1, %v1973_v31  ;;  %v672_v6 = vcombine.high %v480_v5, %v480_v5 }
  0x6e   : > { %v2122_v34 = vcombine.high %v2104_v24, %v2104_v24  ;;  %v2129_v39 = vcombine.high %v2111_v54, %v2111_v54  ;;  %v2132_v58 = vrot.slane %v655_v61, %v1973_v31  ;;  %v2135_v19 = vrot.slane %v480_v5, %v1973_v31 }
  0x6f   : > { %v689_v22 = vcombine.high %v481_v35, %v481_v35  ;;  %v2139_v26 = vcombine.high %v2118_v3, %v2118_v3  ;;  %v2143_v42 = vcombine.high %v2125_v57, %v2125_v57  ;;  %v2146_v1 = vrot.slane %v672_v6, %v1973_v31 }
  0x70   : > { %2839 = vst [vmem:[#allocation6_spill] sm:$0xff] %v2135_v19  ;;  %v2149_v14 = vrot.slane %v481_v35, %v1973_v31  ;;  %v2153_v49 = vcombine.high %v2132_v58, %v2132_v58  ;;  %v2157_v5 = vcombine.high %v2135_v19, %v2135_v19  ;;  %v706_v33 = vcombine.high %v482_v40, %v482_v40 }
  0x71   : > { %v2160_v8 = vrot.slane %v689_v22, %v1973_v31  ;;  %v2164_v37 = vcombine.high %v2146_v1, %v2146_v1  ;;  %v2171_v63 = vrot.slane %v482_v40, %v1973_v31  ;;  %v723_v13 = vcombine.high %v483_v18, %v483_v18 }
  0x72   : > { %2840 = vst [vmem:[#allocation7_spill] sm:$0xff] %v2149_v14  ;;  %2841 = vst [vmem:[#allocation8_spill] sm:$0xff] %v2157_v5  ;;  %v2168_v35 = vcombine.high %v2149_v14, %v2149_v14  ;;  %v2178_v9 = vrot.slane %v706_v33, %v1973_v31  ;;  %v2181_v62 = vrot.slane %v483_v18, %v1973_v31 }
  0x73   : > { %2842 = vst [vmem:[#allocation9_spill] sm:$0xff] %v2160_v8  ;;  %2843 = vst [vmem:[#allocation10_spill] sm:$0xff] %v2164_v37  ;;  %v2175_v4 = vcombine.high %v2160_v8, %v2160_v8  ;;  %v740_v7 = vcombine.high %v484_v43, %v484_v43  ;;  %v2185_v53 = vcombine.high %v2171_v63, %v2171_v63 }
  0x74   : > { %2844 = vst [vmem:[#allocation11_spill] sm:$0xff] %v2171_v63  ;;  %2845 = vst [vmem:[#allocation12_spill] sm:$0xff] %v2178_v9  ;;  %v2188_v61 = vrot.slane %v723_v13, %v1973_v31  ;;  %v2191_v40 = vrot.slane %v484_v43, %v1973_v31  ;;  %v757_v6 = vcombine.high %v485_v48, %v485_v48  ;;  %v2856_v5 = vmov %v2181_v62 }
  0x75   : > { %2846 = vst [vmem:[#allocation13_spill] sm:$0xff] %v2181_v62  ;;  %v2195_v22 = vcombine.high %v2178_v9, %v2178_v9  ;;  %v2199_v18 = vcombine.high %v2181_v62, %v2181_v62  ;;  %v2202_v33 = vrot.slane %v740_v7, %v1973_v31  ;;  %v2205_v12 = vrot.slane %v485_v48, %v1973_v31 }
  0x76   : > { %2847 = vst [vmem:[#allocation14_spill] sm:$0xff] %v2188_v61  ;;  %2848 = vst [vmem:[#allocation15_spill] sm:$0xff] %v2191_v40  ;;  %v2209_v13 = vcombine.high %v2188_v61, %v2188_v61  ;;  %v2213_v43 = vcombine.high %v2191_v40, %v2191_v40  ;;  %v2857_v37 = vmov %v2188_v61 }
  0x77   : > { %2849 = vst [vmem:[#allocation16_spill] sm:$0xff] %v2195_v22  ;;  %2850 = vst [vmem:[#allocation17_spill] sm:$0xff] %v2199_v18  ;;  %v2216_v22 = vrot.slane %v757_v6, %v1973_v31  ;;  %v2221_v7 = vcombine.high %v2202_v33, %v2202_v33  ;;  %v2225_v48 = vcombine.high %v2205_v12, %v2205_v12  ;;  %v2862_v18 = vmov %v1983_v44 }
  0x78   : > { %2851 = vst [vmem:[#allocation18_spill] sm:$0xff] %v2209_v13  ;;  %2852 = vst [vmem:[#allocation19_spill] sm:$0xff] %v2213_v43  ;;  %v2858_v14 = vmov %v2209_v13  ;;  %v2863_v6 = vrot.slane %v2862_v18, 9  ;;  %v2864_v44 = vmov %v1997_v52  ;;  %v2869_v31 = vrot.slane %v1988_v51, 9 }
  0x79   : > { %2853 = vst [vmem:[#allocation20_spill] sm:$0xff] %v2221_v7  ;;  %2854 = vst [vmem:[#allocation21_spill] sm:$0xff] %v2225_v48  ;;  %v2231_v43 = vcombine.high %v2216_v22, %v2216_v22  ;;  %v2860_v63 = vmov %v2221_v7  ;;  %v2861_v9 = vmov %v2225_v48  ;;  %v2865_v40 = vrot.slane %v2864_v44, 9 }
  0x7a   : > { %v2297_v62 = vmax.f32 %v2862_v18, %v2863_v6  ;;  %v2866_v48 = vmov %v1993_v47  ;;  %v2868_v47 = vrot.slane %v2012_v0, 9  ;;  %v2317_v18 = vmax.f32 %v1988_v51, %v2869_v31 }
  0x7b   : > { %v2302_v7 = vmax.f32 %v2864_v44, %v2865_v40  ;;  %v2867_v61 = vrot.slane %v2866_v48, 9  ;;  %v2870_v6 = vrot.slane %v2006_v29, 9  ;;  %v2871_v40 = vrot.slane %v2002_v56, 9 }
  0x7c   : > { %v2312_v52 = vmax.f32 %v2012_v0, %v2868_v47  ;;  %v2873_v0 = vrot.slane %v2021_v15, 9  ;;  %v2874_v31 = vrot.slane %v2032_v27, 9 }
  0x7d   : > { %v2307_v13 = vmax.f32 %v2866_v48, %v2867_v61  ;;  %v2322_v44 = vmax.f32 %v2006_v29, %v2870_v6  ;;  %v2327_v61 = vmax.f32 %v2002_v56, %v2871_v40  ;;  %v2872_v48 = vrot.slane %v2018_v11, 9 }
  0x7e   : > { %v2855_v19 = vld [vmem:[#allocation16_spill] sm:$0xff]  ;;  %v2337_v51 = vmax.f32 %v2021_v15, %v2873_v0  ;;  %v2342_v29 = vmax.f32 %v2032_v27, %v2874_v31  ;;  %v2875_v6 = vrot.slane %v2026_v20, 9  ;;  %v2876_v40 = vrot.slane %v2041_v32, 9 }
  0x7f   : > { %v2859_v8 = vld [vmem:[#allocation19_spill] sm:$0xff]  ;;  %v2332_v47 = vmax.f32 %v2018_v11, %v2872_v48  ;;  %v2877_v48 = vrot.slane %v2035_v23, 9  ;;  %v2878_v0 = vrot.slane %v2050_v36, 9  ;;  %v2879_v31 = vrot.slane %v2044_v55, 9 }
  0x80   : > { %v2347_v56 = vmax.f32 %v2026_v20, %v2875_v6  ;;  %v2352_v11 = vmax.f32 %v2041_v32, %v2876_v40  ;;  %v2880_v6 = vrot.slane %v2056_v38, 9  ;;  %v2881_v40 = vrot.slane %v2059_v41, 9 }
  0x81   : > { %v2357_v15 = vmax.f32 %v2035_v23, %v2877_v48  ;;  %v2362_v27 = vmax.f32 %v2050_v36, %v2878_v0  ;;  %v2367_v20 = vmax.f32 %v2044_v55, %v2879_v31  ;;  %v2882_v48 = vrot.slane %v2069_v21, 9 }
  0x82   : > { %v2372_v32 = vmax.f32 %v2056_v38, %v2880_v6  ;;  %v2377_v23 = vmax.f32 %v2059_v41, %v2881_v40  ;;  %v2883_v0 = vrot.slane %v2064_v59, 9  ;;  %v2884_v31 = vrot.slane %v2077_v16, 9 }
  0x83   : > { %v2382_v36 = vmax.f32 %v2069_v21, %v2882_v48  ;;  %v2885_v6 = vrot.slane %v2072_v10, 9  ;;  %v2886_v40 = vrot.slane %v2087_v28, 9  ;;  %v2887_v48 = vrot.slane %v2080_v25, 9 }
  0x84   : > { %v2387_v55 = vmax.f32 %v2064_v59, %v2883_v0  ;;  %v2392_v38 = vmax.f32 %v2077_v16, %v2884_v31  ;;  %v2888_v0 = vrot.slane %v2097_v46, 9  ;;  %v2889_v31 = vrot.slane %v2083_v2, 9 }
  0x85   : > { %v2397_v41 = vmax.f32 %v2072_v10, %v2885_v6  ;;  %v2402_v21 = vmax.f32 %v2087_v28, %v2886_v40  ;;  %v2407_v59 = vmax.f32 %v2080_v25, %v2887_v48  ;;  %v2890_v6 = vrot.slane %v2101_v17, 9 }
  0x86   : > { %v2412_v16 = vmax.f32 %v2097_v46, %v2888_v0  ;;  %v2417_v10 = vmax.f32 %v2083_v2, %v2889_v31  ;;  %v2891_v40 = vrot.slane %v2090_v45, 9  ;;  %v2892_v48 = vrot.slane %v2108_v50, 9 }
  0x87   : > { %v2422_v28 = vmax.f32 %v2101_v17, %v2890_v6  ;;  %v2893_v0 = vrot.slane %v2093_v30, 9  ;;  %v2894_v31 = vrot.slane %v2115_v60, 9  ;;  %v2895_v6 = vrot.slane %v2111_v54, 9 }
  0x88   : > { %v2427_v25 = vmax.f32 %v2090_v45, %v2891_v40  ;;  %v2432_v46 = vmax.f32 %v2108_v50, %v2892_v48  ;;  %v2896_v40 = vrot.slane %v2129_v39, 9  ;;  %v2897_v48 = vrot.slane %v2104_v24, 9 }
  0x89   : > { %v2437_v2 = vmax.f32 %v2093_v30, %v2893_v0  ;;  %v2442_v17 = vmax.f32 %v2115_v60, %v2894_v31  ;;  %v2447_v45 = vmax.f32 %v2111_v54, %v2895_v6  ;;  %v2898_v0 = vrot.slane %v2122_v34, 9 }
  0x8a   : > { %v2452_v50 = vmax.f32 %v2129_v39, %v2896_v40  ;;  %v2457_v30 = vmax.f32 %v2104_v24, %v2897_v48  ;;  %v2899_v31 = vrot.slane %v2118_v3, 9  ;;  %v2900_v6 = vrot.slane %v2139_v26, 9 }
  0x8b   : > { %v2462_v60 = vmax.f32 %v2122_v34, %v2898_v0  ;;  %v2902_v40 = vrot.slane %v2125_v57, 9  ;;  %v2904_v48 = vrot.slane %v2143_v42, 9  ;;  %v2906_v0 = vrot.slane %v2132_v58, 9 }
  0x8c   : > { %v2467_v54 = vmax.f32 %v2118_v3, %v2899_v31  ;;  %v2472_v39 = vmax.f32 %v2139_v26, %v2900_v6  ;;  %v2908_v31 = vrot.slane %v2153_v49, 9  ;;  %v2910_v6 = vld [vmem:[#allocation6_spill] sm:$0xff] }
  0x8d   : > { %v2477_v24 = vmax.f32 %v2125_v57, %v2902_v40  ;;  %v2482_v34 = vmax.f32 %v2143_v42, %v2904_v48  ;;  %v2487_v3 = vmax.f32 %v2132_v58, %v2906_v0  ;;  %v2912_v40 = vld [vmem:[#allocation8_spill] sm:$0xff]  ;;  %v2914_v48 = vrot.slane %v2146_v1, 9  ;;  %v2915_v0 = vld [vmem:[#allocation10_spill] sm:$0xff] }
  0x8e   : > { %2901 = vst [vmem:[#allocation16_spill] sm:$0xff] %v2472_v39  ;;  %v2492_v26 = vmax.f32 %v2153_v49, %v2908_v31  ;;  %v2911_v39 = vrot.slane %v2910_v6, 9  ;;  %v2918_v31 = vld [vmem:[#allocation7_spill] sm:$0xff] }
  0x8f   : > { %2903 = vst [vmem:[#allocation13_spill] sm:$0xff] %v2477_v24  ;;  %2905 = vst [vmem:[#allocation14_spill] sm:$0xff] %v2482_v34  ;;  %v2913_v24 = vrot.slane %v2912_v40, 9  ;;  %v2507_v58 = vmax.f32 %v2146_v1, %v2914_v48  ;;  %v2924_v48 = vrot.slane %v2175_v4, 9 }
  0x90   : > { %2907 = vst [vmem:[#allocation18_spill] sm:$0xff] %v2487_v3  ;;  %2909 = vst [vmem:[#allocation19_spill] sm:$0xff] %v2492_v26  ;;  %v2497_v57 = vmax.f32 %v2910_v6, %v2911_v39  ;;  %v2916_v3 = vrot.slane %v2915_v0, 9  ;;  %v2919_v26 = vrot.slane %v2918_v31, 9  ;;  %v2920_v6 = vrot.slane %v2168_v35, 9 }
  0x91   : > { %v2502_v42 = vmax.f32 %v2912_v40, %v2913_v24  ;;  %v2922_v40 = vld [vmem:[#allocation9_spill] sm:$0xff] }
  0x92   : > { %v2512_v49 = vmax.f32 %v2915_v0, %v2916_v3  ;;  %v2517_v39 = vmax.f32 %v2918_v31, %v2919_v26  ;;  %v2522_v24 = vmax.f32 %v2168_v35, %v2920_v6  ;;  %v2923_v34 = vrot.slane %v2922_v40, 9  ;;  %v2925_v0 = vld [vmem:[#allocation11_spill] sm:$0xff]  ;;  %v2929_v6 = vld [vmem:[#allocation12_spill] sm:$0xff] }
  0x93   : > { %v2532_v3 = vmax.f32 %v2175_v4, %v2924_v48  ;;  %v2928_v31 = vrot.slane %v2185_v53, 9  ;;  %v2933_v48 = vrot.slane %v2856_v5, 9 }
  0x94   : > { %2917 = vst [vmem:[#allocation20_spill] sm:$0xff] %v2512_v49  ;;  %2921 = vst [vmem:[#allocation21_spill] sm:$0xff] %v2522_v24  ;;  %v2527_v1 = vmax.f32 %v2922_v40, %v2923_v34  ;;  %v2926_v49 = vrot.slane %v2925_v0, 9  ;;  %v2930_v24 = vrot.slane %v2929_v6, 9  ;;  %v2931_v40 = vrot.slane %v2855_v19, 9 }
  0x95   : > { %v2542_v35 = vmax.f32 %v2185_v53, %v2928_v31  ;;  %v2936_v31 = vrot.slane %v2857_v37, 9 }
  0x96   : > { %v2537_v26 = vmax.f32 %v2925_v0, %v2926_v49  ;;  %v2547_v34 = vmax.f32 %v2929_v6, %v2930_v24  ;;  %v2552_v4 = vmax.f32 %v2855_v19, %v2931_v40  ;;  %v2557_v49 = vmax.f32 %v2856_v5, %v2933_v48  ;;  %v2934_v0 = vld [vmem:[#allocation17_spill] sm:$0xff]  ;;  %v2938_v40 = vld [vmem:[#allocation15_spill] sm:$0xff] }
  0x97   : > { %v2567_v24 = vmax.f32 %v2857_v37, %v2936_v31  ;;  %v2937_v6 = vrot.slane %v2858_v14, 9  ;;  %v2940_v48 = vrot.slane %v2859_v8, 9  ;;  %v2942_v31 = vrot.slane %v2860_v63, 9 }
  0x98   : > { %2927 = vst [vmem:[#allocation3_spill] sm:$0xff] %v2537_v26  ;;  %2932 = vst [vmem:[#allocation5_spill] sm:$0xff] %v2552_v4  ;;  %v2935_v26 = vrot.slane %v2934_v0, 9  ;;  %v2939_v4 = vrot.slane %v2938_v40, 9 }
  0x99   : > { %v2572_v19 = vmax.f32 %v2858_v14, %v2937_v6  ;;  %v2592_v14 = vmax.f32 %v2860_v63, %v2942_v31  ;;  %v2943_v6 = vrot.slane %v2205_v12, 9  ;;  %v1094_v31 = vmax.f32 %v2297_v62, %v2337_v51 }
  0x9a   : > { %v2562_v53 = vmax.f32 %v2934_v0, %v2935_v26  ;;  %v2577_v5 = vmax.f32 %v2938_v40, %v2939_v4  ;;  %v2582_v26 = vmax.f32 %v2859_v8, %v2940_v48  ;;  %v2941_v0 = vrot.slane %v2202_v33, 9 }
  0x9b   : > { %v2597_v4 = vmax.f32 %v2205_v12, %v2943_v6  ;;  %v2944_v40 = vrot.slane %v2861_v9, 9  ;;  %v2945_v48 = vrot.slane %v2216_v22, 9  ;;  %v1095_v12 = vmax.f32 %v2302_v7, %v2342_v29 }
  0x9c   : > { %v2587_v37 = vmax.f32 %v2202_v33, %v2941_v0  ;;  %v2946_v0 = vrot.slane %v2231_v43, 9  ;;  %v1097_v6 = vmax.f32 %v2312_v52, %v2352_v11  ;;  %v1101_v62 = vmax.f32 %v2332_v47, %v2372_v32  ;;  %v2949_v32 = vld [vmem:[#allocation13_spill] sm:$0xff] }
  0x9d   : > { %v2602_v8 = vmax.f32 %v2861_v9, %v2944_v40  ;;  %v2607_v33 = vmax.f32 %v2216_v22, %v2945_v48  ;;  %v1096_v9 = vmax.f32 %v2307_v13, %v2347_v56  ;;  %v1098_v22 = vmax.f32 %v2317_v18, %v2357_v15  ;;  %v2947_v15 = vld [vmem:[#allocation20_spill] sm:$0xff] }
  0x9e   : > { %v2612_v63 = vmax.f32 %v2231_v43, %v2946_v0  ;;  %v1099_v40 = vmax.f32 %v2322_v44, %v2362_v27  ;;  %v1100_v43 = vmax.f32 %v2327_v61, %v2367_v20  ;;  %v1102_v7 = vmax.f32 %v2377_v23, %v2417_v10  ;;  %v2948_v27 = vld [vmem:[#allocation16_spill] sm:$0xff] }
  0x9f   : > { %v1103_v13 = vmax.f32 %v2382_v36, %v2422_v28  ;;  %v1104_v52 = vmax.f32 %v2387_v55, %v2427_v25  ;;  %v1105_v18 = vmax.f32 %v2392_v38, %v2432_v46  ;;  %v1106_v44 = vmax.f32 %v2397_v41, %v2437_v2  ;;  %v2950_v36 = vld [vmem:[#allocation21_spill] sm:$0xff]  ;;  %v2951_v55 = vld [vmem:[#allocation14_spill] sm:$0xff]  ;;  %v2954_v10 = vld [vmem:[#allocation3_spill] sm:$0xff] }
  0xa0   : > { %v1107_v61 = vmax.f32 %v2402_v21, %v2442_v17  ;;  %v1108_v47 = vmax.f32 %v2407_v59, %v2447_v45  ;;  %v1109_v51 = vmax.f32 %v2412_v16, %v2452_v50  ;;  %v1110_v29 = vmax.f32 %v2457_v30, %v2497_v57  ;;  %v2952_v41 = vld [vmem:[#allocation18_spill] sm:$0xff]  ;;  %v2953_v59 = vld [vmem:[#allocation19_spill] sm:$0xff]  ;;  %v2955_v2 = vld [vmem:[#allocation5_spill] sm:$0xff] }
  0xa1   : > { %v1111_v56 = vmax.f32 %v2462_v60, %v2502_v42  ;;  %v1112_v11 = vmax.f32 %v2467_v54, %v2507_v58  ;;  %v1113_v20 = vmax.f32 %v2948_v27, %v2947_v15  ;;  %v1114_v23 = vmax.f32 %v2949_v32, %v2517_v39  ;;  %v2956_v54 = vld [vmem:[#allocation2_spill] sm:$0xff] }
  0xa2   : > { %v1115_v38 = vmax.f32 %v2951_v55, %v2950_v36  ;;  %v1116_v21 = vmax.f32 %v2952_v41, %v2527_v1  ;;  %v1117_v16 = vmax.f32 %v2953_v59, %v2532_v3  ;;  %v1118_v28 = vmax.f32 %v2954_v10, %v2577_v5 }
  0xa3   : > { %v1119_v25 = vmax.f32 %v2542_v35, %v2582_v26  ;;  %v1120_v46 = vmax.f32 %v2547_v34, %v2587_v37  ;;  %v1121_v17 = vmax.f32 %v2955_v2, %v2592_v14  ;;  %v1122_v45 = vmax.f32 %v2557_v49, %v2597_v4 }
  0xa4   : > { %v1123_v50 = vmax.f32 %v2562_v53, %v2602_v8  ;;  %v1124_v30 = vmax.f32 %v2567_v24, %v2607_v33  ;;  %v1125_v60 = vmax.f32 %v2572_v19, %v2612_v63  ;;  %v1161_v57 = vrot.slane %v1094_v31, %v2956_v54 }
  0xa5   : > { %v1165_v42 = vrot.slane %v1095_v12, %v2956_v54  ;;  %v1169_v58 = vrot.slane %v1096_v9, %v2956_v54  ;;  %v1173_v39 = vrot.slane %v1097_v6, %v2956_v54  ;;  %v1177_v1 = vrot.slane %v1098_v22, %v2956_v54 }
  0xa6   : > { %v1181_v3 = vrot.slane %v1099_v40, %v2956_v54  ;;  %v1185_v35 = vrot.slane %v1100_v43, %v2956_v54  ;;  %v1189_v34 = vrot.slane %v1101_v62, %v2956_v54  ;;  %v1193_v49 = vrot.slane %v1102_v7, %v2956_v54 }
  0xa7   : > { %v1197_v53 = vrot.slane %v1103_v13, %v2956_v54  ;;  %v1201_v24 = vrot.slane %v1104_v52, %v2956_v54  ;;  %v1205_v19 = vrot.slane %v1105_v18, %v2956_v54  ;;  %v1209_v5 = vrot.slane %v1106_v44, %v2956_v54 }
  0xa8   : > { %v1213_v26 = vrot.slane %v1107_v61, %v2956_v54  ;;  %v1217_v37 = vrot.slane %v1108_v47, %v2956_v54  ;;  %v1221_v14 = vrot.slane %v1109_v51, %v2956_v54  ;;  %v1225_v4 = vrot.slane %v1110_v29, %v2956_v54 }
  0xa9   : > { %v1229_v8 = vrot.slane %v1111_v56, %v2956_v54  ;;  %v1233_v48 = vrot.slane %v1112_v11, %v2956_v54  ;;  %v1237_v33 = vrot.slane %v1113_v20, %v2956_v54  ;;  %v1241_v0 = vrot.slane %v1114_v23, %v2956_v54 }
  0xaa   : > { %v1245_v63 = vrot.slane %v1115_v38, %v2956_v54  ;;  %v1249_v31 = vrot.slane %v1116_v21, %v2956_v54  ;;  %v1253_v12 = vrot.slane %v1117_v16, %v2956_v54  ;;  %v1257_v9 = vrot.slane %v1118_v28, %v2956_v54 }
  0xab   : > { %v1261_v6 = vrot.slane %v1119_v25, %v2956_v54  ;;  %v1265_v22 = vrot.slane %v1120_v46, %v2956_v54  ;;  %v1269_v40 = vrot.slane %v1121_v17, %v2956_v54  ;;  %v1273_v43 = vrot.slane %v1122_v45, %v2956_v54 }
  0xac   : > { %v1277_v62 = vrot.slane %v1123_v50, %v2956_v54  ;;  %v1281_v7 = vrot.slane %v1124_v30, %v2956_v54  ;;  %v1285_v13 = vrot.slane %v1125_v60, %v2956_v54  ;;  %v1287_v52 = vsel %vm1286_vm0, %v1165_v42, %v1161_v57 }
  0xad   : > { %v1298_v18 = vsel %vm1286_vm0, %v1197_v53, %v1193_v49  ;;  %v1289_v44 = vsel %vm1288_vm1, %v1169_v58, %v1287_v52  ;;  %v1304_v47 = vsel %vm1286_vm0, %v1229_v8, %v1225_v4  ;;  %v1310_v51 = vsel %vm1286_vm0, %v1261_v6, %v1257_v9 }
  0xae   : > { %v1299_v61 = vsel %vm1288_vm1, %v1201_v24, %v1298_v18  ;;  %v1291_v29 = vsel %vm1290_vm2, %v1173_v39, %v1289_v44  ;;  %v1305_v11 = vsel %vm1288_vm1, %v1233_v48, %v1304_v47  ;;  %v1311_v15 = vsel %vm1288_vm1, %v1265_v22, %v1310_v51 }
  0xaf   : > { %v1300_v56 = vsel %vm1290_vm2, %v1205_v19, %v1299_v61  ;;  %v1293_v27 = vsel %vm1292_vm3, %v1177_v1, %v1291_v29  ;;  %v1306_v32 = vsel %vm1290_vm2, %v1237_v33, %v1305_v11  ;;  %v1312_v23 = vsel %vm1290_vm2, %v1269_v40, %v1311_v15 }
  0xb0   : > { %v1301_v20 = vsel %vm1292_vm3, %v1209_v5, %v1300_v56  ;;  %v1295_v36 = vsel %vm1294_vm4, %v1181_v3, %v1293_v27  ;;  %v1307_v38 = vsel %vm1292_vm3, %v1241_v0, %v1306_v32  ;;  %v1313_v41 = vsel %vm1292_vm3, %v1273_v43, %v1312_v23  ;;  %1340 = sbr.rel (%p1551_p7) target bundleno = 192 (0xc0), region = 44 }
  0xb1   : > { %v1302_v55 = vsel %vm1294_vm4, %v1213_v26, %v1301_v20  ;;  %v1297_v21 = vsel %vm1296_vm5, %v1185_v35, %v1295_v36  ;;  %v1308_v16 = vsel %vm1294_vm4, %v1245_v63, %v1307_v38  ;;  %v1314_v10 = vsel %vm1294_vm4, %v1277_v62, %v1313_v41 }
  0xb2   : > { %v1303_v59 = vsel %vm1296_vm5, %v1217_v37, %v1302_v55  ;;  %v1309_v28 = vsel %vm1296_vm5, %v1249_v31, %v1308_v16  ;;  %v1315_v25 = vsel %vm1296_vm5, %v1281_v7, %v1314_v10  ;;  %v1325_v46 = vsel %vm1324_vm6, 0.0, %v1297_v21 }
  0xb3   : > { %v1326_v2 = vsel %vm1324_vm6, 0.0, %v1303_v59  ;;  %v1327_v17 = vsel %vm1324_vm6, 0.0, %v1309_v28  ;;  %v1328_v45 = vsel %vm1324_vm6, 0.0, %v1315_v25  ;;  %v1329_v50 = vsel %vm1324_vm6, %v1189_v34, 0.0 }
  0xb4   : > { %v1330_v30 = vsel %vm1324_vm6, %v1221_v14, 0.0  ;;  %v1331_v60 = vsel %vm1324_vm6, %v1253_v12, 0.0  ;;  %v1332_v54 = vsel %vm1324_vm6, %v1285_v13, 0.0 }
  0xb5   : > { %vm1341_vm7 = vcmask 257024   ;;  %vm1343_vm8 = vcmask 253952   ;;  %v1771_v57 = vmov 0  }
  0xb6   : > { %1342 = vst.msk [vmem:[%s1844_s9] sm:$0xf] %vm1341_vm7, %v1771_v57  ;;  %1345 = vst.msk [vmem:[%s1844_s9 + $0x8] sm:$0xf] %vm1341_vm7, %v1771_v57 }
  0xb7   : > { %1347 = vst.msk [vmem:[%s1844_s9 + $0x10] sm:$0xf] %vm1341_vm7, %v1771_v57  ;;  %1349 = vst.msk [vmem:[%s1844_s9 + $0x18] sm:$0xf] %vm1341_vm7, %v1771_v57 }
  0xb8   : > { %1351 = vst.msk [vmem:[%s1844_s9 + $0x20] sm:$0xf] %vm1341_vm7, %v1771_v57  ;;  %1353 = vst.msk [vmem:[%s1844_s9 + $0x28] sm:$0xf] %vm1341_vm7, %v1771_v57 }
  0xb9   : > { %1355 = vst.msk [vmem:[%s1844_s9 + $0x30] sm:$0xf] %vm1341_vm7, %v1771_v57  ;;  %1357 = vst.msk [vmem:[%s1844_s9 + $0x38] sm:$0xf] %vm1341_vm7, %v1771_v57 }
  0xba   : > { %1359 = vst.msk [vmem:[%s1844_s9 + $0x40] sm:$0xf] %vm1341_vm7, %v1771_v57  ;;  %1361 = vst.msk [vmem:[%s1844_s9 + $0x48] sm:$0xf] %vm1341_vm7, %v1771_v57 }
  0xbb   : > { %1344 = vst.msk [vmem:[%s1844_s9 + $0x4] sm:$0x1] %vm1343_vm8, %v1771_v57  ;;  %1346 = vst.msk [vmem:[%s1844_s9 + $0xc] sm:$0x1] %vm1343_vm8, %v1771_v57 }
  0xbc   : > { %1348 = vst.msk [vmem:[%s1844_s9 + $0x14] sm:$0x1] %vm1343_vm8, %v1771_v57  ;;  %1350 = vst.msk [vmem:[%s1844_s9 + $0x1c] sm:$0x1] %vm1343_vm8, %v1771_v57 }
  0xbd   : > { %1352 = vst.msk [vmem:[%s1844_s9 + $0x24] sm:$0x1] %vm1343_vm8, %v1771_v57  ;;  %1354 = vst.msk [vmem:[%s1844_s9 + $0x2c] sm:$0x1] %vm1343_vm8, %v1771_v57 }
  0xbe   : > { %1356 = vst.msk [vmem:[%s1844_s9 + $0x34] sm:$0x1] %vm1343_vm8, %v1771_v57  ;;  %1358 = vst.msk [vmem:[%s1844_s9 + $0x3c] sm:$0x1] %vm1343_vm8, %v1771_v57 }
  0xbf   : > { %1360 = vst.msk [vmem:[%s1844_s9 + $0x44] sm:$0x1] %vm1343_vm8, %v1771_v57  ;;  %1362 = vst.msk [vmem:[%s1844_s9 + $0x4c] sm:$0x1] %vm1343_vm8, %v1771_v57 }
  0xc0 PF: > { %v1573_v42 = vpack.c.bf16 %v1325_v46, %v1325_v46  ;;  %s1581_s19 = sshll.u32 %s1752_s18, 5  ;;  %vm1396_vm9 = vcmask 257024   ;;  %v1574_v58 = vpack.c.bf16 %v1329_v50, %v1329_v50  ;;  %vm1398_vm10 = vcmask 253952  }
  0xc1   : > { %s1439_s25 = scalar_lea.vmem %s1844_s9, %s1581_s19  ;;  %v1575_v39 = vpack.c.bf16 %v1326_v2, %v1326_v2  ;;  %v1576_v1 = vpack.c.bf16 %v1330_v30, %v1330_v30  ;;  %v1577_v3 = vpack.c.bf16 %v1327_v17, %v1327_v17  ;;  %v1578_v35 = vpack.c.bf16 %v1331_v60, %v1331_v60 }
  0xc2   : > { %1562 = vst.msk [vmem:[%s1439_s25 + $0x8] sm:$0xf] %vm1396_vm9, %v1573_v42  ;;  %v1579_v34 = vpack.c.bf16 %v1328_v45, %v1328_v45  ;;  %v1580_v49 = vpack.c.bf16 %v1332_v54, %v1332_v54 }
  0xc3   : > { %1563 = vst.msk [vmem:[%s1439_s25 + $0xc] sm:$0x1] %vm1398_vm10, %v1574_v58  ;;  %1565 = vst.msk [vmem:[%s1439_s25 + $0x14] sm:$0x1] %vm1398_vm10, %v1576_v1 }
  0xc4   : > { %1564 = vst.msk [vmem:[%s1439_s25 + $0x10] sm:$0xf] %vm1396_vm9, %v1575_v39  ;;  %1566 = vst.msk [vmem:[%s1439_s25 + $0x18] sm:$0xf] %vm1396_vm9, %v1577_v3 }
  0xc5   : > { %1567 = vst.msk [vmem:[%s1439_s25 + $0x1c] sm:$0x1] %vm1398_vm10, %v1578_v35  ;;  %1569 = vst.msk [vmem:[%s1439_s25 + $0x24] sm:$0x1] %vm1398_vm10, %v1580_v49 }
  0xc6   : > { %1568 = vst.msk [vmem:[%s1439_s25 + $0x20] sm:$0xf] %vm1396_vm9, %v1579_v34 }
  0xc7 PF: > { %s15_s22 = sadd.s32 1, %s1768_s22   ;;  %s2957_s18 = smov %s1760_s20 }
  0xc8   : > { %p12_p8 = scmp.ge.s32.totalorder %s15_s22, 6   ;;  %s2958_s19 = smov %s1764_s21 }
  0xc9   : > { %s2959_s20 = smov %s2962_s23  ;;  %s2960_s21 = smov %s2966_s24 }
  0xca   :  { %14 = sbr.rel (!%p12_p8) target bundleno = 3 (0x3), region = 75 }

// kernel: vgg16_forward.11
= control target key start
LH: loop header
LB: loop body
LE: loop exit
PB: predicated region body
PF: predicated region fallthrough
CT: control target
= control target key end

     0   :  { %s815_s18 = smov 0   ;;  %s817_s19 = smov 0   ;;  %s910_s0 = inlined_call_operand.vmem [shape: bf16[4,32,64], index: 0, kind: input, shape index: {}]   ;;  %s911_s1 = inlined_call_operand.vmem [shape: f32[1,64], index: 1, kind: input, shape index: {}]   ;;  %s912_s2 = inlined_call_operand.vmem [shape: f32[1,64], index: 2, kind: input, shape index: {}]   ;;  %s913_s3 = inlined_call_operand.vmem [shape: f32[1,64], index: 3, kind: input, shape index: {}]   ;;  %s914_s4 = inlined_call_operand.vmem [shape: f32[1,64], index: 4, kind: input, shape index: {}]   ;;  %s915_s5 = inlined_call_operand.vmem [shape: bf16[2,6,6,64], index: 5, kind: output, shape index: {}]  }
   0x1   :  { %s819_s20 = smov 0   ;;  %s821_s21 = smov 0  }
   0x2   :  { %s823_s22 = smov 0  }
   0x3 LB: > { %s24_s23 = sadd.s32 1, %s773_s20  ;;  %s27_s24 = sadd.s32 1, %s777_s21  ;;  %s781_s22 = sphi %s823_s22, %s15_s22   ;;  %s777_s21 = sphi %s821_s21, %s919_s21   ;;  %s773_s20 = sphi %s819_s20, %s918_s20   ;;  %s769_s19 = sphi %s817_s19, %s917_s19   ;;  %s765_s18 = sphi %s815_s18, %s916_s18  }
   0x4   : > { %p25_p0 = scmp.ge.s32.totalorder %s24_s23, 2  ;;  %p643_p1 = scmp.ge.s32.totalorder %s781_s22, 1 }
   0x5   : > { %p207_p2 = scmp.lt.s32.totalorder %s781_s22, 5 }
   0x6   : > { %s921_s23 = smov (%p25_p0, %s24_s23), 0  ;;  %s923_s24 = smov (!%p25_p0, %s27_s24), %s777_s21 }
   0x7   : > { %p208_p3 = pnand %p643_p1, %p207_p2  ;;  %p29_p4 = scmp.ge.s32.totalorder %s923_s24, 2 }
   0x8   : > { %p246_p5 = scmp.lt.s32.totalorder (!%p208_p3), %s769_s19, 1  ;;  %s644_s29 = sshll.u32 (!%p208_p3), %s769_s19, 1 }
   0x9   : > { %s925_s24 = smov (%p29_p4, %s923_s24), 0  ;;  %211 = sbr.rel (%p208_p3) target bundleno = 123 (0x7b), region = 40 }
   0xa   : > { %s238_s30 = sadd.s32 (!%p208_p3), %s765_s18, %s644_s29  ;;  %p664_p7 = scmp.ne.s32.totalorder (!%p208_p3), %s765_s18, 0 }
   0xb   : > { %p239_p6 = scmp.lt.s32.totalorder (!%p208_p3), %s238_s30, 3 }
   0xe   : > { %v252_v0 = vld [vmem:[%s911_s1] sm:$0x1]  ;;  %s927_s19 = smov (!%p246_p5, %s769_s19), 1  ;;  %s929_s30 = smov (!%p239_p6, %s238_s30), 3  ;;  %v275_v8 = vlaneseq  ;;  %v783_v57 = vmov 1983009808  }
   0xf   : > { %v254_v1 = vld [vmem:[%s912_s2] sm:$0x1]  ;;  %v253_v2 = vmul.f32 0.0078125, %v252_v0  ;;  %s682_s6 = smul.u32 24, %s927_s19  ;;  %s671_s10 = sshll.u32 %s929_s30, 4  ;;  %v336_v58 = vunpack.c.l.s4 %v783_v57  ;;  %vm530_vm0 = vcmask 1042434  }
  0x10   : > { %v255_v3 = vmul.f32 0.0078125, %v254_v1  ;;  %s243_s13 = scalar_lea.vmem %s910_s0, %s671_s10  ;;  %v276_v9 = vshrl.u32 %v275_v8, 7  ;;  %v259_v10 = vld [vmem:[%s913_s3] sm:$0x1]  ;;  %vm532_vm1 = vcmask 1043459   ;;  %vm534_vm2 = vcmask 1044484  }
  0x11   : > { %v256_v4 = vmul.f32 %v253_v2, %v253_v2  ;;  %s857_s9 = scalar_lea.vmem %s915_s5, %s682_s6  ;;  %v674_v11 = vld [vmem:[%s243_s13] sm:$0xff]   ;;  %v681_v12 = vld [vmem:[%s243_s13 + $0x8] sm:$0xff]   ;;  %v337_v59 = vunpack.c.0.s8 %v336_v58  ;;  %vm541_vm3 = vcmask 1040384   ;;  %vm544_vm4 = vcmask 1044480  }
  0x12   : > { %v865_v13 = vsub.s32 0, %v276_v9  ;;  %v675_v16 = vunpack.c.l.bf16 %v674_v11  ;;  %v676_v17 = vunpack.c.h.bf16 %v674_v11  ;;  %v679_v18 = vunpack.c.l.bf16 %v681_v12  ;;  %v263_v19 = vld [vmem:[%s914_s4] sm:$0x1] }
  0x13   : > { %v257_v5 = vsub.f32 %v255_v3, %v256_v4  ;;  %v680_v20 = vunpack.c.h.bf16 %v681_v12  ;;  %v340_v63 = vsub.s32 %v337_v59, %v276_v9 }
  0x15   : > { %v258_v6 = vmax.f32 %v257_v5, 0.0 }
  0x17   : > { %v260_v7 = vadd.f32 1e-05, %v258_v6 }
  0x19   : > { %725 = vrsqrt.f32 %v260_v7 }
  0x26   : > { %v726_v14 = vpop.eup %725 }
  0x27   : > { %v262_v15 = vmul.f32 %v726_v14, %v259_v10 }
  0x29   : > { %v264_v21 = vmul.f32 %v262_v15, %v253_v2  ;;  %v278_v22 = vrot.slane %v262_v15, %v865_v13 }
  0x2b   : > { %v265_v23 = vsub.f32 %v263_v19, %v264_v21  ;;  %v280_v24 = vmul.f32 %v675_v16, %v278_v22  ;;  %v281_v25 = vmul.f32 %v676_v17, %v278_v22  ;;  %v282_v26 = vmul.f32 %v679_v18, %v278_v22 }
  0x2c   : > { %v283_v27 = vmul.f32 %v680_v20, %v278_v22 }
  0x2d   : > { %v288_v28 = vrot.slane %v265_v23, %v865_v13 }
  0x2f   : > { %v290_v29 = vadd.f32 %v288_v28, %v280_v24  ;;  %v291_v30 = vadd.f32 %v288_v28, %v281_v25  ;;  %v292_v31 = vadd.f32 %v288_v28, %v282_v26  ;;  %v293_v32 = vadd.f32 %v288_v28, %v283_v27 }
  0x31   : > { %v294_v33 = vmin.f32 %v290_v29, 30.0  ;;  %v295_v34 = vmin.f32 %v291_v30, 30.0  ;;  %v296_v35 = vmin.f32 %v292_v31, 30.0  ;;  %v297_v36 = vmin.f32 %v293_v32, 30.0 }
  0x33   : > { %v298_v37 = vmul.f32 1.442695, %v294_v33  ;;  %v300_v38 = vmul.f32 1.442695, %v295_v34  ;;  %v302_v39 = vmul.f32 1.442695, %v296_v35 }
  0x34   : > { %v304_v40 = vmul.f32 1.442695, %v297_v36 }
  0x35   : > { %727 = vpow2.f32 %v298_v37 }
  0x36   : > { %729 = vpow2.f32 %v300_v38 }
  0x37   : > { %731 = vpow2.f32 %v302_v39 }
  0x38   : > { %733 = vpow2.f32 %v304_v40 }
  0x42   : > { %v728_v41 = vpop.eup %727 }
  0x43   : > { %v730_v42 = vpop.eup %729  ;;  %v306_v43 = vadd.f32 2.0, %v728_v41 }
  0x44   : > { %v732_v44 = vpop.eup %731  ;;  %v307_v45 = vadd.f32 2.0, %v730_v42 }
  0x45   : > { %v734_v46 = vpop.eup %733  ;;  %v308_v47 = vadd.f32 2.0, %v732_v44  ;;  %v310_v48 = vmul.f32 %v728_v41, %v306_v43 }
  0x46   : > { %v309_v49 = vadd.f32 2.0, %v734_v46  ;;  %v311_v50 = vmul.f32 %v730_v42, %v307_v45 }
  0x47   : > { %v312_v51 = vmul.f32 %v732_v44, %v308_v47  ;;  %v314_v52 = vadd.f32 2.0, %v310_v48 }
  0x48   : > { %v313_v53 = vmul.f32 %v734_v46, %v309_v49  ;;  %v315_v54 = vadd.f32 2.0, %v311_v50 }
  0x49   : > { %v316_v55 = vadd.f32 2.0, %v312_v51  ;;  %735 = vrcp.f32 %v314_v52 }
  0x4a   : > { %v317_v56 = vadd.f32 2.0, %v313_v53  ;;  %737 = vrcp.f32 %v315_v54 }
  0x4b   : > { %739 = vrcp.f32 %v316_v55 }
  0x4c   : > { %741 = vrcp.f32 %v317_v56 }
  0x56   : > { %v736_v60 = vpop.eup %735 }
  0x57   : > { %v738_v61 = vpop.eup %737  ;;  %v322_v62 = vmul.f32 %v736_v60, %v310_v48 }
  0x58   : > { %v740_v0 = vpop.eup %739  ;;  %v323_v1 = vmul.f32 %v738_v61, %v311_v50 }
  0x59   : > { %v742_v2 = vpop.eup %741  ;;  %v324_v3 = vmul.f32 %v740_v0, %v312_v51  ;;  %v326_v4 = vmul.f32 %v322_v62, %v290_v29 }
  0x5a   : > { %v325_v5 = vmul.f32 %v742_v2, %v313_v53  ;;  %v327_v6 = vmul.f32 %v323_v1, %v291_v30 }
  0x5b   : > { %v328_v7 = vmul.f32 %v324_v3, %v292_v31  ;;  %v334_v8 = vcombine.high %v326_v4, %v326_v4  ;;  %v341_v10 = vrot.slane %v326_v4, %v340_v63 }
  0x5c   : > { %v329_v11 = vmul.f32 %v325_v5, %v293_v32  ;;  %v351_v12 = vcombine.high %v327_v6, %v327_v6  ;;  %v358_v14 = vrot.slane %v327_v6, %v340_v63 }
  0x5d   : > { %v348_v15 = vrot.slane %v334_v8, %v340_v63  ;;  %v349_v16 = vcombine.high %v341_v10, %v341_v10  ;;  %v368_v17 = vcombine.high %v328_v7, %v328_v7  ;;  %v375_v18 = vrot.slane %v328_v7, %v340_v63 }
  0x5e   : > { %v365_v19 = vrot.slane %v351_v12, %v340_v63  ;;  %v366_v20 = vcombine.high %v358_v14, %v358_v14  ;;  %v385_v9 = vcombine.high %v329_v11, %v329_v11  ;;  %v392_v21 = vrot.slane %v329_v11, %v340_v63 }
  0x5f   : > { %v350_v22 = vcombine.high %v348_v15, %v348_v15  ;;  %v382_v23 = vrot.slane %v368_v17, %v340_v63  ;;  %v383_v24 = vcombine.high %v375_v18, %v375_v18  ;;  %v648_v25 = vrot.slane %v341_v10, 9 }
  0x60   : > { %v367_v26 = vcombine.high %v365_v19, %v365_v19  ;;  %v399_v27 = vrot.slane %v385_v9, %v340_v63  ;;  %v400_v28 = vcombine.high %v392_v21, %v392_v21  ;;  %v649_v29 = vrot.slane %v349_v16, 9 }
  0x61   : > { %v384_v30 = vcombine.high %v382_v23, %v382_v23  ;;  %v650_v31 = vrot.slane %v348_v15, 9  ;;  %v651_v32 = vrot.slane %v350_v22, 9  ;;  %v652_v33 = vrot.slane %v358_v14, 9 }
  0x62   : > { %v401_v34 = vcombine.high %v399_v27, %v399_v27  ;;  %v653_v35 = vrot.slane %v366_v20, 9  ;;  %v654_v36 = vrot.slane %v365_v19, 9  ;;  %v655_v37 = vrot.slane %v367_v26, 9 }
  0x63   : > { %v656_v38 = vrot.slane %v375_v18, 9  ;;  %v657_v39 = vrot.slane %v383_v24, 9  ;;  %v658_v40 = vrot.slane %v382_v23, 9  ;;  %v659_v41 = vrot.slane %v384_v30, 9 }
  0x64   : > { %v660_v42 = vrot.slane %v392_v21, 9  ;;  %v661_v43 = vrot.slane %v400_v28, 9  ;;  %v662_v44 = vrot.slane %v399_v27, 9  ;;  %v663_v45 = vrot.slane %v401_v34, 9 }
  0x65   : > { %v466_v46 = vmax.f32 %v341_v10, %v648_v25  ;;  %v467_v47 = vmax.f32 %v349_v16, %v649_v29  ;;  %v468_v48 = vmax.f32 %v348_v15, %v650_v31  ;;  %v469_v49 = vmax.f32 %v350_v22, %v651_v32 }
  0x66   : > { %v470_v50 = vmax.f32 %v358_v14, %v652_v33  ;;  %v471_v51 = vmax.f32 %v366_v20, %v653_v35  ;;  %v472_v52 = vmax.f32 %v365_v19, %v654_v36  ;;  %v473_v53 = vmax.f32 %v367_v26, %v655_v37 }
  0x67   : > { %v474_v54 = vmax.f32 %v375_v18, %v656_v38  ;;  %v475_v55 = vmax.f32 %v383_v24, %v657_v39  ;;  %v476_v56 = vmax.f32 %v382_v23, %v658_v40  ;;  %v477_v57 = vmax.f32 %v384_v30, %v659_v41 }
  0x68   : > { %v478_v58 = vmax.f32 %v392_v21, %v660_v42  ;;  %v479_v59 = vmax.f32 %v400_v28, %v661_v43  ;;  %v480_v60 = vmax.f32 %v399_v27, %v662_v44  ;;  %v481_v61 = vmax.f32 %v401_v34, %v663_v45 }
  0x69   : > { %v482_v62 = vmax.f32 %v466_v46, %v470_v50  ;;  %v483_v63 = vmax.f32 %v467_v47, %v471_v51  ;;  %v484_v0 = vmax.f32 %v468_v48, %v472_v52  ;;  %v485_v1 = vmax.f32 %v469_v49, %v473_v53 }
  0x6a   : > { %v486_v2 = vmax.f32 %v474_v54, %v478_v58  ;;  %v487_v3 = vmax.f32 %v475_v55, %v479_v59  ;;  %v488_v4 = vmax.f32 %v476_v56, %v480_v60  ;;  %v489_v5 = vmax.f32 %v477_v57, %v481_v61 }
  0x6b   : > { %v501_v6 = vrot.slane %v482_v62, %v865_v13  ;;  %v505_v7 = vrot.slane %v483_v63, %v865_v13  ;;  %v509_v8 = vrot.slane %v484_v0, %v865_v13  ;;  %v513_v10 = vrot.slane %v485_v1, %v865_v13 }
  0x6c   : > { %v517_v11 = vrot.slane %v486_v2, %v865_v13  ;;  %v521_v12 = vrot.slane %v487_v3, %v865_v13  ;;  %v525_v14 = vrot.slane %v488_v4, %v865_v13  ;;  %v529_v15 = vrot.slane %v489_v5, %v865_v13 }
  0x6d   : > { %v531_v16 = vsel %vm530_vm0, %v505_v7, %v501_v6 }
  0x6e   : > { %v533_v17 = vsel %vm532_vm1, %v509_v8, %v531_v16  ;;  %v536_v18 = vsel %vm530_vm0, %v521_v12, %v517_v11 }
  0x6f   : > { %v535_v19 = vsel %vm534_vm2, %v513_v10, %v533_v17  ;;  %v537_v20 = vsel %vm532_vm1, %v525_v14, %v536_v18  ;;  %552 = sbr.rel (%p664_p7) target bundleno = 120 (0x78), region = 44 }
  0x70   : > { %v538_v9 = vsel %vm534_vm2, %v529_v15, %v537_v20  ;;  %v542_v21 = vsel %vm541_vm3, 0.0, %v535_v19 }
  0x71   : > { %v543_v22 = vsel %vm541_vm3, 0.0, %v538_v9  ;;  %v545_v23 = vsel %vm544_vm4, %v542_v21, 0.0 }
  0x72   : > { %v546_v24 = vsel %vm544_vm4, %v543_v22, 0.0  ;;  %v547_v25 = vpack.c.bf16 %v545_v23, %v545_v23 }
  0x73   : > { %v548_v13 = vpack.c.bf16 %v546_v24, %v546_v24 }
  0x74   : > { %vm553_vm5 = vcmask 518144   ;;  %v784_v26 = vmov 0  }
  0x75   : > { %554 = vst.msk [vmem:[%s857_s9] sm:$0x7] %vm553_vm5, %v784_v26  ;;  %555 = vst.msk [vmem:[%s857_s9 + $0x4] sm:$0x7] %vm553_vm5, %v784_v26 }
  0x76   : > { %556 = vst.msk [vmem:[%s857_s9 + $0x8] sm:$0x7] %vm553_vm5, %v784_v26  ;;  %557 = vst.msk [vmem:[%s857_s9 + $0xc] sm:$0x7] %vm553_vm5, %v784_v26 }
  0x77   : > { %558 = vst.msk [vmem:[%s857_s9 + $0x10] sm:$0x7] %vm553_vm5, %v784_v26  ;;  %559 = vst.msk [vmem:[%s857_s9 + $0x14] sm:$0x7] %vm553_vm5, %v784_v26 }
  0x78 PF: > { %s672_s19 = sshll.u32 %s765_s18, 3  ;;  %vm564_vm6 = vcmask 518144  }
  0x79   : > { %s600_s25 = scalar_lea.vmem %s857_s9, %s672_s19 }
  0x7a   : > { %667 = vst.msk [vmem:[%s600_s25 + $0x4] sm:$0x7] %vm564_vm6, %v547_v25  ;;  %668 = vst.msk [vmem:[%s600_s25 + $0x8] sm:$0x7] %vm564_vm6, %v548_v13 }
  0x7b PF: > { %s15_s22 = sadd.s32 1, %s781_s22   ;;  %s916_s18 = smov %s773_s20 }
  0x7c   : > { %p12_p8 = scmp.ge.s32.totalorder %s15_s22, 6   ;;  %s917_s19 = smov %s777_s21 }
  0x7d   : > { %s918_s20 = smov %s921_s23  ;;  %s919_s21 = smov %s925_s24 }
  0x7e   :  { %14 = sbr.rel (!%p12_p8) target bundleno = 3 (0x3), region = 75 }

// kernel: vgg16_forward.10
= control target key start
LH: loop header
LB: loop body
LE: loop exit
PB: predicated region body
PF: predicated region fallthrough
CT: control target
= control target key end

     0   :  { %s1669_s15 = smov 0   ;;  %s1671_s16 = smov 0   ;;  %s1918_s0 = inlined_call_operand.vmem [shape: bf16[2,10,10,32], index: 0, kind: input, shape index: {}]   ;;  %s1919_s1 = inlined_call_operand.vmem [shape: bf16[3,3,32,64], index: 1, kind: input, shape index: {}]   ;;  %s1920_s2 = inlined_call_operand.vmem [shape: bf16[4,32,64], index: 2, kind: output, shape index: {0}]   ;;  %s1921_s3 = inlined_call_operand.vmem [shape: f32[4,1,64], index: 3, kind: output, shape index: {1}]   ;;  %s1922_s4 = inlined_call_operand.vmem [shape: f32[4,1,64], index: 4, kind: output, shape index: {2}]  }
   0x1   :  { %s1673_s17 = smov 0   ;;  %s1675_s18 = smov 0  }
   0x2   :  { %s1677_s19 = smov 0  }
   0x3 LB: > { %s24_s20 = sadd.s32 1, %s1634_s17  ;;  %s27_s21 = sadd.s32 1, %s1638_s18  ;;  %s1642_s19 = sphi %s1677_s19, %s15_s19   ;;  %s1638_s18 = sphi %s1675_s18, %s1930_s18   ;;  %s1634_s17 = sphi %s1673_s17, %s1929_s17   ;;  %s1630_s16 = sphi %s1671_s16, %s1928_s16   ;;  %s1626_s15 = sphi %s1669_s15, %s1927_s15  }
   0x4   : > { %p25_p0 = scmp.ge.s32.totalorder %s24_s20, 2  ;;  %p1320_p1 = scmp.ge.s32.totalorder %s1642_s19, 1 }
   0x5   : > { %p191_p2 = scmp.lt.s32.totalorder %s1642_s19, 5 }
   0x6   : > { %s1932_s20 = smov (%p25_p0, %s24_s20), 0  ;;  %s1934_s21 = smov (!%p25_p0, %s27_s21), %s1638_s18 }
   0x7   : > { %p192_p3 = pnand %p1320_p1, %p191_p2  ;;  %p29_p4 = scmp.ge.s32.totalorder %s1934_s21, 2 }
   0x8   : > { %p229_p5 = scmp.lt.s32.totalorder (!%p192_p3), %s1630_s16, 1  ;;  %s1427_s5 = sshll.u32 (!%p192_p3), %s1626_s15, 5 }
   0x9   : > { %s1936_s21 = smov (%p29_p4, %s1934_s21), 0  ;;  %195 = sbr.rel (%p192_p3) target bundleno = 283 (0x11b), region = 28 }
   0xe   : > { %v1581_v0 = vld [vmem:[%s1919_s1 + $0x38] sm:$0xff]   ;;  %v1582_v1 = vld [vmem:[%s1919_s1 + $0x8] sm:$0xff]   ;;  %v1583_v2 = vld [vmem:[%s1919_s1 + $0x30] sm:$0xff]   ;;  %s230_s28 = scalar_select %p229_p5, %s1630_s16, 1  ;;  %vm299_vm0 = vcmask 261120   ;;  %vm855_vm3 = vcmask 1042432  }
   0xf   : > { %1468 = vmatprep.subr.bf16.mxu0 %v1581_v0  ;;  %1476 = vmatprep.subr.bf16.mxu1 %v1582_v1  ;;  %v1584_v3 = vld [vmem:[%s1919_s1] sm:$0xff]   ;;  %v1590_v4 = vld [vmem:[%s1919_s1 + $0x68] sm:$0xff]   ;;  %v1591_v5 = vld [vmem:[%s1919_s1 + $0x18] sm:$0xff]   ;;  %vm514_vm1 = vsmask.f32 3328  ;;  %vm856_vm5 = vcmask 1046532  }
  0x10   : > { %1469 = vmatpush3.bf16.msra.mxu0 %v1581_v0  ;;  %1477 = vmatpush3.bf16.msra.mxu1 %v1582_v1  ;;  %s1540_s6 = smul.u32 80, %s230_s28  ;;  %v1592_v9 = vld [vmem:[%s1919_s1 + $0x60] sm:$0xff]   ;;  %v1593_v14 = vld [vmem:[%s1919_s1 + $0x10] sm:$0xff]   ;;  %v1594_v21 = vld [vmem:[%s1919_s1 + $0x48] sm:$0xff]   ;;  %vm515_vm2 = vsmask.f32 7440 }
  0x11   : > { %1470 = vmatprep.subr.bf16.mxu0 %v1583_v2  ;;  %1478 = vmatprep.subr.bf16.mxu1 %v1584_v3  ;;  %v1595_v46 = vld [vmem:[%s1919_s1 + $0x78] sm:$0xff]   ;;  %vm1777_vm4 = vmor %vm514_vm1, %vm515_vm2  ;;  %v1596_v52 = vld [vmem:[%s1919_s1 + $0x40] sm:$0xff]   ;;  %vm1134_vm7 = vcmask 519168   ;;  %vm1139_vm8 = vcmask 523264   ;;  %vm1153_vm9 = vcmask 516096  }
  0x12   : > { %s233_s13 = scalar_lea.vmem %s1918_s0, %s1540_s6  ;;  %v1794_v1 = vld [vmem:[%s1919_s1 + $0x28] sm:$0xff]   ;;  %vm1818_vm6 = vmor %vm855_vm3, %vm856_vm5  ;;  %v1601_v47 = vld [vmem:[%s1919_s1 + $0x50] sm:$0xff]  }
  0x13   : > { %s1727_s14 = scalar_lea.vmem %s233_s13, %s1427_s5 }
  0x14   : > { %1471 = vmatpush3.bf16.msra.mxu0 %v1583_v2  ;;  %1479 = vmatpush3.bf16.msra.mxu1 %v1584_v3  ;;  %v263_v6 = vld [vmem:[%s1727_s14 + $0x8] sm:$0xf]  ;;  %v264_v7 = vld [vmem:[%s1727_s14 + $0x10] sm:$0xf]  ;;  %v265_v8 = vld [vmem:[%s1727_s14 + $0x18] sm:$0xf] }
  0x15   : > { %1484 = vmatprep.subr.bf16.mxu0 %v1590_v4  ;;  %v1736_v10 = vld [vmem:[%s1727_s14 + $0x20] sm:$0xf]  ;;  %v1334_v11 = vcombine.low %v263_v6, %v264_v7  ;;  %v1341_v12 = vcombine.low %v264_v7, %v265_v8  ;;  %1492 = vmatprep.subr.bf16.mxu1 %v1591_v5  ;;  %v267_v15 = vld [vmem:[%s1727_s14 + $0x28] sm:$0xf]  ;;  %v1747_v19 = vld [vmem:[%s1727_s14 + $0x4] sm:$0x1] }
  0x16   : > { %v262_v13 = vld [vmem:[%s1727_s14] sm:$0xf]  ;;  %v1335_v16 = vcombine.low %v265_v8, %v1736_v10  ;;  %v504_v20 = vld [vmem:[%s1727_s14 + $0x8] sm:$0xf]  ;;  %v1756_v22 = vld [vmem:[%s1727_s14 + $0xc] sm:$0x1]  ;;  %v1350_v28 = vcombine.low %v1736_v10, %v267_v15 }
  0x17   : > { %v1340_v17 = vcombine.low %v262_v13, %v263_v6  ;;  %1472 = vmatprep.mubr.msk.bf16.mxu0 %vm299_vm0, %v1334_v11  ;;  %v502_v18 = vld [vmem:[%s1727_s14] sm:$0xf]  ;;  %v527_v25 = vshll.u32 %v1747_v19, 16  ;;  %v532_v26 = vshrl.u32 %v504_v20, 16  ;;  %v506_v27 = vld [vmem:[%s1727_s14 + $0x10] sm:$0xf] }
  0x18   : > { %1473 = vmatmul.mubr.msk.bf16.vlgmr.msra.gmra.mxu0 %vm299_vm0, %v1335_v16  ;;  %v518_v23 = vshrl.u32 %v502_v18, 16  ;;  %v521_v24 = vshll.u32 %v502_v18, 16  ;;  %v535_v29 = vshll.u32 %v504_v20, 16  ;;  %v541_v30 = vshll.u32 %v1756_v22, 16  ;;  %v1764_v31 = vld [vmem:[%s1727_s14 + $0x14] sm:$0x1] }
  0x19   : > { %1480 = vmatprep.mubr.msk.bf16.mxu1 %vm299_vm0, %v1340_v17  ;;  %1485 = vmatpush3.bf16.msra.mxu0 %v1590_v4  ;;  %v508_v32 = vld [vmem:[%s1727_s14 + $0x18] sm:$0xf]  ;;  %v529_v35 = vrot.slane %v527_v25, 5  ;;  %v534_v36 = vrot.slane %v532_v26, 4  ;;  %v1769_v37 = vld [vmem:[%s1727_s14 + $0x1c] sm:$0x1] }
  0x1a   : > { %1481 = vmatmul.mubr.msk.bf16.vlgmr.msra.gmra.mxu1 %vm299_vm0, %v1341_v12  ;;  %1486 = vmatprep.subr.bf16.mxu0 %v1592_v9  ;;  %v520_v33 = vrot.slane %v518_v23, 4  ;;  %v523_v34 = vrot.slane %v521_v24, 5  ;;  %v537_v38 = vrot.slane %v535_v29, 5  ;;  %v543_v39 = vrot.slane %v541_v30, 5  ;;  %v510_v2 = vld [vmem:[%s1727_s14 + $0x20] sm:$0xf] }
  0x1b   : > { %1493 = vmatpush3.bf16.msra.mxu1 %v1591_v5  ;;  %1488 = vmatprep.mubr.msk.bf16.mxu0 %vm299_vm0, %v1341_v12  ;;  %v546_v40 = vshrl.u32 %v506_v27, 16  ;;  %v549_v41 = vshll.u32 %v506_v27, 16  ;;  %v555_v43 = vshll.u32 %v1764_v31, 16  ;;  %v560_v44 = vshrl.u32 %v508_v32, 16  ;;  %v1798_v3 = vld [vmem:[%s1727_s14 + $0x24] sm:$0x1] }
  0x1c   : > { %1494 = vmatprep.subr.bf16.mxu1 %v1593_v14  ;;  %v524_v42 = vor.u32 %v523_v34, %v520_v33  ;;  %v563_v45 = vshll.u32 %v508_v32, 16  ;;  %v538_v48 = vor.u32 %v537_v38, %v534_v36  ;;  %v569_v51 = vshll.u32 %v1769_v37, 16  ;;  %v512_v8 = vld [vmem:[%s1727_s14 + $0x28] sm:$0xf]  ;;  %v1805_v11 = vld [vmem:[%s1727_s14 + $0x2c] sm:$0x1] }
  0x1d   : > { %1487 = vmatpush3.bf16.msra.mxu0 %v1592_v9  ;;  %v548_v49 = vrot.slane %v546_v40, 4  ;;  %v551_v50 = vrot.slane %v549_v41, 5  ;;  %v562_v54 = vrot.slane %v560_v44, 4  ;;  %v557_v58 = vrot.slane %v555_v43, 5  ;;  %v837_v29 = vld [vmem:[%s1727_s14] sm:$0xe] }
  0x1e   : > { %1500 = vmatprep.subr.bf16.mxu0 %v1594_v21  ;;  %v525_v53 = vrot.slane %v524_v42, 4  ;;  %v565_v55 = vrot.slane %v563_v45, 5  ;;  %v539_v56 = vrot.slane %v538_v48, 4  ;;  %v571_v61 = vrot.slane %v569_v51, 5  ;;  %v838_v30 = vld [vmem:[%s1727_s14 + $0x8] sm:$0xe] }
  0x1f   : > { %1495 = vmatpush3.bf16.msra.mxu1 %v1593_v14  ;;  %v552_v57 = vor.u32 %v551_v50, %v548_v49  ;;  %v860_v62 = vrot.slane %v1747_v19, 5  ;;  %v574_v6 = vshrl.u32 %v510_v2, 16  ;;  %v577_v7 = vshll.u32 %v510_v2, 16  ;;  %v1597_v19 = vld [vmem:[%s1919_s1 + $0x70] sm:$0xff]   ;;  %v840_v42 = vld [vmem:[%s1727_s14 + $0x18] sm:$0xe] }
  0x20   : > { %1508 = vmatprep.subr.bf16.mxu1 %v1595_v46  ;;  %1489 = vmatmul.mubr.msk.bf16.vlgmr.msra.gmra.mxu0 %vm299_vm0, %v1350_v28  ;;  %v530_v59 = vsel %vm1777_vm4, %v525_v53, %v529_v35  ;;  %v566_v60 = vor.u32 %v565_v55, %v562_v54  ;;  %v544_v63 = vsel %vm1777_vm4, %v539_v56, %v543_v39  ;;  %v583_v10 = vshll.u32 %v1798_v3, 16  ;;  %v839_v38 = vld [vmem:[%s1727_s14 + $0x10] sm:$0xe]  ;;  %v841_v44 = vld [vmem:[%s1727_s14 + $0x20] sm:$0xe] }
  0x21   : > { %1501 = vmatpush3.bf16.msra.mxu0 %v1594_v21  ;;  %v553_v0 = vrot.slane %v552_v57, 4  ;;  %v1359_v4 = vcombine.low %v530_v59, %v544_v63  ;;  %v588_v12 = vshrl.u32 %v512_v8, 16  ;;  %v591_v13 = vshll.u32 %v512_v8, 16  ;;  %v1600_v48 = vld [vmem:[%s1919_s1 + $0x20] sm:$0xff]   ;;  %v1602_v57 = vld [vmem:[%s1919_s1 + $0x88] sm:$0xff]  }
  0x22   : > { %1502 = vmatprep.subr.bf16.mxu0 %v1596_v52  ;;  %v567_v5 = vrot.slane %v566_v60, 4  ;;  %v576_v16 = vrot.slane %v574_v6, 4  ;;  %v579_v17 = vrot.slane %v577_v7, 5  ;;  %v585_v20 = vrot.slane %v583_v10, 5 }
  0x23   : > { %v558_v9 = vsel %vm1777_vm4, %v553_v0, %v557_v58  ;;  %1496 = vmatprep.mubr.msk.bf16.mxu1 %vm299_vm0, %v1359_v4  ;;  %v590_v21 = vrot.slane %v588_v12, 4  ;;  %v593_v23 = vrot.slane %v591_v13, 5  ;;  %v597_v25 = vshll.u32 %v1805_v11, 16  ;;  %v842_v58 = vld [vmem:[%s1727_s14 + $0x28] sm:$0xe]  ;;  %v1603_v0 = vld [vmem:[%s1919_s1 + $0x80] sm:$0xff]  }
  0x24   : > { %v572_v14 = vsel %vm1777_vm4, %v567_v5, %v571_v61  ;;  %v1369_v15 = vcombine.low %v544_v63, %v558_v9  ;;  %v580_v24 = vor.u32 %v579_v17, %v576_v16  ;;  %v864_v27 = vrot.slane %v1756_v22, 5  ;;  %v1599_v22 = vld [vmem:[%s1919_s1 + $0x58] sm:$0xff]   ;;  %s1322_s14 = sshll.u32 %s1630_s16, 1 }
  0x25   : > { %1503 = vmatpush3.bf16.msra.mxu0 %v1596_v52  ;;  %v1360_v18 = vcombine.low %v558_v9, %v572_v14  ;;  %v594_v28 = vor.u32 %v593_v23, %v590_v21  ;;  %v599_v33 = vrot.slane %v597_v25, 5  ;;  %v1384_v34 = vrot.slane %v837_v29, 9  ;;  %s235_s28 = sadd.s32 %s1626_s15, %s1322_s14 }
  0x26   : > { %1516 = vmatprep.subr.bf16.mxu0 %v1794_v1  ;;  %1504 = vmatprep.mubr.msk.bf16.mxu0 %vm299_vm0, %v1369_v15  ;;  %v581_v32 = vrot.slane %v580_v24, 4  ;;  %v1385_v35 = vrot.slane %v838_v30, 9  ;;  %v1386_v43 = vrot.slane %v839_v38, 9  ;;  %v868_v50 = vrot.slane %v1764_v31, 5  ;;  %p236_p6 = scmp.lt.s32.totalorder %s235_s28, 3 }
  0x27   : > { %1497 = vmatmul.mubr.msk.bf16.vlgmr.msra.gmra.mxu1 %vm299_vm0, %v1360_v18  ;;  %v595_v36 = vrot.slane %v594_v28, 4  ;;  %v861_v40 = vsel %vm1818_vm6, %v1384_v34, %v860_v62  ;;  %v1387_v52 = vrot.slane %v840_v42, 9  ;;  %v872_v53 = vrot.slane %v1769_v37, 5 }
  0x28   : > { %1509 = vmatpush3.bf16.msra.mxu1 %v1595_v46  ;;  %1512 = vmatprep.mubr.msk.bf16.mxu1 %vm299_vm0, %v1360_v18  ;;  %v586_v39 = vsel %vm1777_vm4, %v581_v32, %v585_v20  ;;  %v865_v41 = vsel %vm1818_vm6, %v1385_v35, %v864_v27  ;;  %v1388_v54 = vrot.slane %v841_v44, 9  ;;  %v869_v55 = vsel %vm1818_vm6, %v1386_v43, %v868_v50  ;;  %s1938_s28 = smov (!%p236_p6, %s235_s28), 3 }
  0x29   : > { %1510 = vmatprep.subr.bf16.mxu1 %v1597_v19  ;;  %v1370_v45 = vcombine.low %v572_v14, %v586_v39  ;;  %v600_v46 = vsel %vm1777_vm4, %v595_v36, %v599_v33  ;;  %v1394_v49 = vcombine.low %v861_v40, %v865_v41  ;;  %v876_v56 = vrot.slane %v1798_v3, 5  ;;  %s1425_s15 = sshll.u32 %s1938_s28, 4  ;;  %s247_s7 = scalar_lea.vmem %s1921_s3, %s1938_s28 }
  0x2a   : > { %v1379_v51 = vcombine.low %v586_v39, %v600_v46  ;;  %v873_v31 = vsel %vm1818_vm6, %v1387_v52, %v872_v53  ;;  %v1404_v37 = vcombine.low %v865_v41, %v869_v55  ;;  %v1389_v61 = vrot.slane %v842_v58, 9  ;;  %s240_s30 = scalar_lea.vmem %s1920_s2, %s1425_s15  ;;  %s254_s10 = scalar_lea.vmem %s1922_s4, %s1938_s28 }
  0x2b   : > { %1505 = vmatmul.mubr.msk.bf16.vlgmr.msra.gmra.mxu0 %vm299_vm0, %v1370_v45  ;;  %v877_v59 = vsel %vm1818_vm6, %v1388_v54, %v876_v56  ;;  %v1395_v60 = vcombine.low %v869_v55, %v873_v31  ;;  %v880_v62 = vrot.slane %v1805_v11, 5 }
  0x2c   : > { %1511 = vmatpush3.bf16.msra.mxu1 %v1597_v19  ;;  %1517 = vmatpush3.bf16.msra.mxu0 %v1794_v1  ;;  %v1405_v63 = vcombine.low %v873_v31, %v877_v59 }
  0x2d   : > { %1524 = vmatprep.subr.bf16.mxu1 %v1599_v22  ;;  %1520 = vmatprep.mubr.msk.bf16.mxu0 %vm299_vm0, %v1394_v49  ;;  %v881_v1 = vsel %vm1818_vm6, %v1389_v61, %v880_v62 }
  0x2e   : > { %1518 = vmatprep.subr.bf16.mxu0 %v1600_v48  ;;  %v1414_v2 = vcombine.low %v877_v59, %v881_v1 }
  0x2f   : > { %1513 = vmatmul.mubr.msk.bf16.vlgmr.msra.gmra.mxu1 %vm299_vm0, %v1379_v51 }
  0x30   : > { %1525 = vmatpush3.bf16.msra.mxu1 %v1599_v22  ;;  %1528 = vmatprep.mubr.msk.bf16.mxu1 %vm299_vm0, %v1404_v37 }
  0x31   : > { %1526 = vmatprep.subr.bf16.mxu1 %v1601_v47  ;;  %1519 = vmatpush3.bf16.msra.mxu0 %v1600_v48 }
  0x32   : > { %1532 = vmatprep.subr.bf16.mxu0 %v1602_v57 }
  0x34   : > { %1527 = vmatpush3.bf16.msra.mxu1 %v1601_v47  ;;  %1521 = vmatmul.mubr.msk.bf16.vlgmr.msra.gmra.mxu0 %vm299_vm0, %v1395_v60 }
  0x35   : > { %1533 = vmatpush3.bf16.msra.mxu0 %v1602_v57  ;;  %1536 = vmatprep.mubr.msk.bf16.mxu0 %vm299_vm0, %v1395_v60 }
  0x36   : > { %1534 = vmatprep.subr.bf16.mxu0 %v1603_v0 }
  0x37   : > { %1529 = vmatmul.mubr.msk.bf16.vlgmr.msra.gmra.mxu1 %vm299_vm0, %v1405_v63 }
  0x39   : > { %1535 = vmatpush3.bf16.msra.mxu0 %v1603_v0 }
  0x3c   : > { %1537 = vmatmul.mubr.msk.bf16.vlgmr.msra.gmra.mxu0 %vm299_vm0, %v1414_v2 }
  0xd8   : > { %v1474_v3 = vpop.f32.mrf.mxu0 }
  0xda   : > { %v1482_v4 = vpop.f32.mrf.mxu1  ;;  %v340_v5 = vpop.f32.mrf.mxu0 }
  0xdb   : > { %v420_v17 = vadd.f32 %v1482_v4, %v1474_v3 }
  0xdc   : > { %v411_v6 = vpop.f32.mrf.mxu1  ;;  %v1475_v7 = vpop.f32.mrf.mxu0 }
  0xdd   : > { %v412_v19 = vadd.f32 %v411_v6, %v340_v5 }
  0xde   : > { %v343_v8 = vpop.f32.mrf.mxu0  ;;  %v1483_v9 = vpop.f32.mrf.mxu1 }
  0xdf   : > { %v423_v25 = vadd.f32 %v1483_v9, %v1475_v7 }
  0xe0   : > { %v1490_v10 = vpop.f32.mrf.mxu0  ;;  %v414_v12 = vpop.f32.mrf.mxu1 }
  0xe1   : > { %v500_v20 = vadd.f32 %v1490_v10, %v420_v17  ;;  %v415_v28 = vadd.f32 %v414_v12, %v343_v8 }
  0xe2   : > { %v483_v11 = vpop.f32.mrf.mxu0 }
  0xe3   : > { %v498_v24 = vadd.f32 %v483_v11, %v412_v19 }
  0xe4   : > { %v1491_v13 = vpop.f32.mrf.mxu0 }
  0xe5   : > { %v501_v30 = vadd.f32 %v1491_v13, %v423_v25 }
  0xe6   : > { %v486_v16 = vpop.f32.mrf.mxu0 }
  0xe7   : > { %v1498_v14 = vpop.f32.mrf.mxu1  ;;  %v499_v35 = vadd.f32 %v486_v16, %v415_v28 }
  0xe8   : > { %v681_v29 = vadd.f32 %v1498_v14, %v500_v20 }
  0xe9   : > { %v664_v15 = vpop.f32.mrf.mxu1 }
  0xea   : > { %v679_v34 = vadd.f32 %v664_v15, %v498_v24 }
  0xeb   : > { %v1499_v18 = vpop.f32.mrf.mxu1  ;;  %v1506_v23 = vpop.f32.mrf.mxu0 }
  0xec   : > { %v760_v36 = vadd.f32 %v1506_v23, %v681_v29  ;;  %v682_v40 = vadd.f32 %v1499_v18, %v501_v30 }
  0xed   : > { %v667_v21 = vpop.f32.mrf.mxu1  ;;  %v743_v27 = vpop.f32.mrf.mxu0 }
  0xee   : > { %v758_v39 = vadd.f32 %v743_v27, %v679_v34  ;;  %v680_v43 = vadd.f32 %v667_v21, %v499_v35 }
  0xef   : > { %v1514_v26 = vpop.f32.mrf.mxu1  ;;  %v1507_v33 = vpop.f32.mrf.mxu0 }
  0xf0   : > { %v835_v44 = vadd.f32 %v1514_v26, %v760_v36  ;;  %v761_v45 = vadd.f32 %v1507_v33, %v682_v40 }
  0xf1   : > { %v818_v32 = vpop.f32.mrf.mxu1  ;;  %v746_v38 = vpop.f32.mrf.mxu0 }
  0xf2   : > { %v833_v49 = vadd.f32 %v818_v32, %v758_v39  ;;  %v759_v50 = vadd.f32 %v746_v38, %v680_v43 }
  0xf3   : > { %v1515_v22 = vpop.f32.mrf.mxu1 }
  0xf4   : > { %v1522_v42 = vpop.f32.mrf.mxu0  ;;  %v836_v47 = vadd.f32 %v1515_v22, %v761_v45 }
  0xf5   : > { %v821_v41 = vpop.f32.mrf.mxu1  ;;  %v962_v51 = vadd.f32 %v1522_v42, %v835_v44 }
  0xf6   : > { %v945_v48 = vpop.f32.mrf.mxu0  ;;  %v834_v31 = vadd.f32 %v821_v41, %v759_v50 }
  0xf7   : > { %v1530_v46 = vpop.f32.mrf.mxu1  ;;  %v960_v54 = vadd.f32 %v945_v48, %v833_v49 }
  0xf8   : > { %v1523_v53 = vpop.f32.mrf.mxu0  ;;  %v1041_v37 = vadd.f32 %v1530_v46, %v962_v51 }
  0xf9   : > { %v1024_v52 = vpop.f32.mrf.mxu1  ;;  %v963_v57 = vadd.f32 %v1523_v53, %v836_v47 }
  0xfa   : > { %v948_v56 = vpop.f32.mrf.mxu0  ;;  %v1039_v59 = vadd.f32 %v1024_v52, %v960_v54 }
  0xfb   : > { %v1531_v55 = vpop.f32.mrf.mxu1  ;;  %v961_v60 = vadd.f32 %v948_v56, %v834_v31 }
  0xfc   : > { %v1538_v58 = vpop.f32.mrf.mxu0  ;;  %v1042_v2 = vadd.f32 %v1531_v55, %v963_v57 }
  0xfd   : > { %v1116_v61 = vadd.f32 %v1538_v58, %v1041_v37  ;;  %v1027_v62 = vpop.f32.mrf.mxu1 }
  0xfe   : > { %v1099_v63 = vpop.f32.mrf.mxu0  ;;  %v1040_v4 = vadd.f32 %v1027_v62, %v961_v60 }
  0xff   : > { %v1430_v0 = vpack.c.bf16 %v1116_v61, %v1116_v61  ;;  %v1114_v1 = vadd.f32 %v1099_v63, %v1039_v59  ;;  %v1157_v10 = vmul.f32 %v1116_v61, %v1116_v61  ;;  %v1143_v17 = vsel %vm1139_vm8, %v1116_v61, 0.0 }
 0x100   : > { %v1539_v3 = vpop.f32.mrf.mxu0 }
 0x101   : > { %1137 = vst.msk [vmem:[%s240_s30 + $0x8] sm:$0xf] %vm1134_vm7, %v1430_v0  ;;  %v1428_v5 = vpack.c.bf16 %v1114_v1, %v1114_v1  ;;  %v1117_v6 = vadd.f32 %v1539_v3, %v1042_v2  ;;  %v1155_v8 = vmul.f32 %v1114_v1, %v1114_v1  ;;  %v1140_v12 = vsel %vm1139_vm8, %v1114_v1, 0.0 }
 0x102   : > { %v1102_v7 = vpop.f32.mrf.mxu0  ;;  %v1162_v24 = vsel %vm1139_vm8, %v1157_v10, 0.0 }
 0x103   : > { %1135 = vst.msk [vmem:[%s240_s30] sm:$0xf] %vm1134_vm7, %v1428_v5  ;;  %v1115_v9 = vadd.f32 %v1102_v7, %v1040_v4  ;;  %v1431_v11 = vpack.c.bf16 %v1117_v6, %v1117_v6  ;;  %v1159_v18 = vsel %vm1139_vm8, %v1155_v8, 0.0  ;;  %v1158_v19 = vmul.f32 %v1117_v6, %v1117_v6 }
 0x104   : > { %v1145_v25 = vsel %vm1139_vm8, %v1117_v6, 0.0 }
 0x105   : > { %v1429_v13 = vpack.c.bf16 %v1115_v9, %v1115_v9  ;;  %v1141_v14 = vsel %vm1139_vm8, %v1115_v9, 0.0  ;;  %v1156_v15 = vmul.f32 %v1115_v9, %v1115_v9  ;;  %1138 = vst.msk [vmem:[%s240_s30 + $0xc] sm:$0xf] %vm1134_vm7, %v1431_v11  ;;  %v1164_v28 = vsel %vm1139_vm8, %v1158_v19, 0.0 }
 0x106   : > { %v1142_v16 = vadd.f32 %v1141_v14, %v1140_v12 }
 0x107   : > { %1136 = vst.msk [vmem:[%s240_s30 + $0x4] sm:$0xf] %vm1134_vm7, %v1429_v13  ;;  %v1160_v20 = vsel %vm1139_vm8, %v1156_v15, 0.0 }
 0x108   : > { %v1144_v21 = vadd.f32 %v1143_v17, %v1142_v16  ;;  %v1161_v23 = vadd.f32 %v1160_v20, %v1159_v18 }
 0x10a   : > { %v1146_v26 = vadd.f32 %v1145_v25, %v1144_v21  ;;  %v1163_v27 = vadd.f32 %v1162_v24, %v1161_v23 }
 0x10c   : > { %v1147_v29 = vrot.slane %v1146_v26, 4  ;;  %v1165_v30 = vadd.f32 %v1164_v28, %v1163_v27 }
 0x10e   : > { %v1148_v32 = vadd.f32 %v1147_v29, %v1146_v26  ;;  %v1166_v33 = vrot.slane %v1165_v30, 4 }
 0x110   : > { %v1149_v34 = vrot.slane %v1148_v32, 2  ;;  %v1167_v35 = vadd.f32 %v1166_v33, %v1165_v30 }
 0x112   : > { %v1150_v36 = vadd.f32 %v1149_v34, %v1148_v32  ;;  %v1168_v22 = vrot.slane %v1167_v35, 2 }
 0x114   : > { %v1151_v38 = vrot.slane %v1150_v36, 1  ;;  %v1169_v39 = vadd.f32 %v1168_v22, %v1167_v35 }
 0x116   : > { %v1152_v40 = vadd.f32 %v1151_v38, %v1150_v36  ;;  %v1170_v41 = vrot.slane %v1169_v39, 1 }
 0x118   : > { %1154 = vst.msk [vmem:[%s247_s7] sm:$0x1] %vm1153_vm9, %v1152_v40  ;;  %v1171_v42 = vadd.f32 %v1170_v41, %v1169_v39 }
 0x11a   : > { %1172 = vst.msk [vmem:[%s254_s10] sm:$0x1] %vm1153_vm9, %v1171_v42 }
 0x11b PF: > { %s15_s19 = sadd.s32 1, %s1642_s19   ;;  %s1927_s15 = smov %s1634_s17 }
 0x11c   : > { %p12_p7 = scmp.ge.s32.totalorder %s15_s19, 6   ;;  %s1928_s16 = smov %s1638_s18 }
 0x11d   : > { %s1929_s17 = smov %s1932_s20  ;;  %s1930_s18 = smov %s1936_s21 }
 0x11e   :  { %14 = sbr.rel (!%p12_p7) target bundleno = 3 (0x3), region = 91 }

// kernel: vgg16_forward.12
= control target key start
LH: loop header
LB: loop body
LE: loop exit
PB: predicated region body
PF: predicated region fallthrough
CT: control target
= control target key end

     0   :  { %s1910_s15 = smov 0   ;;  %s1912_s16 = smov 0   ;;  %s2228_s0 = inlined_call_operand.vmem [shape: bf16[2,6,6,64], index: 0, kind: input, shape index: {}]   ;;  %s2229_s1 = inlined_call_operand.vmem [shape: bf16[3,3,64,128], index: 1, kind: input, shape index: {}]   ;;  %s2230_s2 = inlined_call_operand.vmem [shape: bf16[2,16,128], index: 2, kind: output, shape index: {0}]   ;;  %s2231_s3 = inlined_call_operand.vmem [shape: f32[2,1,128], index: 3, kind: output, shape index: {1}]   ;;  %s2232_s4 = inlined_call_operand.vmem [shape: f32[2,1,128], index: 4, kind: output, shape index: {2}]  }
   0x1   :  { %s1914_s17 = smov 0  }
   0x2 LB: > { %s27_s18 = sadd.s32 1, %s1876_s16  ;;  %p1493_p0 = scmp.ge.s32.totalorder %s1880_s17, 1  ;;  %s1880_s17 = sphi %s1914_s17, %s15_s17   ;;  %s1876_s16 = sphi %s1912_s16, %s2244_s16   ;;  %s1872_s15 = sphi %s1910_s15, %s2243_s15  }
   0x3   : > { %p29_p1 = scmp.ge.s32.totalorder %s27_s18, 2  ;;  %p185_p2 = scmp.lt.s32.totalorder %s1880_s17, 3 }
   0x5   : > { %s2246_s18 = smov (%p29_p1, %s27_s18), 0  ;;  %p186_p3 = pnand %p1493_p0, %p185_p2 }
   0x6   : > { %p220_p4 = scmp.lt.s32.totalorder (!%p186_p3), %s1872_s15, 1 }
   0x7   : > { %189 = sbr.rel (%p186_p3) target bundleno = 309 (0x135), region = 28 }
   0xc   : > { %v1817_v0 = vld [vmem:[%s2229_s1 + $0x78] sm:$0xff]   ;;  %v1882_v1 = vmov 0.0   ;;  %v1819_v3 = vld [vmem:[%s2229_s1 + $0x70] sm:$0xff]   ;;  %vm1883_vm0 = vmmov 0   ;;  %v278_v5 = vlaneseq  ;;  %s2248_s15 = smov (!%p220_p4, %s1872_s15), 1  ;;  %v1821_v6 = vld [vmem:[%s2229_s1 + $0x68] sm:$0xff]  }
   0xd   : > { %1681 = vmatprep.subr.bf16.mxu0 %v1882_v1  ;;  %1693 = vmatprep.subr.bf16.mxu1 %v1882_v1  ;;  %v1818_v2 = vld [vmem:[%s2229_s1 + $0x18] sm:$0xff]   ;;  %v1820_v4 = vld [vmem:[%s2229_s1 + $0x10] sm:$0xff]   ;;  %s1789_s29 = smul.u32 24, %s2248_s15  ;;  %v1822_v7 = vld [vmem:[%s2229_s1 + $0x8] sm:$0xff]   ;;  %v1884_v12 = vmov 1983009808   ;;  %s235_s11 = scalar_lea.vmem %s2231_s3, %s2248_s15 }
   0xe   : > { %1682 = vmatpush3.bf16.msra.mxu0 %v1817_v0  ;;  %1689 = vmatprep.mubr.msk.bf16.mxu0 %vm1883_vm0, %v1882_v1  ;;  %v279_v8 = vshrl.u32 %v278_v5, 7  ;;  %v276_v13 = vunpack.c.l.s4 %v1884_v12  ;;  %v1823_v14 = vld [vmem:[%s2229_s1 + $0x60] sm:$0xff]   ;;  %v1830_v29 = vld [vmem:[%s2229_s1 + $0xd8] sm:$0xff]   ;;  %vm314_vm1 = vcmask 523264   ;;  %v1832_v34 = vld [vmem:[%s2229_s1 + $0xd0] sm:$0xff]   ;;  %vm1025_vm9 = vcmask 1040384   ;;  %s240_s14 = scalar_lea.vmem %s2232_s4, %s2248_s15 }
   0xf   : > { %1694 = vmatpush3.bf16.msra.mxu1 %v1818_v2  ;;  %1683 = vmatprep.subr.bf16.mxu0 %v1882_v1  ;;  %s1962_s8 = scalar_lea.vmem %s2228_s0, %s1789_s29  ;;  %v1824_v18 = vld [vmem:[%s2229_s1] sm:$0xff]   ;;  %v1831_v30 = vld [vmem:[%s2229_s1 + $0x38] sm:$0xff]   ;;  %v1833_v35 = vld [vmem:[%s2229_s1 + $0x30] sm:$0xff]   ;;  %vm594_vm2 = vsmask.f32 1280  ;;  %vm1026_vm10 = vcmask 1042434  }
  0x10   : > { %1695 = vmatprep.subr.bf16.mxu1 %v1882_v1  ;;  %1701 = vmatprep.mubr.msk.bf16.mxu1 %vm1883_vm0, %v1882_v1  ;;  %v247_v9 = vld [vmem:[%s1962_s8 + $0x4] sm:$0x3]  ;;  %v248_v10 = vld [vmem:[%s1962_s8 + $0x8] sm:$0x3]  ;;  %v249_v11 = vld [vmem:[%s1962_s8 + $0xc] sm:$0x3]  ;;  %v277_v20 = vunpack.c.0.s8 %v276_v13 }
  0x11   : > { %v250_v15 = vld [vmem:[%s1962_s8 + $0x10] sm:$0x3]  ;;  %v273_v16 = vcombine.low %v247_v9, %v248_v10  ;;  %v246_v17 = vld [vmem:[%s1962_s8] sm:$0x3]  ;;  %v361_v22 = vcombine.low %v248_v10, %v249_v11  ;;  %v251_v24 = vld [vmem:[%s1962_s8 + $0x14] sm:$0x3] }
  0x12   : > { %1684 = vmatpush3.bf16.msra.mxu0 %v1819_v3  ;;  %v274_v19 = vcombine.low %v249_v11, %v250_v15  ;;  %v360_v21 = vcombine.low %v246_v17, %v247_v9  ;;  %v1977_v23 = vsub.s32 %v277_v20, %v279_v8  ;;  %v455_v33 = vcombine.low %v250_v15, %v251_v24  ;;  %v1528_v36 = vld.sshfl [vmem:[%s1962_s8] sm:$0x13 pattern:$0x76325410]  ;;  %v1834_v42 = vld [vmem:[%s2229_s1 + $0xc8] sm:$0xff]   ;;  %v1838_v12 = vld [vmem:[%s2229_s1 + $0x98] sm:$0xff]  }
  0x13   : > { %1696 = vmatpush3.bf16.msra.mxu1 %v1820_v4  ;;  %1685 = vmatprep.subr.bf16.mxu0 %v1882_v1  ;;  %v1529_v37 = vld.sshfl [vmem:[%s1962_s8 + $0x4] sm:$0x13 pattern:$0x76325410]  ;;  %v553_v38 = vcombine.high %v1528_v36, %v1528_v36  ;;  %vm595_vm3 = vsmask.f32 3336  ;;  %vm2080_vm11 = vmor %vm1025_vm9, %vm1026_vm10 }
  0x14   : > { %1697 = vmatprep.subr.bf16.mxu1 %v1882_v1  ;;  %v281_v25 = vrot.slane %v273_v16, %v1977_v23  ;;  %v288_v26 = vrot.slane %v274_v19, %v1977_v23  ;;  %v368_v27 = vrot.slane %v360_v21, %v1977_v23  ;;  %v1984_v28 = vrot.slane %v361_v22, %v1977_v23  ;;  %v1530_v39 = vld.sshfl [vmem:[%s1962_s8 + $0x8] sm:$0x13 pattern:$0x76325410]  ;;  %vm596_vm4 = vmor %vm594_vm2, %vm595_vm3  ;;  %v1836_v62 = vld [vmem:[%s2229_s1 + $0xc0] sm:$0xff]   ;;  %s1628_s30 = sshll.u32 %s2248_s15, 3 }
  0x15   : > { %v561_v40 = vcombine.high %v1529_v37, %v1529_v37  ;;  %v2009_v41 = vrot.slane %v455_v33, %v1977_v23  ;;  %v1835_v43 = vld [vmem:[%s2229_s1 + $0x28] sm:$0xff]   ;;  %v569_v45 = vcombine.high %v1530_v39, %v1530_v39  ;;  %vm597_vm5 = vsmask.f32 5392  ;;  %v1837_v4 = vld [vmem:[%s2229_s1 + $0x20] sm:$0xff]   ;;  %s230_s7 = scalar_lea.vmem %s2230_s2, %s1628_s30 }
  0x16   : > { %1686 = vmatpush3.bf16.msra.mxu0 %v1821_v6  ;;  %v289_v31 = vcombine.low %v281_v25, %v288_v26  ;;  %v376_v32 = vcombine.low %v368_v27, %v1984_v28  ;;  %v1531_v44 = vld.sshfl [vmem:[%s1962_s8 + $0xc] sm:$0x13 pattern:$0x76325410]  ;;  %vm599_vm6 = vsmask.f32 7448  ;;  %vm2024_vm7 = vmor %vm596_vm4, %vm597_vm5 }
  0x17   : > { %1698 = vmatpush3.bf16.msra.mxu1 %v1822_v7  ;;  %1687 = vmatprep.subr.bf16.mxu0 %v1882_v1  ;;  %v577_v46 = vcombine.high %v1531_v44, %v1531_v44  ;;  %v602_v47 = vshrl.u32 %v1528_v36, 16  ;;  %v605_v48 = vshll.u32 %v1528_v36, 16  ;;  %v611_v49 = vshll.u32 %v553_v38, 16  ;;  %vm2037_vm8 = vmor %vm2024_vm7, %vm599_vm6  ;;  %v1840_v27 = vld [vmem:[%s2229_s1 + $0x90] sm:$0xff]  }
  0x18   : > { %1699 = vmatprep.subr.bf16.mxu1 %v1882_v1  ;;  %v616_v50 = vshrl.u32 %v1529_v37, 16  ;;  %v619_v51 = vshll.u32 %v1529_v37, 16  ;;  %v625_v52 = vshll.u32 %v561_v40, 16  ;;  %v630_v56 = vshrl.u32 %v1530_v39, 16 }
  0x19   : > { %v604_v54 = vrot.slane %v602_v47, 6  ;;  %v607_v55 = vrot.slane %v605_v48, 7  ;;  %v633_v57 = vshll.u32 %v1530_v39, 16  ;;  %v613_v58 = vrot.slane %v611_v49, 7 }
  0x1a   : > { %1688 = vmatpush3.bf16.msra.mxu0 %v1823_v14  ;;  %v618_v59 = vrot.slane %v616_v50, 6  ;;  %v621_v60 = vrot.slane %v619_v51, 7  ;;  %v627_v61 = vrot.slane %v625_v52, 7  ;;  %v632_v0 = vrot.slane %v630_v56, 6 }
  0x1b   : > { %1700 = vmatpush3.bf16.msra.mxu1 %v1824_v18  ;;  %1705 = vmatprep.subr.bf16.mxu0 %v1882_v1  ;;  %v608_v63 = vor.u32 %v607_v55, %v604_v54  ;;  %v635_v2 = vrot.slane %v633_v57, 7  ;;  %v639_v3 = vshll.u32 %v569_v45, 16  ;;  %v644_v7 = vshrl.u32 %v1531_v44, 16  ;;  %v1841_v54 = vld [vmem:[%s2229_s1 + $0xf0] sm:$0xff]  }
  0x1c   : > { %1717 = vmatprep.subr.bf16.mxu1 %v1882_v1  ;;  %v622_v6 = vor.u32 %v621_v60, %v618_v59  ;;  %v647_v8 = vshll.u32 %v1531_v44, 16  ;;  %v653_v9 = vshll.u32 %v577_v46, 16  ;;  %v463_v17 = vcombine.low %v1984_v28, %v2009_v41  ;;  %v1532_v28 = vld.sshfl [vmem:[%s1962_s8 + $0x10] sm:$0x13 pattern:$0x76325410] }
  0x1d   : > { %1690 = vmatmul.mubr.msk.bf16.vlgmr.msra.gmra.mxu0 %vm314_vm1, %v289_v31  ;;  %v609_v10 = vrot.slane %v608_v63, 2  ;;  %v636_v11 = vor.u32 %v635_v2, %v632_v0  ;;  %v641_v14 = vrot.slane %v639_v3, 7  ;;  %v646_v15 = vrot.slane %v644_v7, 6  ;;  %v1842_v46 = vld [vmem:[%s2229_s1 + $0x88] sm:$0xff]   ;;  %v1846_v7 = vld [vmem:[%s2229_s1 + $0x58] sm:$0xff]  }
  0x1e   : > { %1702 = vmatmul.mubr.msk.bf16.vlgmr.msra.gmra.mxu1 %vm314_vm1, %v376_v32  ;;  %1706 = vmatpush3.bf16.msra.mxu0 %v1830_v29  ;;  %v623_v13 = vrot.slane %v622_v6, 2  ;;  %v649_v16 = vrot.slane %v647_v8, 7  ;;  %v655_v20 = vrot.slane %v653_v9, 7  ;;  %v585_v29 = vcombine.high %v1532_v28, %v1532_v28 }
  0x1f   : > { %1718 = vmatpush3.bf16.msra.mxu1 %v1831_v30  ;;  %1707 = vmatprep.subr.bf16.mxu0 %v1882_v1  ;;  %v614_v18 = vsel %vm2037_vm8, %v609_v10, %v613_v58  ;;  %v637_v19 = vrot.slane %v636_v11, 2  ;;  %v658_v30 = vshrl.u32 %v1532_v28, 16  ;;  %v661_v31 = vshll.u32 %v1532_v28, 16  ;;  %v1844_v58 = vld [vmem:[%s2229_s1 + $0x80] sm:$0xff]  }
  0x20   : > { %1719 = vmatprep.subr.bf16.mxu1 %v1882_v1  ;;  %1713 = vmatprep.mubr.msk.bf16.mxu0 %vm1883_vm0, %v1882_v1  ;;  %v628_v21 = vsel %vm2037_vm8, %v623_v13, %v627_v61  ;;  %v650_v22 = vor.u32 %v649_v16, %v646_v15  ;;  %v667_v38 = vshll.u32 %v585_v29, 16  ;;  %vm1028_vm12 = vcmask 1044484   ;;  %v1574_v63 = vld.sshfl [vmem:[%s1962_s8 + $0x4] sm:$0x12 pattern:$0x76325410] }
  0x21   : > { %1725 = vmatprep.mubr.msk.bf16.mxu1 %vm1883_vm0, %v1882_v1  ;;  %v694_v24 = vcombine.low %v614_v18, %v628_v21  ;;  %v642_v25 = vsel %vm2037_vm8, %v637_v19, %v641_v14  ;;  %v660_v36 = vrot.slane %v658_v30, 6  ;;  %v663_v37 = vrot.slane %v661_v31, 7  ;;  %vm2101_vm13 = vmor %vm2080_vm11, %vm1028_vm12  ;;  %v1575_v9 = vld.sshfl [vmem:[%s1962_s8 + $0x8] sm:$0x12 pattern:$0x76325410] }
  0x22   : > { %1708 = vmatpush3.bf16.msra.mxu0 %v1832_v34  ;;  %v651_v26 = vrot.slane %v650_v22, 2  ;;  %v1533_v34 = vld.sshfl [vmem:[%s1962_s8 + $0x14] sm:$0x13 pattern:$0x76325410]  ;;  %v669_v45 = vrot.slane %v667_v38, 7  ;;  %v790_v47 = vcombine.low %v628_v21, %v642_v25  ;;  %v992_v10 = vcombine.high %v1574_v63, %v1574_v63 }
  0x23   : > { %1720 = vmatpush3.bf16.msra.mxu1 %v1833_v35  ;;  %1709 = vmatprep.subr.bf16.mxu0 %v1882_v1  ;;  %v702_v33 = vrot.slane %v694_v24, %v1977_v23  ;;  %v593_v39 = vcombine.high %v1533_v34, %v1533_v34  ;;  %v672_v40 = vshrl.u32 %v1533_v34, 16  ;;  %v675_v41 = vshll.u32 %v1533_v34, 16  ;;  %v1576_v13 = vld.sshfl [vmem:[%s1962_s8 + $0xc] sm:$0x12 pattern:$0x76325410] }
  0x24   : > { %1721 = vmatprep.subr.bf16.mxu1 %v1882_v1  ;;  %v656_v32 = vsel %vm2037_vm8, %v651_v26, %v655_v20  ;;  %v664_v44 = vor.u32 %v663_v37, %v660_v36  ;;  %v798_v60 = vrot.slane %v790_v47, %v1977_v23  ;;  %vm1030_vm14 = vcmask 1046534   ;;  %v1577_v22 = vld.sshfl [vmem:[%s1962_s8 + $0x10] sm:$0x12 pattern:$0x76325410]  ;;  %v1845_v28 = vld [vmem:[%s2229_s1 + $0xe0] sm:$0xff]  }
  0x25   : > { %v695_v35 = vcombine.low %v642_v25, %v656_v32  ;;  %v674_v48 = vrot.slane %v672_v40, 6  ;;  %v677_v49 = vrot.slane %v675_v41, 7  ;;  %v681_v50 = vshll.u32 %v593_v39, 16  ;;  %vm2121_vm15 = vmor %vm2101_vm13, %vm1030_vm14  ;;  %v1848_v29 = vld [vmem:[%s2229_s1 + $0x50] sm:$0xff]   ;;  %v1847_v36 = vld [vmem:[%s2229_s1 + $0xb8] sm:$0xff]  }
  0x26   : > { %1710 = vmatpush3.bf16.msra.mxu0 %v1834_v42  ;;  %v665_v52 = vrot.slane %v664_v44, 2  ;;  %v1580_v11 = vrot.slane %v1574_v63, 9  ;;  %v1000_v14 = vcombine.high %v1575_v9, %v1575_v9  ;;  %v1581_v16 = vrot.slane %v1575_v9, 9  ;;  %v1850_v37 = vld [vmem:[%s2229_s1 + $0x48] sm:$0xff]   ;;  %v1852_v44 = vld [vmem:[%s2229_s1 + $0x40] sm:$0xff]  }
  0x27   : > { %1722 = vmatpush3.bf16.msra.mxu1 %v1835_v43  ;;  %1711 = vmatprep.subr.bf16.mxu0 %v1882_v1  ;;  %v2069_v42 = vrot.slane %v695_v35, %v1977_v23  ;;  %v1839_v43 = vld [vmem:[%s2229_s1 + $0xf8] sm:$0xff]   ;;  %v678_v55 = vor.u32 %v677_v49, %v674_v48  ;;  %v683_v56 = vrot.slane %v681_v50, 7  ;;  %v1008_v18 = vcombine.high %v1576_v13, %v1576_v13  ;;  %v1578_v40 = vld.sshfl [vmem:[%s1962_s8 + $0x14] sm:$0x12 pattern:$0x76325410] }
  0x28   : > { %1723 = vmatprep.subr.bf16.mxu1 %v1882_v1  ;;  %v670_v57 = vsel %vm2037_vm8, %v665_v52, %v669_v45  ;;  %v1038_v5 = vrot.slane %v992_v10, 7  ;;  %v1582_v20 = vrot.slane %v1576_v13, 9  ;;  %v1042_v21 = vrot.slane %v1000_v14, 7  ;;  %v1851_v50 = vld [vmem:[%s2229_s1 + $0xa8] sm:$0xff]   ;;  %v1857_v63 = vld [vmem:[%s2229_s1 + $0x100] sm:$0xff]  }
  0x29   : > { %v710_v51 = vcombine.low %v702_v33, %v2069_v42  ;;  %v791_v59 = vcombine.low %v656_v32, %v670_v57  ;;  %v679_v61 = vrot.slane %v678_v55, 2  ;;  %v1046_v24 = vrot.slane %v1008_v18, 7 }
  0x2a   : > { %1712 = vmatpush3.bf16.msra.mxu0 %v1836_v62  ;;  %v1573_v62 = vld.sshfl [vmem:[%s1962_s8] sm:$0x12 pattern:$0x76325410]  ;;  %v1043_v30 = vsel %vm2121_vm15, %v1581_v16, %v1042_v21  ;;  %v1016_v32 = vcombine.high %v1577_v22, %v1577_v22  ;;  %v1583_v38 = vrot.slane %v1577_v22, 9  ;;  %v1584_v52 = vrot.slane %v1578_v40, 9 }
  0x2b   : > { %1724 = vmatpush3.bf16.msra.mxu1 %v1837_v4  ;;  %1729 = vmatprep.subr.bf16.mxu0 %v1882_v1  ;;  %v984_v0 = vcombine.high %v1573_v62, %v1573_v62  ;;  %v1579_v3 = vrot.slane %v1573_v62, 9  ;;  %v1843_v4 = vld [vmem:[%s2229_s1 + $0xe8] sm:$0xff]   ;;  %v805_v6 = vrot.slane %v791_v59, %v1977_v23  ;;  %v684_v8 = vsel %vm2037_vm8, %v679_v61, %v683_v56  ;;  %v1853_v56 = vld [vmem:[%s2229_s1 + $0xa0] sm:$0xff]  }
  0x2c   : > { %1741 = vmatprep.subr.bf16.mxu1 %v1882_v1  ;;  %v1047_v31 = vsel %vm2121_vm15, %v1582_v20, %v1046_v24  ;;  %v1050_v39 = vrot.slane %v1016_v32, 7  ;;  %v1856_v61 = vld [vmem:[%s2229_s1 + $0x108] sm:$0xff]  }
  0x2d   : > { %1714 = vmatmul.mubr.msk.bf16.vlgmr.msra.gmra.mxu0 %vm314_vm1, %v463_v17  ;;  %v1034_v15 = vrot.slane %v984_v0, 7  ;;  %v806_v17 = vcombine.low %v798_v60, %v805_v6  ;;  %v1066_v35 = vcombine.low %v1043_v30, %v1047_v31 }
  0x2e   : > { %1730 = vmatpush3.bf16.msra.mxu0 %v1838_v12  ;;  %1737 = vmatprep.mubr.msk.bf16.mxu0 %vm1883_vm0, %v1882_v1  ;;  %v886_v12 = vcombine.low %v670_v57, %v684_v8  ;;  %v1051_v45 = vsel %vm2121_vm15, %v1583_v38, %v1050_v39  ;;  %v1855_v57 = vld [vmem:[%s2229_s1 + $0x110] sm:$0xff]  }
  0x2f   : > { %1731 = vmatprep.subr.bf16.mxu0 %v1882_v1  ;;  %1726 = vmatmul.mubr.msk.bf16.vlgmr.msra.gmra.mxu1 %vm314_vm1, %v710_v51  ;;  %v1035_v26 = vsel %vm2121_vm15, %v1579_v3, %v1034_v15  ;;  %v1162_v49 = vcombine.low %v1047_v31, %v1051_v45  ;;  %v1854_v51 = vld [vmem:[%s2229_s1 + $0x118] sm:$0xff]  }
  0x30   : > { %1742 = vmatpush3.bf16.msra.mxu1 %v1839_v43  ;;  %1749 = vmatprep.mubr.msk.bf16.mxu1 %vm1883_vm0, %v1882_v1  ;;  %v893_v25 = vrot.slane %v886_v12, %v1977_v23  ;;  %v1849_v43 = vld [vmem:[%s2229_s1 + $0xb0] sm:$0xff]  }
  0x31   : > { %1743 = vmatprep.subr.bf16.mxu1 %v1882_v1  ;;  %v1176_v55 = vrot.slane %v1162_v49, %v1977_v23 }
  0x32   : > { %1732 = vmatpush3.bf16.msra.mxu0 %v1840_v27  ;;  %v1039_v27 = vsel %vm2121_vm15, %v1580_v11, %v1038_v5  ;;  %v894_v33 = vcombine.low %v2069_v42, %v893_v25  ;;  %v1080_v42 = vrot.slane %v1066_v35, %v1977_v23 }
  0x33   : > { %1733 = vmatprep.subr.bf16.mxu0 %v1882_v1  ;;  %v1065_v34 = vcombine.low %v1035_v26, %v1039_v27  ;;  %v1161_v48 = vcombine.low %v1039_v27, %v1043_v30 }
  0x34   : > { %1744 = vmatpush3.bf16.msra.mxu1 %v1841_v54 }
  0x35   : > { %1745 = vmatprep.subr.bf16.mxu1 %v1882_v1  ;;  %v1073_v41 = vrot.slane %v1065_v34, %v1977_v23  ;;  %v1169_v54 = vrot.slane %v1161_v48, %v1977_v23 }
  0x36   : > { %1734 = vmatpush3.bf16.msra.mxu0 %v1842_v46  ;;  %v1024_v46 = vcombine.high %v1578_v40, %v1578_v40 }
  0x37   : > { %1735 = vmatprep.subr.bf16.mxu0 %v1882_v1  ;;  %v1081_v47 = vcombine.low %v1073_v41, %v1080_v42  ;;  %v1177_v59 = vcombine.low %v1169_v54, %v1176_v55 }
  0x38   : > { %1746 = vmatpush3.bf16.msra.mxu1 %v1843_v4  ;;  %v1054_v53 = vrot.slane %v1024_v46, 7 }
  0x39   : > { %1747 = vmatprep.subr.bf16.mxu1 %v1882_v1 }
  0x3a   : > { %1736 = vmatpush3.bf16.msra.mxu0 %v1844_v58  ;;  %v1055_v58 = vsel %vm2121_vm15, %v1584_v52, %v1054_v53 }
  0x3b   : > { %1753 = vmatprep.subr.bf16.mxu0 %v1882_v1  ;;  %v1257_v60 = vcombine.low %v1051_v45, %v1055_v58 }
  0x3c   : > { %1748 = vmatpush3.bf16.msra.mxu1 %v1845_v28 }
  0x3d   : > { %1738 = vmatmul.mubr.msk.bf16.vlgmr.msra.gmra.mxu0 %vm314_vm1, %v806_v17  ;;  %1765 = vmatprep.subr.bf16.mxu1 %v1882_v1  ;;  %v1264_v62 = vrot.slane %v1257_v60, %v1977_v23 }
  0x3e   : > { %1754 = vmatpush3.bf16.msra.mxu0 %v1846_v7  ;;  %1761 = vmatprep.mubr.msk.bf16.mxu0 %vm1883_vm0, %v1882_v1 }
  0x3f   : > { %1755 = vmatprep.subr.bf16.mxu0 %v1882_v1  ;;  %1750 = vmatmul.mubr.msk.bf16.vlgmr.msra.gmra.mxu1 %vm314_vm1, %v894_v33  ;;  %v1265_v0 = vcombine.low %v1080_v42, %v1264_v62 }
  0x40   : > { %1766 = vmatpush3.bf16.msra.mxu1 %v1847_v36  ;;  %1773 = vmatprep.mubr.msk.bf16.mxu1 %vm1883_vm0, %v1882_v1 }
  0x41   : > { %1767 = vmatprep.subr.bf16.mxu1 %v1882_v1 }
  0x42   : > { %1756 = vmatpush3.bf16.msra.mxu0 %v1848_v29 }
  0x43   : > { %1757 = vmatprep.subr.bf16.mxu0 %v1882_v1 }
  0x44   : > { %1768 = vmatpush3.bf16.msra.mxu1 %v1849_v43 }
  0x45   : > { %1769 = vmatprep.subr.bf16.mxu1 %v1882_v1 }
  0x46   : > { %1758 = vmatpush3.bf16.msra.mxu0 %v1850_v37 }
  0x47   : > { %1759 = vmatprep.subr.bf16.mxu0 %v1882_v1 }
  0x48   : > { %1770 = vmatpush3.bf16.msra.mxu1 %v1851_v50 }
  0x49   : > { %1771 = vmatprep.subr.bf16.mxu1 %v1882_v1 }
  0x4a   : > { %1760 = vmatpush3.bf16.msra.mxu0 %v1852_v44 }
  0x4b   : > { %1777 = vmatprep.subr.bf16.mxu0 %v1882_v1 }
  0x4c   : > { %1772 = vmatpush3.bf16.msra.mxu1 %v1853_v56 }
  0x4d   : > { %1762 = vmatmul.mubr.msk.bf16.vlgmr.msra.gmra.mxu0 %vm314_vm1, %v1081_v47 }
  0x4e   : > { %1778 = vmatpush3.bf16.msra.mxu0 %v1854_v51  ;;  %1785 = vmatprep.mubr.msk.bf16.mxu0 %vm1883_vm0, %v1882_v1 }
  0x4f   : > { %1779 = vmatprep.subr.bf16.mxu0 %v1882_v1  ;;  %1774 = vmatmul.mubr.msk.bf16.vlgmr.msra.gmra.mxu1 %vm314_vm1, %v1177_v59 }
  0x52   : > { %1780 = vmatpush3.bf16.msra.mxu0 %v1855_v57 }
  0x53   : > { %1781 = vmatprep.subr.bf16.mxu0 %v1882_v1 }
  0x56   : > { %1782 = vmatpush3.bf16.msra.mxu0 %v1856_v61 }
  0x57   : > { %1783 = vmatprep.subr.bf16.mxu0 %v1882_v1 }
  0x5a   : > { %1784 = vmatpush3.bf16.msra.mxu0 %v1857_v63 }
  0x5d   : > { %1786 = vmatmul.mubr.msk.bf16.vlgmr.msra.gmra.mxu0 %vm314_vm1, %v1265_v0 }
  0xdd   : > { %v352_v2 = vpop.f32.mrf.mxu0 }
  0xde   : > { %v438_v3 = vpop.f32.mrf.mxu1 }
  0xdf   : > { %v1691_v4 = vpop.f32.mrf.mxu0  ;;  %v439_v25 = vadd.f32 %v438_v3, %v352_v2 }
  0xe0   : > { %v1703_v6 = vpop.f32.mrf.mxu1 }
  0xe1   : > { %v355_v7 = vpop.f32.mrf.mxu0 }
  0xe2   : > { %v441_v8 = vpop.f32.mrf.mxu1 }
  0xe3   : > { %v1692_v9 = vpop.f32.mrf.mxu0  ;;  %v442_v27 = vadd.f32 %v441_v8, %v355_v7 }
  0xe4   : > { %v1704_v10 = vpop.f32.mrf.mxu1 }
  0xed   : > { %v525_v23 = vpop.f32.mrf.mxu0 }
  0xee   : > { %v532_v28 = vadd.f32 %v525_v23, %v439_v25 }
  0xef   : > { %v1715_v11 = vpop.f32.mrf.mxu0  ;;  %v772_v14 = vpop.f32.mrf.mxu1 }
  0xf0   : > { %v779_v32 = vadd.f32 %v772_v14, %v532_v28 }
  0xf1   : > { %v528_v12 = vpop.f32.mrf.mxu0  ;;  %v1727_v15 = vpop.f32.mrf.mxu1 }
  0xf2   : > { %v533_v30 = vadd.f32 %v528_v12, %v442_v27 }
  0xf3   : > { %v1716_v13 = vpop.f32.mrf.mxu0  ;;  %v775_v16 = vpop.f32.mrf.mxu1 }
  0xf4   : > { %v780_v34 = vadd.f32 %v775_v16, %v533_v30 }
  0xf5   : > { %v1728_v1 = vpop.f32.mrf.mxu1 }
  0xfd   : > { %v868_v17 = vpop.f32.mrf.mxu0 }
  0xfe   : > { %v875_v35 = vadd.f32 %v868_v17, %v779_v32 }
  0xff   : > { %v1739_v18 = vpop.f32.mrf.mxu0  ;;  %v956_v20 = vpop.f32.mrf.mxu1 }
 0x100   : > { %v963_v39 = vadd.f32 %v956_v20, %v875_v35 }
 0x101   : > { %v871_v19 = vpop.f32.mrf.mxu0  ;;  %v1751_v21 = vpop.f32.mrf.mxu1 }
 0x102   : > { %v876_v37 = vadd.f32 %v871_v19, %v780_v34 }
 0x103   : > { %v1740_v5 = vpop.f32.mrf.mxu0  ;;  %v959_v22 = vpop.f32.mrf.mxu1 }
 0x104   : > { %v964_v41 = vadd.f32 %v959_v22, %v876_v37 }
 0x105   : > { %v1752_v24 = vpop.f32.mrf.mxu1 }
 0x10d   : > { %v1143_v26 = vpop.f32.mrf.mxu0 }
 0x10e   : > { %v1150_v42 = vadd.f32 %v1143_v26, %v963_v39 }
 0x10f   : > { %v1763_v29 = vpop.f32.mrf.mxu0  ;;  %v1239_v36 = vpop.f32.mrf.mxu1 }
 0x110   : > { %v1246_v46 = vadd.f32 %v1239_v36, %v1150_v42 }
 0x111   : > { %v1146_v31 = vpop.f32.mrf.mxu0  ;;  %v1775_v38 = vpop.f32.mrf.mxu1 }
 0x112   : > { %v1151_v44 = vadd.f32 %v1146_v31, %v964_v41 }
 0x113   : > { %v1764_v33 = vpop.f32.mrf.mxu0  ;;  %v1242_v40 = vpop.f32.mrf.mxu1 }
 0x114   : > { %v1247_v48 = vadd.f32 %v1242_v40, %v1151_v44 }
 0x115   : > { %v1776_v43 = vpop.f32.mrf.mxu1 }
 0x11d   : > { %v1327_v45 = vpop.f32.mrf.mxu0 }
 0x11e   : > { %v1334_v49 = vadd.f32 %v1327_v45, %v1246_v46 }
 0x11f   : > { %v1787_v47 = vpop.f32.mrf.mxu0 }
 0x120   : > { %v1354_v53 = vmul.f32 %v1334_v49, %v1334_v49 }
 0x121   : > { %v1330_v50 = vpop.f32.mrf.mxu0 }
 0x122   : > { %v1335_v51 = vadd.f32 %v1330_v50, %v1247_v48 }
 0x123   : > { %v1788_v52 = vpop.f32.mrf.mxu0 }
 0x124   : > { %v1634_v54 = vpack.c.bf16 %v1335_v51, %v1334_v49  ;;  %v1346_v55 = vadd.f32 %v1335_v51, %v1334_v49  ;;  %v1355_v56 = vmul.f32 %v1335_v51, %v1335_v51 }
 0x126   : > { %1635 = vst [vmem:[%s230_s7] sm:$0xff] %v1634_v54   ;;  %v1347_v57 = vrot.slane %v1346_v55, 4  ;;  %v1356_v58 = vadd.f32 %v1355_v56, %v1354_v53 }
 0x128   : > { %v1348_v59 = vadd.f32 %v1347_v57, %v1346_v55  ;;  %v1357_v60 = vrot.slane %v1356_v58, 4 }
 0x12a   : > { %v1349_v61 = vrot.slane %v1348_v59, 2  ;;  %v1358_v62 = vadd.f32 %v1357_v60, %v1356_v58 }
 0x12c   : > { %v1350_v63 = vadd.f32 %v1349_v61, %v1348_v59  ;;  %v1359_v0 = vrot.slane %v1358_v62, 2 }
 0x12e   : > { %v1351_v2 = vrot.slane %v1350_v63, 1  ;;  %v1360_v3 = vadd.f32 %v1359_v0, %v1358_v62 }
 0x130   : > { %v1352_v4 = vadd.f32 %v1351_v2, %v1350_v63  ;;  %v1361_v6 = vrot.slane %v1360_v3, 1 }
 0x132   : > { %1353 = vst [vmem:[%s235_s11] sm:$0x1] %v1352_v4  ;;  %v1362_v7 = vadd.f32 %v1361_v6, %v1360_v3 }
 0x134   : > { %1363 = vst [vmem:[%s240_s14] sm:$0x1] %v1362_v7 }
 0x135 PF: > { %s15_s17 = sadd.s32 1, %s1880_s17   ;;  %s2243_s15 = smov %s1876_s16 }
 0x136   : > { %p12_p5 = scmp.ge.s32.totalorder %s15_s17, 4   ;;  %s2244_s16 = smov %s2246_s18 }
 0x138   :  { %14 = sbr.rel (!%p12_p5) target bundleno = 2 (0x2), region = 91 }

// kernel: vgg16_forward.13
= control target key start
LH: loop header
LB: loop body
LE: loop exit
PB: predicated region body
PF: predicated region fallthrough
CT: control target
= control target key end

     0   :  { %s610_s18 = smov 0   ;;  %s612_s19 = smov 0   ;;  %s671_s0 = inlined_call_operand.vmem [shape: bf16[2,16,128], index: 0, kind: input, shape index: {}]   ;;  %s672_s1 = inlined_call_operand.vmem [shape: f32[1,128], index: 1, kind: input, shape index: {}]   ;;  %s673_s2 = inlined_call_operand.vmem [shape: f32[1,128], index: 2, kind: input, shape index: {}]   ;;  %s674_s3 = inlined_call_operand.vmem [shape: f32[1,128], index: 3, kind: input, shape index: {}]   ;;  %s675_s4 = inlined_call_operand.vmem [shape: f32[1,128], index: 4, kind: input, shape index: {}]   ;;  %s676_s5 = inlined_call_operand.vmem [shape: bf16[2,4,4,128], index: 5, kind: output, shape index: {}]  }
   0x1   :  { %s614_s20 = smov 0  }
   0x2 LB: > { %s27_s21 = sadd.s32 1, %s572_s19  ;;  %p495_p0 = scmp.ge.s32.totalorder %s576_s20, 1  ;;  %s576_s20 = sphi %s614_s20, %s15_s20   ;;  %s572_s19 = sphi %s612_s19, %s678_s19   ;;  %s568_s18 = sphi %s610_s18, %s677_s18  }
   0x3   : > { %p29_p1 = scmp.ge.s32.totalorder %s27_s21, 2  ;;  %p203_p2 = scmp.lt.s32.totalorder %s576_s20, 3 }
   0x5   : > { %s680_s21 = smov (%p29_p1, %s27_s21), 0  ;;  %p204_p3 = pnand %p495_p0, %p203_p2 }
   0x6   : > { %p233_p4 = scmp.lt.s32.totalorder (!%p204_p3), %s568_s18, 1 }
   0x7   : > { %207 = sbr.rel (%p204_p3) target bundleno = 110 (0x6e), region = 40 }
   0xc   : > { %v245_v0 = vld [vmem:[%s672_s1] sm:$0x1]  ;;  %s682_s18 = smov (!%p233_p4, %s568_s18), 1  ;;  %v578_v6 = vmov 0   ;;  %v264_v9 = vlaneseq  ;;  %v579_v39 = vmov 1983009808  }
   0xd   : > { %v247_v1 = vld [vmem:[%s673_s2] sm:$0x1]  ;;  %v246_v2 = vmul.f32 0.03125, %v245_v0  ;;  %s512_s26 = sshll.u32 %s682_s18, 3  ;;  %v301_v40 = vunpack.c.l.s4 %v579_v39  ;;  %vm397_vm0 = vcmask 1042434   ;;  %vm402_vm1 = vcmask 1040384  }
   0xe   : > { %v248_v3 = vmul.f32 0.03125, %v247_v1  ;;  %s637_s29 = scalar_lea.vmem %s676_s5, %s512_s26  ;;  %s237_s7 = scalar_lea.vmem %s671_s0, %s512_s26  ;;  %v265_v10 = vshrl.u32 %v264_v9, 7  ;;  %v252_v11 = vld [vmem:[%s674_s3] sm:$0x1]  ;;  %vm405_vm2 = vcmask 1042432  }
   0xf   : > { %v249_v4 = vmul.f32 %v246_v2, %v246_v2  ;;  %415 = vst [vmem:[%s637_s29 + $0x2] sm:$0x3] %v578_v6  ;;  %414 = vst [vmem:[%s637_s29] sm:$0x3] %v578_v6  ;;  %v515_v12 = vld [vmem:[%s237_s7] sm:$0xff]   ;;  %v302_v41 = vunpack.c.0.s8 %v301_v40 }
  0x10   : > { %416 = vst [vmem:[%s637_s29 + $0x4] sm:$0x3] %v578_v6  ;;  %417 = vst [vmem:[%s637_s29 + $0x6] sm:$0x3] %v578_v6  ;;  %v649_v13 = vsub.s32 0, %v265_v10  ;;  %v516_v16 = vunpack.c.l.bf16 %v515_v12  ;;  %v517_v17 = vunpack.c.h.bf16 %v515_v12 }
  0x11   : > { %v250_v5 = vsub.f32 %v248_v3, %v249_v4  ;;  %v256_v18 = vld [vmem:[%s675_s4] sm:$0x1]  ;;  %v305_v45 = vsub.s32 %v302_v41, %v265_v10 }
  0x13   : > { %v251_v7 = vmax.f32 %v250_v5, 0.0 }
  0x15   : > { %v253_v8 = vadd.f32 1e-05, %v251_v7 }
  0x17   : > { %544 = vrsqrt.f32 %v253_v8 }
  0x24   : > { %v545_v14 = vpop.eup %544 }
  0x25   : > { %v255_v15 = vmul.f32 %v545_v14, %v252_v11 }
  0x27   : > { %v257_v19 = vmul.f32 %v255_v15, %v246_v2  ;;  %v267_v20 = vrot.slane %v255_v15, %v649_v13 }
  0x29   : > { %v258_v21 = vsub.f32 %v256_v18, %v257_v19  ;;  %v269_v22 = vmul.f32 %v516_v16, %v267_v20  ;;  %v270_v23 = vmul.f32 %v517_v17, %v267_v20 }
  0x2b   : > { %v275_v24 = vrot.slane %v258_v21, %v649_v13 }
  0x2d   : > { %v277_v25 = vadd.f32 %v275_v24, %v269_v22  ;;  %v278_v26 = vadd.f32 %v275_v24, %v270_v23 }
  0x2f   : > { %v279_v27 = vmin.f32 %v277_v25, 30.0  ;;  %v280_v28 = vmin.f32 %v278_v26, 30.0 }
  0x31   : > { %v281_v29 = vmul.f32 1.442695, %v279_v27  ;;  %v283_v30 = vmul.f32 1.442695, %v280_v28 }
  0x33   : > { %546 = vpow2.f32 %v281_v29 }
  0x34   : > { %548 = vpow2.f32 %v283_v30 }
  0x40   : > { %v547_v31 = vpop.eup %546 }
  0x41   : > { %v549_v32 = vpop.eup %548  ;;  %v285_v33 = vadd.f32 2.0, %v547_v31 }
  0x42   : > { %v286_v34 = vadd.f32 2.0, %v549_v32 }
  0x43   : > { %v287_v35 = vmul.f32 %v547_v31, %v285_v33 }
  0x44   : > { %v288_v36 = vmul.f32 %v549_v32, %v286_v34 }
  0x45   : > { %v289_v37 = vadd.f32 2.0, %v287_v35 }
  0x46   : > { %v290_v38 = vadd.f32 2.0, %v288_v36 }
  0x47   : > { %550 = vrcp.f32 %v289_v37 }
  0x48   : > { %552 = vrcp.f32 %v290_v38 }
  0x54   : > { %v551_v42 = vpop.eup %550 }
  0x55   : > { %v553_v43 = vpop.eup %552  ;;  %v293_v44 = vmul.f32 %v551_v42, %v287_v35 }
  0x56   : > { %v294_v46 = vmul.f32 %v553_v43, %v288_v36 }
  0x57   : > { %v295_v47 = vmul.f32 %v293_v44, %v277_v25 }
  0x58   : > { %v296_v48 = vmul.f32 %v294_v46, %v278_v26 }
  0x59   : > { %v299_v49 = vcombine.high %v295_v47, %v295_v47  ;;  %v306_v50 = vrot.slane %v295_v47, %v305_v45 }
  0x5a   : > { %v316_v51 = vcombine.high %v296_v48, %v296_v48  ;;  %v323_v52 = vrot.slane %v296_v48, %v305_v45 }
  0x5b   : > { %v313_v53 = vrot.slane %v299_v49, %v305_v45  ;;  %v314_v54 = vcombine.high %v306_v50, %v306_v50  ;;  %v500_v55 = vrot.slane %v306_v50, 9 }
  0x5c   : > { %v330_v56 = vrot.slane %v316_v51, %v305_v45  ;;  %v331_v57 = vcombine.high %v323_v52, %v323_v52  ;;  %v504_v58 = vrot.slane %v323_v52, 9 }
  0x5d   : > { %v315_v59 = vcombine.high %v313_v53, %v313_v53  ;;  %v501_v60 = vrot.slane %v314_v54, 9  ;;  %v502_v61 = vrot.slane %v313_v53, 9  ;;  %v365_v62 = vmax.f32 %v306_v50, %v500_v55 }
  0x5e   : > { %v332_v63 = vcombine.high %v330_v56, %v330_v56  ;;  %v505_v0 = vrot.slane %v331_v57, 9  ;;  %v506_v1 = vrot.slane %v330_v56, 9  ;;  %v369_v2 = vmax.f32 %v323_v52, %v504_v58 }
  0x5f   : > { %v503_v3 = vrot.slane %v315_v59, 9  ;;  %v366_v4 = vmax.f32 %v314_v54, %v501_v60  ;;  %v367_v5 = vmax.f32 %v313_v53, %v502_v61 }
  0x60   : > { %v507_v6 = vrot.slane %v332_v63, 9  ;;  %v370_v7 = vmax.f32 %v331_v57, %v505_v0  ;;  %v371_v8 = vmax.f32 %v330_v56, %v506_v1 }
  0x61   : > { %v368_v9 = vmax.f32 %v315_v59, %v503_v3  ;;  %v373_v10 = vmax.f32 %v365_v62, %v367_v5 }
  0x62   : > { %v372_v11 = vmax.f32 %v332_v63, %v507_v6  ;;  %v375_v12 = vmax.f32 %v369_v2, %v371_v8 }
  0x63   : > { %v374_v14 = vmax.f32 %v366_v4, %v368_v9  ;;  %v384_v15 = vrot.slane %v373_v10, %v649_v13 }
  0x64   : > { %v376_v16 = vmax.f32 %v370_v7, %v372_v11  ;;  %v392_v17 = vrot.slane %v375_v12, %v649_v13 }
  0x65   : > { %v388_v18 = vrot.slane %v374_v14, %v649_v13 }
  0x66   : > { %v396_v19 = vrot.slane %v376_v16, %v649_v13 }
  0x67   : > { %v398_v20 = vsel %vm397_vm0, %v388_v18, %v384_v15 }
  0x68   : > { %v403_v21 = vsel %vm402_vm1, 0.0, %v398_v20  ;;  %v399_v22 = vsel %vm397_vm0, %v396_v19, %v392_v17 }
  0x69   : > { %v406_v23 = vsel %vm405_vm2, %v403_v21, 0.0  ;;  %v404_v24 = vsel %vm402_vm1, 0.0, %v399_v22 }
  0x6a   : > { %v408_v25 = vpack.c.bf16 %v406_v23, %v406_v23  ;;  %v407_v26 = vsel %vm405_vm2, %v404_v24, 0.0 }
  0x6b   : > { %v409_v27 = vpack.c.bf16 %v407_v26, %v407_v26 }
  0x6c   : > { %508 = vst [vmem:[%s637_s29 + $0x2] sm:$0x3] %v408_v25 }
  0x6d   : > { %509 = vst [vmem:[%s637_s29 + $0x4] sm:$0x3] %v409_v27 }
  0x6e PF: > { %s15_s20 = sadd.s32 1, %s576_s20   ;;  %s677_s18 = smov %s572_s19 }
  0x6f   : > { %p12_p5 = scmp.ge.s32.totalorder %s15_s20, 4   ;;  %s678_s19 = smov %s680_s21 }
  0x71   :  { %14 = sbr.rel (!%p12_p5) target bundleno = 2 (0x2), region = 75 }

// kernel: vgg16_forward.15
= control target key start
LH: loop header
LB: loop body
LE: loop exit
PB: predicated region body
PF: predicated region fallthrough
CT: control target
= control target key end

     0   :  { %s463_s18 = smov 0   ;;  %s465_s19 = smov 0   ;;  %s512_s0 = inlined_call_operand.vmem [shape: bf16[2,4,256], index: 0, kind: input, shape index: {}]   ;;  %s513_s1 = inlined_call_operand.vmem [shape: f32[1,256], index: 1, kind: input, shape index: {}]   ;;  %s514_s2 = inlined_call_operand.vmem [shape: f32[1,256], index: 2, kind: input, shape index: {}]   ;;  %s515_s3 = inlined_call_operand.vmem [shape: f32[1,256], index: 3, kind: input, shape index: {}]   ;;  %s516_s4 = inlined_call_operand.vmem [shape: f32[1,256], index: 4, kind: input, shape index: {}]   ;;  %s517_s5 = inlined_call_operand.vmem [shape: f32[2,4,256], index: 5, kind: output, shape index: {}]  }
   0x1   :  { %s467_s20 = smov 0  }
   0x2 LB: > { %s27_s21 = sadd.s32 1, %s427_s19  ;;  %p370_p0 = scmp.ge.s32.totalorder %s431_s20, 1  ;;  %s431_s20 = sphi %s467_s20, %s15_s20   ;;  %s427_s19 = sphi %s465_s19, %s519_s19   ;;  %s423_s18 = sphi %s463_s18, %s518_s18  }
   0x3   : > { %p29_p1 = scmp.ge.s32.totalorder %s27_s21, 2  ;;  %p205_p2 = scmp.lt.s32.totalorder %s431_s20, 3 }
   0x5   : > { %s521_s21 = smov (%p29_p1, %s27_s21), 0  ;;  %p206_p3 = pnand %p370_p0, %p205_p2 }
   0x6   : > { %p236_p4 = scmp.lt.s32.totalorder (!%p206_p3), %s423_s18, 1 }
   0x7   : > { %209 = sbr.rel (%p206_p3) target bundleno = 92 (0x5c), region = 40 }
   0xc   : > { %v249_v0 = vld [vmem:[%s513_s1] sm:$0x3]  ;;  %s523_s18 = smov (!%p236_p4, %s423_s18), 1  ;;  %v266_v8 = vlaneseq }
   0xd   : > { %v251_v1 = vld [vmem:[%s514_s2] sm:$0x3]  ;;  %v250_v2 = vmul.f32 0.125, %v249_v0  ;;  %s377_s26 = sshll.u32 %s523_s18, 2  ;;  %s378_s9 = sshll.u32 %s523_s18, 3 }
   0xe   : > { %v252_v3 = vmul.f32 0.125, %v251_v1  ;;  %v267_v9 = vshrl.u32 %v266_v8, 7  ;;  %s240_s29 = scalar_lea.vmem %s512_s0, %s377_s26  ;;  %v256_v10 = vld [vmem:[%s515_s3] sm:$0x3]  ;;  %s247_s12 = scalar_lea.vmem %s517_s5, %s378_s9 }
   0xf   : > { %v253_v4 = vmul.f32 %v250_v2, %v250_v2  ;;  %v263_v14 = vld [vmem:[%s240_s29] sm:$0xf] }
  0x10   : > { %v268_v11 = vsub.s32 0, %v267_v9  ;;  %v272_v12 = vsub.s32 1, %v267_v9  ;;  %v260_v16 = vld [vmem:[%s516_s4] sm:$0x3]  ;;  %v264_v18 = vunpack.c.l.bf16 %v263_v14 }
  0x11   : > { %v254_v5 = vsub.f32 %v252_v3, %v253_v4 }
  0x13   : > { %v255_v6 = vmax.f32 %v254_v5, 0.0 }
  0x15   : > { %v257_v7 = vadd.f32 1e-05, %v255_v6 }
  0x17   : > { %403 = vrsqrt.f32 %v257_v7 }
  0x24   : > { %v404_v13 = vpop.eup %403 }
  0x25   : > { %v259_v15 = vmul.f32 %v404_v13, %v256_v10 }
  0x27   : > { %v261_v17 = vmul.f32 %v259_v15, %v250_v2  ;;  %v269_v19 = vrot.slane %v259_v15, %v268_v11  ;;  %v273_v20 = vrot.slane %v259_v15, %v272_v12 }
  0x29   : > { %v262_v21 = vsub.f32 %v260_v16, %v261_v17  ;;  %v274_v22 = vcombine.low %v269_v19, %v273_v20 }
  0x2b   : > { %v276_v23 = vmul.f32 %v274_v22, %v264_v18  ;;  %v281_v24 = vrot.slane %v262_v21, %v268_v11  ;;  %v285_v25 = vrot.slane %v262_v21, %v272_v12 }
  0x2d   : > { %v286_v26 = vcombine.low %v281_v24, %v285_v25 }
  0x2f   : > { %v288_v27 = vadd.f32 %v286_v26, %v276_v23 }
  0x31   : > { %v289_v28 = vmin.f32 %v288_v27, 30.0 }
  0x33   : > { %v290_v29 = vmul.f32 1.442695, %v289_v28 }
  0x35   : > { %405 = vpow2.f32 %v290_v29 }
  0x42   : > { %v406_v30 = vpop.eup %405 }
  0x43   : > { %v292_v31 = vadd.f32 2.0, %v406_v30 }
  0x45   : > { %v293_v32 = vmul.f32 %v406_v30, %v292_v31 }
  0x47   : > { %v294_v33 = vadd.f32 2.0, %v293_v32 }
  0x49   : > { %407 = vrcp.f32 %v294_v33 }
  0x56   : > { %v408_v34 = vpop.eup %407 }
  0x57   : > { %v296_v35 = vmul.f32 %v408_v34, %v293_v32 }
  0x59   : > { %v297_v36 = vmul.f32 %v296_v35, %v288_v27 }
  0x5b   : > { %298 = vst [vmem:[%s247_s12] sm:$0xff] %v297_v36 }
  0x5c PF: > { %s15_s20 = sadd.s32 1, %s431_s20   ;;  %s518_s18 = smov %s427_s19 }
  0x5d   : > { %p12_p5 = scmp.ge.s32.totalorder %s15_s20, 4   ;;  %s519_s19 = smov %s521_s21 }
  0x5f   :  { %14 = sbr.rel (!%p12_p5) target bundleno = 2 (0x2), region = 70 }

// kernel: vgg16_forward.14
= control target key start
LH: loop header
LB: loop body
LE: loop exit
PB: predicated region body
PF: predicated region fallthrough
CT: control target
= control target key end

     0   :  { %s2609_s15 = smov 0   ;;  %s2611_s16 = smov 0   ;;  %s3170_s0 = inlined_call_operand.vmem [shape: bf16[2,4,4,128], index: 0, kind: input, shape index: {}]   ;;  %s3171_s1 = inlined_call_operand.vmem [shape: bf16[3,3,128,256], index: 1, kind: input, shape index: {}]   ;;  %s3172_s2 = inlined_call_operand.vmem [shape: bf16[2,4,256], index: 2, kind: output, shape index: {0}]   ;;  %s3173_s3 = inlined_call_operand.vmem [shape: f32[2,1,256], index: 3, kind: output, shape index: {1}]   ;;  %s3174_s4 = inlined_call_operand.vmem [shape: f32[2,1,256], index: 4, kind: output, shape index: {2}]  }
   0x1   :  { %s2613_s17 = smov 0  }
   0x2 LB: > { %s27_s18 = sadd.s32 1, %s2576_s16  ;;  %p2016_p0 = scmp.ge.s32.totalorder %s2580_s17, 1  ;;  %s2580_s17 = sphi %s2613_s17, %s15_s17   ;;  %s2576_s16 = sphi %s2611_s16, %s3178_s16   ;;  %s2572_s15 = sphi %s2609_s15, %s3177_s15  }
   0x3   : > { %p29_p1 = scmp.ge.s32.totalorder %s27_s18, 2  ;;  %p185_p2 = scmp.lt.s32.totalorder %s2580_s17, 3 }
   0x5   : > { %s3180_s18 = smov (%p29_p1, %s27_s18), 0  ;;  %p186_p3 = pnand %p2016_p0, %p185_p2 }
   0x6   : > { %p222_p4 = scmp.lt.s32.totalorder (!%p186_p3), %s2572_s15, 1 }
   0x7   : > { %189 = sbr.rel (%p186_p3) target bundleno = 393 (0x189), region = 28 }
   0xc   : > { %v2342_v0 = vld [vmem:[%s3171_s1 + $0x1f4] ss:$8 sps:$4 sm:$0xff]   ;;  %v2582_v2 = vmov 0   ;;  %v2346_v3 = vld [vmem:[%s3171_s1 + $0x1f0] ss:$8 sps:$4 sm:$0xff]   ;;  %s3182_s15 = smov (!%p222_p4, %s2572_s15), 1  ;;  %v293_v23 = vlaneseq }
   0xd   : > { %v2344_v1 = vld [vmem:[%s3171_s1 + $0x74] ss:$8 sps:$4 sm:$0xff]   ;;  %417 = vmatprep.mubr.bf16.mxu0 %v2582_v2  ;;  %555 = vmatprep.mubr.bf16.mxu1 %v2582_v2  ;;  %v2347_v4 = vld [vmem:[%s3171_s1 + $0x70] ss:$8 sps:$4 sm:$0xff]   ;;  %v2348_v5 = vld [vmem:[%s3171_s1 + $0x1e4] ss:$8 sps:$4 sm:$0xff]  }
   0xe   : > { %385 = vmatprep.subr.bf16.mxu0 %v2342_v0  ;;  %523 = vmatprep.subr.bf16.mxu1 %v2344_v1  ;;  %v2350_v6 = vld [vmem:[%s3171_s1 + $0x64] ss:$8 sps:$4 sm:$0xff]   ;;  %v2352_v7 = vld [vmem:[%s3171_s1 + $0x1e0] ss:$8 sps:$4 sm:$0xff]   ;;  %v2354_v9 = vld [vmem:[%s3171_s1 + $0x1d4] ss:$8 sps:$4 sm:$0xff]  }
   0xf   : > { %386 = vmatpush1.bf16.msra.mxu0 %v2346_v3  ;;  %524 = vmatpush1.bf16.msra.mxu1 %v2347_v4  ;;  %v2353_v8 = vld [vmem:[%s3171_s1 + $0x60] ss:$8 sps:$4 sm:$0xff]   ;;  %v2356_v10 = vld [vmem:[%s3171_s1 + $0x54] ss:$8 sps:$4 sm:$0xff]   ;;  %v2358_v11 = vld [vmem:[%s3171_s1 + $0x1d0] ss:$8 sps:$4 sm:$0xff]  }
  0x10   : > { %387 = vmatprep.subr.bf16.mxu0 %v2348_v5  ;;  %525 = vmatprep.subr.bf16.mxu1 %v2350_v6  ;;  %v2359_v12 = vld [vmem:[%s3171_s1 + $0x50] ss:$8 sps:$4 sm:$0xff]   ;;  %v2360_v13 = vld [vmem:[%s3171_s1 + $0x1c4] ss:$8 sps:$4 sm:$0xff]   ;;  %v2364_v15 = vld [vmem:[%s3171_s1 + $0x1c0] ss:$8 sps:$4 sm:$0xff]  }
  0x11   : > { %v2362_v14 = vld [vmem:[%s3171_s1 + $0x44] ss:$8 sps:$4 sm:$0xff]   ;;  %v2365_v16 = vld [vmem:[%s3171_s1 + $0x40] ss:$8 sps:$4 sm:$0xff]   ;;  %v2366_v17 = vld [vmem:[%s3171_s1 + $0x1b4] ss:$8 sps:$4 sm:$0xff]  }
  0x12   : > { %v2368_v18 = vld [vmem:[%s3171_s1 + $0x34] ss:$8 sps:$4 sm:$0xff]   ;;  %v2370_v19 = vld [vmem:[%s3171_s1 + $0x1b0] ss:$8 sps:$4 sm:$0xff]   ;;  %s2314_s11 = sshll.u32 %s3182_s15, 3  ;;  %v294_v28 = vshrl.u32 %v293_v23, 7 }
  0x13   : > { %388 = vmatpush1.bf16.msra.mxu0 %v2352_v7  ;;  %526 = vmatpush1.bf16.msra.mxu1 %v2353_v8  ;;  %v2371_v20 = vld [vmem:[%s3171_s1 + $0x30] ss:$8 sps:$4 sm:$0xff]   ;;  %v2583_v21 = vmov 1966171168   ;;  %v2372_v24 = vld [vmem:[%s3171_s1 + $0x1a4] ss:$8 sps:$4 sm:$0xff]   ;;  %s2705_s22 = scalar_lea.vmem %s3170_s0, %s2314_s11 }
  0x14   : > { %389 = vmatprep.subr.bf16.mxu0 %v2354_v9  ;;  %527 = vmatprep.subr.bf16.mxu1 %v2356_v10  ;;  %v291_v22 = vunpack.c.l.s4 %v2583_v21  ;;  %v2374_v25 = vld [vmem:[%s3171_s1 + $0x24] ss:$8 sps:$4 sm:$0xff]   ;;  %v2376_v26 = vld [vmem:[%s3171_s1 + $0x1a0] ss:$8 sps:$4 sm:$0xff]   ;;  %v2378_v30 = vld [vmem:[%s3171_s1 + $0x194] ss:$8 sps:$4 sm:$0xff]  }
  0x15   : > { %v2377_v29 = vld [vmem:[%s3171_s1 + $0x20] ss:$8 sps:$4 sm:$0xff]   ;;  %v2380_v31 = vld [vmem:[%s3171_s1 + $0x14] ss:$8 sps:$4 sm:$0xff]   ;;  %v2722_v33 = vld [vmem:[%s2705_s22 + $0x4] sm:$0x1] }
  0x16   : > { %v292_v27 = vunpack.c.0.s8 %v291_v22  ;;  %v251_v32 = vld [vmem:[%s2705_s22 + $0x2] sm:$0x1]  ;;  %v250_v34 = vld [vmem:[%s2705_s22] sm:$0x1]  ;;  %v2382_v35 = vld [vmem:[%s3171_s1 + $0x190] ss:$8 sps:$4 sm:$0xff]  }
  0x17   : > { %390 = vmatpush1.bf16.msra.mxu0 %v2358_v11  ;;  %528 = vmatpush1.bf16.msra.mxu1 %v2359_v12  ;;  %v2383_v36 = vld [vmem:[%s3171_s1 + $0x10] ss:$8 sps:$4 sm:$0xff]   ;;  %v289_v37 = vcombine.low %v251_v32, %v2722_v33  ;;  %v427_v39 = vcombine.low %v250_v34, %v251_v32  ;;  %v2384_v40 = vld [vmem:[%s3171_s1 + $0x184] ss:$8 sps:$4 sm:$0xff]   ;;  %v2388_v42 = vld [vmem:[%s3171_s1 + $0x180] ss:$8 sps:$4 sm:$0xff]  }
  0x18   : > { %391 = vmatprep.subr.bf16.mxu0 %v2360_v13  ;;  %529 = vmatprep.subr.bf16.mxu1 %v2362_v14  ;;  %v2732_v38 = vsub.s32 %v292_v27, %v294_v28  ;;  %v2386_v41 = vld [vmem:[%s3171_s1 + $0x4] ss:$8 sps:$4 sm:$0xff]   ;;  %v2389_v43 = vld [vmem:[%s3171_s1] ss:$8 sps:$4 sm:$0xff]   ;;  %v2392_v46 = vld [vmem:[%s3171_s1 + $0x374] ss:$8 sps:$4 sm:$0xff]  }
  0x19   : > { %v2395_v47 = vld [vmem:[%s3171_s1 + $0xf4] ss:$8 sps:$4 sm:$0xff]   ;;  %v2390_v50 = vld [vmem:[%s3171_s1 + $0x370] ss:$8 sps:$4 sm:$0xff]   ;;  %v2398_v52 = vld [vmem:[%s3171_s1 + $0x364] ss:$8 sps:$4 sm:$0xff]  }
  0x1a   : > { %v296_v44 = vrot.slane %v289_v37, %v2732_v38  ;;  %v434_v45 = vrot.slane %v427_v39, %v2732_v38  ;;  %v2393_v51 = vld [vmem:[%s3171_s1 + $0xf0] ss:$8 sps:$4 sm:$0xff]   ;;  %v2401_v53 = vld [vmem:[%s3171_s1 + $0xe4] ss:$8 sps:$4 sm:$0xff]   ;;  %v2396_v54 = vld [vmem:[%s3171_s1 + $0x360] ss:$8 sps:$4 sm:$0xff]  }
  0x1b   : > { %392 = vmatpush1.bf16.msra.mxu0 %v2364_v15  ;;  %530 = vmatpush1.bf16.msra.mxu1 %v2365_v16  ;;  %v2399_v55 = vld [vmem:[%s3171_s1 + $0xe0] ss:$8 sps:$4 sm:$0xff]   ;;  %v2404_v56 = vld [vmem:[%s3171_s1 + $0x354] ss:$8 sps:$4 sm:$0xff]   ;;  %vm761_vm0 = vsmask.f32 256 }
  0x1c   : > { %393 = vmatprep.subr.bf16.mxu0 %v2366_v17  ;;  %531 = vmatprep.subr.bf16.mxu1 %v2368_v18  ;;  %v303_v48 = vrot.slane %v296_v44, %v2732_v38  ;;  %v441_v49 = vrot.slane %v434_v45, %v2732_v38  ;;  %v2407_v57 = vld [vmem:[%s3171_s1 + $0xd4] ss:$8 sps:$4 sm:$0xff]   ;;  %vm762_vm1 = vsmask.f32 1284  ;;  %v2402_v58 = vld [vmem:[%s3171_s1 + $0x350] ss:$8 sps:$4 sm:$0xff]  }
  0x1d   : > { %v2405_v59 = vld [vmem:[%s3171_s1 + $0xd0] ss:$8 sps:$4 sm:$0xff]   ;;  %v2410_v60 = vld [vmem:[%s3171_s1 + $0x344] ss:$8 sps:$4 sm:$0xff]   ;;  %vm764_vm2 = vsmask.f32 2312  ;;  %vm763_vm7 = vmor %vm761_vm0, %vm762_vm1 }
  0x1e   : > { %v2413_v61 = vld [vmem:[%s3171_s1 + $0xc4] ss:$8 sps:$4 sm:$0xff]   ;;  %vm766_vm3 = vsmask.f32 3340  ;;  %vm768_vm4 = vsmask.f32 4368  ;;  %vm765_vm8 = vmor %vm763_vm7, %vm764_vm2 }
  0x1f   : > { %394 = vmatpush1.bf16.msra.mxu0 %v2370_v19  ;;  %532 = vmatpush1.bf16.msra.mxu1 %v2371_v20  ;;  %vm770_vm5 = vsmask.f32 5396  ;;  %v2408_v62 = vld [vmem:[%s3171_s1 + $0x340] ss:$8 sps:$4 sm:$0xff]   ;;  %v2416_v0 = vld [vmem:[%s3171_s1 + $0x334] ss:$8 sps:$4 sm:$0xff]   ;;  %vm767_vm9 = vmor %vm765_vm8, %vm766_vm3 }
  0x20   : > { %395 = vmatprep.subr.bf16.mxu0 %v2372_v24  ;;  %533 = vmatprep.subr.bf16.mxu1 %v2374_v25  ;;  %v2411_v63 = vld [vmem:[%s3171_s1 + $0xc0] ss:$8 sps:$4 sm:$0xff]   ;;  %vm772_vm6 = vsmask.f32 6424  ;;  %v2419_v1 = vld [vmem:[%s3171_s1 + $0xb4] ss:$8 sps:$4 sm:$0xff]   ;;  %vm769_vm11 = vmor %vm767_vm9, %vm768_vm4 }
  0x21   : > { %v2103_v3 = vld.sshfl [vmem:[%s2705_s22] sm:$0x11 pattern:$0x75316420]  ;;  %v2414_v4 = vld [vmem:[%s3171_s1 + $0x330] ss:$8 sps:$4 sm:$0xff]   ;;  %vm771_vm12 = vmor %vm769_vm11, %vm770_vm5 }
  0x22   : > { %v2104_v5 = vld.sshfl [vmem:[%s2705_s22 + $0x2] sm:$0x11 pattern:$0x75316420]  ;;  %v736_v6 = vcombine.high %v2103_v3, %v2103_v3  ;;  %v2417_v7 = vld [vmem:[%s3171_s1 + $0xb0] ss:$8 sps:$4 sm:$0xff]   ;;  %vm773_vm13 = vmor %vm771_vm12, %vm772_vm6 }
  0x23   : > { %396 = vmatpush1.bf16.msra.mxu0 %v2376_v26  ;;  %534 = vmatpush1.bf16.msra.mxu1 %v2377_v29  ;;  %v744_v8 = vcombine.high %v2104_v5, %v2104_v5  ;;  %vm774_vm10 = vsmask.f32 7452  ;;  %v2422_v9 = vld [vmem:[%s3171_s1 + $0x324] ss:$8 sps:$4 sm:$0xff]   ;;  %v777_v10 = vshrl.u32 %v2103_v3, 16  ;;  %v786_v12 = vshrl.u32 %v2104_v5, 16 }
  0x24   : > { %397 = vmatprep.subr.bf16.mxu0 %v2378_v30  ;;  %535 = vmatprep.subr.bf16.mxu1 %v2380_v31  ;;  %v782_v11 = vshll.u32 %v736_v6, 16  ;;  %v2425_v13 = vld [vmem:[%s3171_s1 + $0xa4] ss:$8 sps:$4 sm:$0xff]   ;;  %v2420_v16 = vld [vmem:[%s3171_s1 + $0x320] ss:$8 sps:$4 sm:$0xff]   ;;  %vm2832_vm14 = vmor %vm773_vm13, %vm774_vm10  ;;  %vm1802_vm15 = vcmask 1043456  }
  0x25   : > { %v791_v14 = vshll.u32 %v744_v8, 16  ;;  %v253_v15 = vld [vmem:[%s2705_s22 + $0x6] sm:$0x1]  ;;  %v2423_v18 = vld [vmem:[%s3171_s1 + $0xa0] ss:$8 sps:$4 sm:$0xff]   ;;  %s2315_s9 = sshll.u32 %s3182_s15, 2 }
  0x26   : > { %v784_v19 = vsel %vm2832_vm14, %v777_v10, %v782_v11  ;;  %v2428_v21 = vld [vmem:[%s3171_s1 + $0x314] ss:$8 sps:$4 sm:$0xff]   ;;  %v582_v24 = vcombine.low %v2722_v33, %v253_v15  ;;  %v2426_v25 = vld [vmem:[%s3171_s1 + $0x310] ss:$8 sps:$4 sm:$0xff]   ;;  %v2434_v28 = vld [vmem:[%s3171_s1 + $0x304] ss:$8 sps:$4 sm:$0xff]   ;;  %s232_s12 = scalar_lea.vmem %s3172_s2, %s2315_s9 }
  0x27   : > { %398 = vmatpush1.bf16.msra.mxu0 %v2382_v35  ;;  %536 = vmatpush1.bf16.msra.mxu1 %v2383_v36  ;;  %v2843_v20 = vsel %vm2832_vm14, %v786_v12, %v791_v14  ;;  %v2431_v22 = vld [vmem:[%s3171_s1 + $0x94] ss:$8 sps:$4 sm:$0xff]   ;;  %v2429_v27 = vld [vmem:[%s3171_s1 + $0x90] ss:$8 sps:$4 sm:$0xff]   ;;  %v2437_v29 = vld [vmem:[%s3171_s1 + $0x84] ss:$8 sps:$4 sm:$0xff]  }
  0x28   : > { %399 = vmatprep.subr.bf16.mxu0 %v2384_v40  ;;  %537 = vmatprep.subr.bf16.mxu1 %v2386_v41  ;;  %v829_v26 = vcombine.low %v784_v19, %v2843_v20  ;;  %v2432_v30 = vld [vmem:[%s3171_s1 + $0x300] ss:$8 sps:$4 sm:$0xff]   ;;  %v589_v31 = vrot.slane %v582_v24, %v2732_v38  ;;  %v2440_v34 = vld [vmem:[%s3171_s1 + $0x274] ss:$8 sps:$4 sm:$0xff]   ;;  %v2438_v37 = vld [vmem:[%s3171_s1 + $0x270] ss:$8 sps:$4 sm:$0xff]  }
  0x29   : > { %v2435_v33 = vld [vmem:[%s3171_s1 + $0x80] ss:$8 sps:$4 sm:$0xff]   ;;  %v2443_v35 = vld [vmem:[%s3171_s1 + $0x3f4] ss:$8 sps:$4 sm:$0xff]   ;;  %v2441_v40 = vld [vmem:[%s3171_s1 + $0x3f0] ss:$8 sps:$4 sm:$0xff]  }
  0x2a   : > { %v836_v32 = vrot.slane %v829_v26, %v2732_v38  ;;  %v596_v36 = vrot.slane %v589_v31, %v2732_v38  ;;  %v2446_v41 = vld [vmem:[%s3171_s1 + $0x264] ss:$8 sps:$4 sm:$0xff]   ;;  %v2447_v44 = vld [vmem:[%s3171_s1 + $0x3e0] ss:$8 sps:$4 sm:$0xff]   ;;  %v2452_v45 = vld [vmem:[%s3171_s1 + $0x254] ss:$8 sps:$4 sm:$0xff]  }
  0x2b   : > { %400 = vmatpush1.bf16.msra.mxu0 %v2388_v42  ;;  %538 = vmatpush1.bf16.msra.mxu1 %v2389_v43  ;;  %v2449_v42 = vld [vmem:[%s3171_s1 + $0x3e4] ss:$8 sps:$4 sm:$0xff]   ;;  %v2444_v43 = vld [vmem:[%s3171_s1 + $0x260] ss:$8 sps:$4 sm:$0xff]   ;;  %v2476_v8 = vld [vmem:[%s3171_s1 + $0x214] ss:$8 sps:$4 sm:$0xff]  }
  0x2c   : > { %678 = vmatprep.subr.bf16.mxu0 %v2392_v46  ;;  %925 = vmatprep.subr.bf16.mxu1 %v2395_v47  ;;  %v843_v39 = vrot.slane %v836_v32, %v2732_v38  ;;  %v2455_v46 = vld [vmem:[%s3171_s1 + $0x3d4] ss:$8 sps:$4 sm:$0xff]   ;;  %v2450_v47 = vld [vmem:[%s3171_s1 + $0x250] ss:$8 sps:$4 sm:$0xff]   ;;  %v2473_v3 = vld [vmem:[%s3171_s1 + $0x3a4] ss:$8 sps:$4 sm:$0xff]  }
  0x2d   : > { %v2471_v5 = vld [vmem:[%s3171_s1 + $0x3a0] ss:$8 sps:$4 sm:$0xff]   ;;  %v2474_v10 = vld [vmem:[%s3171_s1 + $0x210] ss:$8 sps:$4 sm:$0xff]   ;;  %v2482_v14 = vld [vmem:[%s3171_s1 + $0x204] ss:$8 sps:$4 sm:$0xff]  }
  0x2e   : > { %418 = vmatmul.mubr.bf16.vlgmr.msra.gmra.mxu0 %v303_v48  ;;  %556 = vmatmul.mubr.bf16.vlgmr.msra.gmra.mxu1 %v441_v49  ;;  %v2453_v48 = vld [vmem:[%s3171_s1 + $0x3d0] ss:$8 sps:$4 sm:$0xff]   ;;  %v2458_v49 = vld [vmem:[%s3171_s1 + $0x244] ss:$8 sps:$4 sm:$0xff]   ;;  %v2483_v19 = vld [vmem:[%s3171_s1 + $0x380] ss:$8 sps:$4 sm:$0xff]  }
  0x2f   : > { %679 = vmatpush1.bf16.msra.mxu0 %v2390_v50  ;;  %926 = vmatpush1.bf16.msra.mxu1 %v2393_v51  ;;  %v2461_v50 = vld [vmem:[%s3171_s1 + $0x3c4] ss:$8 sps:$4 sm:$0xff]   ;;  %v2489_v26 = vld [vmem:[%s3171_s1 + $0x2f0] ss:$8 sps:$4 sm:$0xff]   ;;  %v2500_v31 = vld [vmem:[%s3171_s1 + $0x154] ss:$8 sps:$4 sm:$0xff]  }
  0x30   : > { %680 = vmatprep.subr.bf16.mxu0 %v2398_v52  ;;  %927 = vmatprep.subr.bf16.mxu1 %v2401_v53  ;;  %v2105_v51 = vld.sshfl [vmem:[%s2705_s22 + $0x4] sm:$0x11 pattern:$0x75316420]  ;;  %v2456_v53 = vld [vmem:[%s3171_s1 + $0x240] ss:$8 sps:$4 sm:$0xff]  }
  0x31   : > { %710 = vmatprep.mubr.bf16.mxu0 %v2582_v2  ;;  %957 = vmatprep.mubr.bf16.mxu1 %v2582_v2  ;;  %v2106_v52 = vld.sshfl [vmem:[%s2705_s22 + $0x6] sm:$0x11 pattern:$0x75316420]  ;;  %v2503_v32 = vld [vmem:[%s3171_s1 + $0x2d4] ss:$8 sps:$4 sm:$0xff]  }
  0x32   : > { %v2485_v15 = vld [vmem:[%s3171_s1 + $0x384] ss:$8 sps:$4 sm:$0xff]   ;;  %s2021_s13 = sshll.u32 %s3182_s15, 1  ;;  %vm1837_vm0 = vcmp.lt.s32.totalorder %v293_v23, 256 }
  0x33   : > { %681 = vmatpush1.bf16.msra.mxu0 %v2396_v54  ;;  %928 = vmatpush1.bf16.msra.mxu1 %v2399_v55  ;;  %v2459_v54 = vld [vmem:[%s3171_s1 + $0x3c0] ss:$8 sps:$4 sm:$0xff]   ;;  %v752_v55 = vcombine.high %v2105_v51, %v2105_v51  ;;  %s238_s20 = scalar_lea.vmem %s3173_s3, %s2021_s13  ;;  %s244_s24 = scalar_lea.vmem %s3174_s4, %s2021_s13 }
  0x34   : > { %682 = vmatprep.subr.bf16.mxu0 %v2404_v56  ;;  %929 = vmatprep.subr.bf16.mxu1 %v2407_v57  ;;  %v760_v56 = vcombine.high %v2106_v52, %v2106_v52  ;;  %v2464_v57 = vld [vmem:[%s3171_s1 + $0x234] ss:$8 sps:$4 sm:$0xff]  }
  0x37   : > { %683 = vmatpush1.bf16.msra.mxu0 %v2402_v58  ;;  %930 = vmatpush1.bf16.msra.mxu1 %v2405_v59  ;;  %v2467_v58 = vld [vmem:[%s3171_s1 + $0x3b4] ss:$8 sps:$4 sm:$0xff]   ;;  %v2462_v59 = vld [vmem:[%s3171_s1 + $0x230] ss:$8 sps:$4 sm:$0xff]  }
  0x38   : > { %684 = vmatprep.subr.bf16.mxu0 %v2410_v60  ;;  %931 = vmatprep.subr.bf16.mxu1 %v2413_v61  ;;  %v2465_v60 = vld [vmem:[%s3171_s1 + $0x3b0] ss:$8 sps:$4 sm:$0xff]   ;;  %v795_v61 = vshrl.u32 %v2105_v51, 16  ;;  %v2524_v51 = vld [vmem:[%s3171_s1 + $0x114] ss:$8 sps:$4 sm:$0xff]  }
  0x3b   : > { %685 = vmatpush1.bf16.msra.mxu0 %v2408_v62  ;;  %932 = vmatpush1.bf16.msra.mxu1 %v2411_v63  ;;  %v800_v62 = vshll.u32 %v752_v55, 16  ;;  %v804_v63 = vshrl.u32 %v2106_v52, 16  ;;  %v2527_v52 = vld [vmem:[%s3171_s1 + $0x294] ss:$8 sps:$4 sm:$0xff]   ;;  %v2522_v55 = vld [vmem:[%s3171_s1 + $0x110] ss:$8 sps:$4 sm:$0xff]  }
  0x3c   : > { %686 = vmatprep.subr.bf16.mxu0 %v2416_v0  ;;  %933 = vmatprep.subr.bf16.mxu1 %v2419_v1  ;;  %v809_v0 = vshll.u32 %v760_v56, 16  ;;  %v2470_v1 = vld [vmem:[%s3171_s1 + $0x224] ss:$8 sps:$4 sm:$0xff]   ;;  %v2525_v56 = vld [vmem:[%s3171_s1 + $0x290] ss:$8 sps:$4 sm:$0xff]  }
  0x3d   : > { %v802_v6 = vsel %vm2832_vm14, %v795_v61, %v800_v62  ;;  %v2528_v61 = vld [vmem:[%s3171_s1 + $0x100] ss:$8 sps:$4 sm:$0xff]  }
  0x3e   : > { %v985_v11 = vcombine.low %v2843_v20, %v802_v6  ;;  %v2488_v20 = vld [vmem:[%s3171_s1 + $0x174] ss:$8 sps:$4 sm:$0xff]   ;;  %v2531_v62 = vld [vmem:[%s3171_s1 + $0x280] ss:$8 sps:$4 sm:$0xff]  }
  0x3f   : > { %687 = vmatpush1.bf16.msra.mxu0 %v2414_v4  ;;  %934 = vmatpush1.bf16.msra.mxu1 %v2417_v7  ;;  %v2468_v4 = vld [vmem:[%s3171_s1 + $0x220] ss:$8 sps:$4 sm:$0xff]   ;;  %v811_v7 = vsel %vm2832_vm14, %v804_v63, %v809_v0  ;;  %v2536_v63 = vld [vmem:[%s3171_s1 + $0x474] ss:$8 sps:$4 sm:$0xff]  }
  0x40   : > { %688 = vmatprep.subr.bf16.mxu0 %v2422_v9  ;;  %935 = vmatprep.subr.bf16.mxu1 %v2425_v13  ;;  %v2479_v9 = vld [vmem:[%s3171_s1 + $0x394] ss:$8 sps:$4 sm:$0xff]   ;;  %v1141_v12 = vcombine.low %v802_v6, %v811_v7  ;;  %v2477_v13 = vld [vmem:[%s3171_s1 + $0x390] ss:$8 sps:$4 sm:$0xff]  }
  0x41   : > { %v2542_v6 = vld [vmem:[%s3171_s1 + $0x454] ss:$8 sps:$4 sm:$0xff]   ;;  %v2540_v7 = vld [vmem:[%s3171_s1 + $0x450] ss:$8 sps:$4 sm:$0xff]  }
  0x42   : > { %v1148_v17 = vrot.slane %v1141_v12, %v2732_v38  ;;  %v2549_v12 = vld [vmem:[%s3171_s1 + $0x420] ss:$8 sps:$4 sm:$0xff]  }
  0x43   : > { %689 = vmatpush1.bf16.msra.mxu0 %v2420_v16  ;;  %936 = vmatpush1.bf16.msra.mxu1 %v2423_v18  ;;  %v992_v16 = vrot.slane %v985_v11, %v2732_v38  ;;  %v2480_v18 = vld [vmem:[%s3171_s1 + $0x200] ss:$8 sps:$4 sm:$0xff]   ;;  %v2551_v11 = vld [vmem:[%s3171_s1 + $0x424] ss:$8 sps:$4 sm:$0xff]  }
  0x44   : > { %690 = vmatprep.subr.bf16.mxu0 %v2428_v21  ;;  %937 = vmatprep.subr.bf16.mxu1 %v2431_v22  ;;  %v2491_v21 = vld [vmem:[%s3171_s1 + $0x2f4] ss:$8 sps:$4 sm:$0xff]   ;;  %v1155_v24 = vrot.slane %v1148_v17, %v2732_v38  ;;  %v2557_v17 = vld [vmem:[%s3171_s1 + $0x404] ss:$8 sps:$4 sm:$0xff]  }
  0x45   : > { %v999_v22 = vrot.slane %v992_v16, %v2732_v38  ;;  %v2552_v16 = vld [vmem:[%s3171_s1 + $0x410] ss:$8 sps:$4 sm:$0xff]  }
  0x47   : > { %691 = vmatpush1.bf16.msra.mxu0 %v2426_v25  ;;  %938 = vmatpush1.bf16.msra.mxu1 %v2429_v27  ;;  %v2486_v25 = vld [vmem:[%s3171_s1 + $0x170] ss:$8 sps:$4 sm:$0xff]   ;;  %v2494_v27 = vld [vmem:[%s3171_s1 + $0x164] ss:$8 sps:$4 sm:$0xff]  }
  0x48   : > { %692 = vmatprep.subr.bf16.mxu0 %v2434_v28  ;;  %939 = vmatprep.subr.bf16.mxu1 %v2437_v29  ;;  %v2497_v28 = vld [vmem:[%s3171_s1 + $0x2e4] ss:$8 sps:$4 sm:$0xff]   ;;  %v2492_v29 = vld [vmem:[%s3171_s1 + $0x160] ss:$8 sps:$4 sm:$0xff]  }
  0x4b   : > { %693 = vmatpush1.bf16.msra.mxu0 %v2432_v30  ;;  %940 = vmatpush1.bf16.msra.mxu1 %v2435_v33  ;;  %v2495_v30 = vld [vmem:[%s3171_s1 + $0x2e0] ss:$8 sps:$4 sm:$0xff]   ;;  %v2498_v33 = vld [vmem:[%s3171_s1 + $0x150] ss:$8 sps:$4 sm:$0xff]  }
  0x4c   : > { %1081 = vmatprep.subr.bf16.mxu0 %v2440_v34  ;;  %1237 = vmatprep.subr.bf16.mxu1 %v2443_v35  ;;  %v2501_v34 = vld [vmem:[%s3171_s1 + $0x2d0] ss:$8 sps:$4 sm:$0xff]   ;;  %v2506_v35 = vld [vmem:[%s3171_s1 + $0x144] ss:$8 sps:$4 sm:$0xff]  }
  0x4e   : > { %711 = vmatmul.mubr.bf16.vlgmr.msra.gmra.mxu0 %v596_v36  ;;  %958 = vmatmul.mubr.bf16.vlgmr.msra.gmra.mxu1 %v843_v39  ;;  %v2509_v36 = vld [vmem:[%s3171_s1 + $0x2c4] ss:$8 sps:$4 sm:$0xff]   ;;  %v2507_v39 = vld [vmem:[%s3171_s1 + $0x2c0] ss:$8 sps:$4 sm:$0xff]  }
  0x4f   : > { %1082 = vmatpush1.bf16.msra.mxu0 %v2438_v37  ;;  %1238 = vmatpush1.bf16.msra.mxu1 %v2441_v40  ;;  %v2504_v37 = vld [vmem:[%s3171_s1 + $0x140] ss:$8 sps:$4 sm:$0xff]   ;;  %v2512_v40 = vld [vmem:[%s3171_s1 + $0x134] ss:$8 sps:$4 sm:$0xff]  }
  0x50   : > { %1083 = vmatprep.subr.bf16.mxu0 %v2446_v41  ;;  %1239 = vmatprep.subr.bf16.mxu1 %v2449_v42  ;;  %v2515_v41 = vld [vmem:[%s3171_s1 + $0x2b4] ss:$8 sps:$4 sm:$0xff]   ;;  %v2510_v42 = vld [vmem:[%s3171_s1 + $0x130] ss:$8 sps:$4 sm:$0xff]  }
  0x51   : > { %1113 = vmatprep.mubr.bf16.mxu0 %v2582_v2  ;;  %1269 = vmatprep.mubr.bf16.mxu1 %v2582_v2 }
  0x53   : > { %1084 = vmatpush1.bf16.msra.mxu0 %v2444_v43  ;;  %1240 = vmatpush1.bf16.msra.mxu1 %v2447_v44  ;;  %v2513_v43 = vld [vmem:[%s3171_s1 + $0x2b0] ss:$8 sps:$4 sm:$0xff]   ;;  %v2518_v44 = vld [vmem:[%s3171_s1 + $0x124] ss:$8 sps:$4 sm:$0xff]  }
  0x54   : > { %1085 = vmatprep.subr.bf16.mxu0 %v2452_v45  ;;  %1241 = vmatprep.subr.bf16.mxu1 %v2455_v46  ;;  %v2521_v45 = vld [vmem:[%s3171_s1 + $0x2a4] ss:$8 sps:$4 sm:$0xff]   ;;  %v2207_v46 = vld.sshfl [vmem:[%s2705_s22] sm:$0x10 pattern:$0x75316420] }
  0x57   : > { %1086 = vmatpush1.bf16.msra.mxu0 %v2450_v47  ;;  %1242 = vmatpush1.bf16.msra.mxu1 %v2453_v48  ;;  %v2516_v47 = vld [vmem:[%s3171_s1 + $0x120] ss:$8 sps:$4 sm:$0xff]  }
  0x58   : > { %1087 = vmatprep.subr.bf16.mxu0 %v2458_v49  ;;  %1243 = vmatprep.subr.bf16.mxu1 %v2461_v50  ;;  %v2208_v48 = vld.sshfl [vmem:[%s2705_s22 + $0x2] sm:$0x10 pattern:$0x75316420] }
  0x59   : > { %v2519_v49 = vld [vmem:[%s3171_s1 + $0x2a0] ss:$8 sps:$4 sm:$0xff]   ;;  %v2209_v50 = vld.sshfl [vmem:[%s2705_s22 + $0x4] sm:$0x10 pattern:$0x75316420] }
  0x5b   : > { %1088 = vmatpush1.bf16.msra.mxu0 %v2456_v53  ;;  %1244 = vmatpush1.bf16.msra.mxu1 %v2459_v54  ;;  %v2227_v53 = vcombine.high %v2207_v46, %v2208_v48  ;;  %v2260_v54 = vcombine.high %v2208_v48, %v2209_v50 }
  0x5c   : > { %1089 = vmatprep.subr.bf16.mxu0 %v2464_v57  ;;  %1245 = vmatprep.subr.bf16.mxu1 %v2467_v58  ;;  %v2530_v57 = vld [vmem:[%s3171_s1 + $0x104] ss:$8 sps:$4 sm:$0xff]  }
  0x5d   : > { %v2533_v58 = vld [vmem:[%s3171_s1 + $0x284] ss:$8 sps:$4 sm:$0xff]  }
  0x5f   : > { %1090 = vmatpush1.bf16.msra.mxu0 %v2462_v59  ;;  %1246 = vmatpush1.bf16.msra.mxu1 %v2465_v60  ;;  %v1344_v59 = vrot.slane %v2227_v53, %v2732_v38  ;;  %v1500_v60 = vrot.slane %v2260_v54, %v2732_v38 }
  0x60   : > { %1091 = vmatprep.subr.bf16.mxu0 %v2470_v1  ;;  %1247 = vmatprep.subr.bf16.mxu1 %v2473_v3  ;;  %v2534_v3 = vld [vmem:[%s3171_s1 + $0x470] ss:$8 sps:$4 sm:$0xff]  }
  0x61   : > { %v1351_v0 = vrot.slane %v1344_v59, %v2732_v38  ;;  %v1507_v1 = vrot.slane %v1500_v60, %v2732_v38 }
  0x63   : > { %1092 = vmatpush1.bf16.msra.mxu0 %v2468_v4  ;;  %1248 = vmatpush1.bf16.msra.mxu1 %v2471_v5  ;;  %v2539_v4 = vld [vmem:[%s3171_s1 + $0x464] ss:$8 sps:$4 sm:$0xff]   ;;  %v2537_v5 = vld [vmem:[%s3171_s1 + $0x460] ss:$8 sps:$4 sm:$0xff]  }
  0x64   : > { %1093 = vmatprep.subr.bf16.mxu0 %v2476_v8  ;;  %1249 = vmatprep.subr.bf16.mxu1 %v2479_v9  ;;  %v2545_v8 = vld [vmem:[%s3171_s1 + $0x444] ss:$8 sps:$4 sm:$0xff]   ;;  %v2548_v9 = vld [vmem:[%s3171_s1 + $0x434] ss:$8 sps:$4 sm:$0xff]  }
  0x67   : > { %1094 = vmatpush1.bf16.msra.mxu0 %v2474_v10  ;;  %1250 = vmatpush1.bf16.msra.mxu1 %v2477_v13  ;;  %v2546_v10 = vld [vmem:[%s3171_s1 + $0x430] ss:$8 sps:$4 sm:$0xff]   ;;  %v2210_v13 = vld.sshfl [vmem:[%s2705_s22 + $0x6] sm:$0x10 pattern:$0x75316420] }
  0x68   : > { %1095 = vmatprep.subr.bf16.mxu0 %v2482_v14  ;;  %1251 = vmatprep.subr.bf16.mxu1 %v2485_v15  ;;  %v2554_v14 = vld [vmem:[%s3171_s1 + $0x414] ss:$8 sps:$4 sm:$0xff]   ;;  %v2293_v15 = vcombine.high %v2209_v50, %v2210_v13 }
  0x6b   : > { %1096 = vmatpush1.bf16.msra.mxu0 %v2480_v18  ;;  %1252 = vmatpush1.bf16.msra.mxu1 %v2483_v19  ;;  %v1656_v18 = vrot.slane %v2293_v15, %v2732_v38  ;;  %v2555_v19 = vld [vmem:[%s3171_s1 + $0x400] ss:$8 sps:$4 sm:$0xff]  }
  0x6c   : > { %1433 = vmatprep.subr.bf16.mxu0 %v2488_v20  ;;  %1589 = vmatprep.subr.bf16.mxu1 %v2491_v21 }
  0x6d   : > { %v1663_v20 = vrot.slane %v1656_v18, %v2732_v38 }
  0x6e   : > { %1114 = vmatmul.mubr.bf16.vlgmr.msra.gmra.mxu0 %v999_v22  ;;  %1270 = vmatmul.mubr.bf16.vlgmr.msra.gmra.mxu1 %v1155_v24 }
  0x6f   : > { %1434 = vmatpush1.bf16.msra.mxu0 %v2486_v25  ;;  %1590 = vmatpush1.bf16.msra.mxu1 %v2489_v26 }
  0x70   : > { %1435 = vmatprep.subr.bf16.mxu0 %v2494_v27  ;;  %1591 = vmatprep.subr.bf16.mxu1 %v2497_v28 }
  0x71   : > { %1465 = vmatprep.mubr.bf16.mxu0 %v2582_v2  ;;  %1621 = vmatprep.mubr.bf16.mxu1 %v2582_v2 }
  0x73   : > { %1436 = vmatpush1.bf16.msra.mxu0 %v2492_v29  ;;  %1592 = vmatpush1.bf16.msra.mxu1 %v2495_v30 }
  0x74   : > { %1437 = vmatprep.subr.bf16.mxu0 %v2500_v31  ;;  %1593 = vmatprep.subr.bf16.mxu1 %v2503_v32 }
  0x77   : > { %1438 = vmatpush1.bf16.msra.mxu0 %v2498_v33  ;;  %1594 = vmatpush1.bf16.msra.mxu1 %v2501_v34 }
  0x78   : > { %1439 = vmatprep.subr.bf16.mxu0 %v2506_v35  ;;  %1595 = vmatprep.subr.bf16.mxu1 %v2509_v36 }
  0x7b   : > { %1440 = vmatpush1.bf16.msra.mxu0 %v2504_v37  ;;  %1596 = vmatpush1.bf16.msra.mxu1 %v2507_v39 }
  0x7c   : > { %1441 = vmatprep.subr.bf16.mxu0 %v2512_v40  ;;  %1597 = vmatprep.subr.bf16.mxu1 %v2515_v41 }
  0x7f   : > { %1442 = vmatpush1.bf16.msra.mxu0 %v2510_v42  ;;  %1598 = vmatpush1.bf16.msra.mxu1 %v2513_v43 }
  0x80   : > { %1443 = vmatprep.subr.bf16.mxu0 %v2518_v44  ;;  %1599 = vmatprep.subr.bf16.mxu1 %v2521_v45 }
  0x83   : > { %1444 = vmatpush1.bf16.msra.mxu0 %v2516_v47  ;;  %1600 = vmatpush1.bf16.msra.mxu1 %v2519_v49 }
  0x84   : > { %1445 = vmatprep.subr.bf16.mxu0 %v2524_v51  ;;  %1601 = vmatprep.subr.bf16.mxu1 %v2527_v52 }
  0x87   : > { %1446 = vmatpush1.bf16.msra.mxu0 %v2522_v55  ;;  %1602 = vmatpush1.bf16.msra.mxu1 %v2525_v56 }
  0x88   : > { %1447 = vmatprep.subr.bf16.mxu0 %v2530_v57  ;;  %1603 = vmatprep.subr.bf16.mxu1 %v2533_v58 }
  0x8b   : > { %1448 = vmatpush1.bf16.msra.mxu0 %v2528_v61  ;;  %1604 = vmatpush1.bf16.msra.mxu1 %v2531_v62 }
  0x8c   : > { %1745 = vmatprep.subr.bf16.mxu0 %v2536_v63 }
  0x8e   : > { %1466 = vmatmul.mubr.bf16.vlgmr.msra.gmra.mxu0 %v1351_v0  ;;  %1622 = vmatmul.mubr.bf16.vlgmr.msra.gmra.mxu1 %v1507_v1 }
  0x8f   : > { %1746 = vmatpush1.bf16.msra.mxu0 %v2534_v3  ;;  %1777 = vmatprep.mubr.bf16.mxu0 %v2582_v2  ;;  %v2543_v2 = vld [vmem:[%s3171_s1 + $0x440] ss:$8 sps:$4 sm:$0xff]  }
  0x90   : > { %1747 = vmatprep.subr.bf16.mxu0 %v2539_v4 }
  0x93   : > { %1748 = vmatpush1.bf16.msra.mxu0 %v2537_v5 }
  0x94   : > { %1749 = vmatprep.subr.bf16.mxu0 %v2542_v6 }
  0x97   : > { %1750 = vmatpush1.bf16.msra.mxu0 %v2540_v7 }
  0x98   : > { %1751 = vmatprep.subr.bf16.mxu0 %v2545_v8 }
  0x9b   : > { %1752 = vmatpush1.bf16.msra.mxu0 %v2543_v2 }
  0x9c   : > { %1753 = vmatprep.subr.bf16.mxu0 %v2548_v9 }
  0x9f   : > { %1754 = vmatpush1.bf16.msra.mxu0 %v2546_v10 }
  0xa0   : > { %1755 = vmatprep.subr.bf16.mxu0 %v2551_v11 }
  0xa3   : > { %1756 = vmatpush1.bf16.msra.mxu0 %v2549_v12 }
  0xa4   : > { %1757 = vmatprep.subr.bf16.mxu0 %v2554_v14 }
  0xa7   : > { %1758 = vmatpush1.bf16.msra.mxu0 %v2552_v16 }
  0xa8   : > { %1759 = vmatprep.subr.bf16.mxu0 %v2557_v17 }
  0xab   : > { %1760 = vmatpush1.bf16.msra.mxu0 %v2555_v19 }
  0xae   : > { %1778 = vmatmul.mubr.bf16.vlgmr.msra.gmra.mxu0 %v1663_v20 }
  0xee   : > { %v419_v21 = vpop.f32.mrf.mxu0  ;;  %v557_v22 = vpop.f32.mrf.mxu1 }
  0xef   : > { %v558_v24 = vadd.f32 %v557_v22, %v419_v21 }
  0xf0   : > { %v421_v25 = vpop.f32.mrf.mxu0  ;;  %v559_v26 = vpop.f32.mrf.mxu1 }
  0xf1   : > { %v560_v27 = vadd.f32 %v559_v26, %v421_v25 }
  0xf2   : > { %v423_v28 = vpop.f32.mrf.mxu0  ;;  %v561_v29 = vpop.f32.mrf.mxu1 }
  0xf4   : > { %v424_v30 = vpop.f32.mrf.mxu0  ;;  %v562_v31 = vpop.f32.mrf.mxu1 }
 0x10e   : > { %v712_v32 = vpop.f32.mrf.mxu0  ;;  %v959_v33 = vpop.f32.mrf.mxu1 }
 0x10f   : > { %v719_v34 = vadd.f32 %v712_v32, %v558_v24 }
 0x110   : > { %v714_v35 = vpop.f32.mrf.mxu0  ;;  %v961_v36 = vpop.f32.mrf.mxu1 }
 0x111   : > { %v720_v37 = vadd.f32 %v714_v35, %v560_v27  ;;  %v966_v39 = vadd.f32 %v959_v33, %v719_v34 }
 0x112   : > { %v716_v40 = vpop.f32.mrf.mxu0  ;;  %v963_v41 = vpop.f32.mrf.mxu1 }
 0x113   : > { %v967_v42 = vadd.f32 %v961_v36, %v720_v37 }
 0x114   : > { %v717_v43 = vpop.f32.mrf.mxu0  ;;  %v964_v44 = vpop.f32.mrf.mxu1 }
 0x12e   : > { %v1115_v45 = vpop.f32.mrf.mxu0  ;;  %v1271_v46 = vpop.f32.mrf.mxu1 }
 0x12f   : > { %v1122_v61 = vadd.f32 %v1115_v45, %v966_v39 }
 0x130   : > { %v1117_v47 = vpop.f32.mrf.mxu0  ;;  %v1273_v48 = vpop.f32.mrf.mxu1 }
 0x131   : > { %v1123_v62 = vadd.f32 %v1117_v47, %v967_v42  ;;  %v1278_v63 = vadd.f32 %v1271_v46, %v1122_v61 }
 0x132   : > { %v1119_v49 = vpop.f32.mrf.mxu0  ;;  %v1275_v50 = vpop.f32.mrf.mxu1 }
 0x133   : > { %v1279_v0 = vadd.f32 %v1273_v48, %v1123_v62 }
 0x134   : > { %v1120_v51 = vpop.f32.mrf.mxu0  ;;  %v1276_v52 = vpop.f32.mrf.mxu1 }
 0x14e   : > { %v1467_v53 = vpop.f32.mrf.mxu0  ;;  %v1623_v54 = vpop.f32.mrf.mxu1 }
 0x14f   : > { %v1474_v1 = vadd.f32 %v1467_v53, %v1278_v63 }
 0x150   : > { %v1469_v55 = vpop.f32.mrf.mxu0  ;;  %v1625_v56 = vpop.f32.mrf.mxu1 }
 0x151   : > { %v1475_v3 = vadd.f32 %v1469_v55, %v1279_v0  ;;  %v1630_v4 = vadd.f32 %v1623_v54, %v1474_v1 }
 0x152   : > { %v1471_v57 = vpop.f32.mrf.mxu0  ;;  %v1627_v58 = vpop.f32.mrf.mxu1 }
 0x153   : > { %v1631_v6 = vadd.f32 %v1625_v56, %v1475_v3 }
 0x154   : > { %v1472_v59 = vpop.f32.mrf.mxu0  ;;  %v1628_v60 = vpop.f32.mrf.mxu1 }
 0x16e   : > { %v1779_v5 = vpop.f32.mrf.mxu0 }
 0x16f   : > { %v1786_v7 = vadd.f32 %v1779_v5, %v1630_v4 }
 0x170   : > { %v1781_v8 = vpop.f32.mrf.mxu0 }
 0x171   : > { %v1803_v2 = vsel %vm1802_vm15, %v1786_v7, 0.0  ;;  %v1840_v9 = vmul.f32 %v1786_v7, %v1786_v7  ;;  %v1787_v10 = vadd.f32 %v1781_v8, %v1631_v6 }
 0x172   : > { %v1804_v11 = vrot.slane %v1803_v2, 4  ;;  %v1783_v12 = vpop.f32.mrf.mxu0 }
 0x173   : > { %v1842_v13 = vsel %vm1802_vm15, %v1840_v9, 0.0  ;;  %v2310_v14 = vpack.c.bf16 %v1787_v10, %v1786_v7  ;;  %v1810_v15 = vsel %vm1802_vm15, %v1787_v10, 0.0  ;;  %v1841_v16 = vmul.f32 %v1787_v10, %v1787_v10 }
 0x174   : > { %v1805_v17 = vadd.f32 %v1804_v11, %v1803_v2  ;;  %v1843_v18 = vrot.slane %v1842_v13, 4  ;;  %v1811_v19 = vrot.slane %v1810_v15, 4  ;;  %v1784_v20 = vpop.f32.mrf.mxu0 }
 0x175   : > { %2311 = vst.sshfl [vmem:[%s232_s12] sm:$0x33 pattern:$0x76325410] %v2310_v14  ;;  %v1849_v21 = vsel %vm1802_vm15, %v1841_v16, 0.0 }
 0x176   : > { %v1806_v22 = vrot.slane %v1805_v17, 2  ;;  %v1844_v24 = vadd.f32 %v1843_v18, %v1842_v13  ;;  %v1812_v25 = vadd.f32 %v1811_v19, %v1810_v15  ;;  %v1850_v26 = vrot.slane %v1849_v21, 4 }
 0x178   : > { %v1807_v27 = vadd.f32 %v1806_v22, %v1805_v17  ;;  %v1845_v28 = vrot.slane %v1844_v24, 2  ;;  %v1813_v29 = vrot.slane %v1812_v25, 2  ;;  %v1851_v30 = vadd.f32 %v1850_v26, %v1849_v21 }
 0x17a   : > { %v1808_v31 = vrot.slane %v1807_v27, 1  ;;  %v1846_v32 = vadd.f32 %v1845_v28, %v1844_v24  ;;  %v1814_v33 = vadd.f32 %v1813_v29, %v1812_v25  ;;  %v1852_v34 = vrot.slane %v1851_v30, 2 }
 0x17c   : > { %v1847_v35 = vrot.slane %v1846_v32, 1  ;;  %v1815_v36 = vrot.slane %v1814_v33, 1  ;;  %v1853_v37 = vadd.f32 %v1852_v34, %v1851_v30  ;;  %v1809_v39 = vadd.f32 %v1808_v31, %v1807_v27 }
 0x17e   : > { %v1816_v40 = vadd.f32 %v1815_v36, %v1814_v33  ;;  %v1854_v41 = vrot.slane %v1853_v37, 1  ;;  %v1848_v42 = vadd.f32 %v1847_v35, %v1846_v32 }
 0x180   : > { %v1819_v43 = vcombine.low %v1809_v39, %v1816_v40  ;;  %v1855_v44 = vadd.f32 %v1854_v41, %v1853_v37 }
 0x182   : > { %v1826_v45 = vrot.slane %v1819_v43, %v2732_v38  ;;  %v1858_v46 = vcombine.low %v1848_v42, %v1855_v44 }
 0x184   : > { %v1833_v47 = vrot.slane %v1826_v45, %v2732_v38  ;;  %v1865_v48 = vrot.slane %v1858_v46, %v2732_v38 }
 0x186   : > { %1839 = vst.msk [vmem:[%s238_s20] sm:$0x3] %vm1837_vm0, %v1833_v47  ;;  %v1872_v49 = vrot.slane %v1865_v48, %v2732_v38 }
 0x188   : > { %1874 = vst.msk [vmem:[%s244_s24] sm:$0x3] %vm1837_vm0, %v1872_v49 }
 0x189 PF: > { %s15_s17 = sadd.s32 1, %s2580_s17   ;;  %s3177_s15 = smov %s2576_s16 }
 0x18a   : > { %p12_p5 = scmp.ge.s32.totalorder %s15_s17, 4   ;;  %s3178_s16 = smov %s3180_s18 }
 0x18c   :  { %14 = sbr.rel (!%p12_p5) target bundleno = 2 (0x2), region = 91 }

</bundles_post_ra>
